<compile_context>
chip_gen: v7x
topology: tpu7x:2x2x1
jax: 0.10.0
libtpu: 0.0.40
codegen_flags: <defaults>
</compile_context>

<pallas_src>
import functools

import jax
import jax.numpy as jnp
from jax.experimental import pallas as pl
from jax.experimental.pallas import tpu as pltpu

FC_HIDDEN = 128
C1, C2, C3 = 32, 64, 64  # conv output channels (fixed by the PyTorch module)


# ------------------------------- fused kernel -------------------------------

def _qnet_fused_kernel(
    x_ref,        # (1, H, W, Cin)  f32   NHWC grid, one sample
    pc_ref,       # (1, 1, P)       f32   piece vector, one sample
    w1_ref, b1_ref,   # (9*Cin, C1) bf16 / (1, C1) f32
    w2_ref, b2_ref,   # (9*C1, C2)  bf16 / (1, C2) f32
    w3_ref, b3_ref,   # (9*C2, C3)  bf16 / (1, C3) f32
    fw1_ref,      # (H*W*C3, 128)   bf16  FC1 weight, rows permuted to NHWC-flatten order
    fwp_ref,      # (P, 128)        bf16  FC1 weight, pieces block (folds the concat)
    fb1_ref,      # (1, 128)        f32
    fw2_ref,      # (128, n_pad)    bf16  FC2 weight, zero-padded to 128 lanes
    fb2_ref,      # (1, n_pad)      f32
    o_ref,        # (1, 1, n_pad)   f32
    pad0_ref, pad1_ref, pad2_ref,   # VMEM scratch: zero-padded activations per conv layer
    flat_ref,     # VMEM scratch: (1, H*W*C3) flattened conv features
    *, H, W,
):
    f32 = jnp.float32
    bf16 = jnp.bfloat16

    # Zero the padded activation buffers; borders stay zero, interiors are overwritten.
    pad0_ref[...] = jnp.zeros_like(pad0_ref)
    pad1_ref[...] = jnp.zeros_like(pad1_ref)
    pad2_ref[...] = jnp.zeros_like(pad2_ref)

    # Place this sample's NHWC grid into the interior of the first padded buffer.
    pad0_ref[1:H + 1, 1:W + 1, :] = x_ref[0]

    def conv3x3_relu(src_ref, w_ref, b_ref):
        xp = src_ref[...]                                   # (H+2, W+2, cin), one VMEM load
        cin = xp.shape[-1]
        # In-kernel im2col: 9 static taps -> (H*W, 9*cin) patch matrix.
        taps = [
            xp[dh:dh + H, dw:dw + W, :].reshape(H * W, cin)
            for dh in range(3)
            for dw in range(3)
        ]
        patches = jnp.concatenate(taps, axis=-1).astype(bf16)
        acc = jnp.dot(patches, w_ref[...], preferred_element_type=f32)
        return jnp.maximum(acc + b_ref[...], 0.0)           # f32 bias + ReLU epilogue

    a1 = conv3x3_relu(pad0_ref, w1_ref, b1_ref)             # (H*W, C1) f32
    pad1_ref[1:H + 1, 1:W + 1, :] = a1.reshape(H, W, a1.shape[-1])
    a2 = conv3x3_relu(pad1_ref, w2_ref, b2_ref)             # (H*W, C2) f32
    pad2_ref[1:H + 1, 1:W + 1, :] = a2.reshape(H, W, a2.shape[-1])
    a3 = conv3x3_relu(pad2_ref, w3_ref, b3_ref)             # (H*W, C3) f32

    # Flatten in NHWC order (h, w, c) inside VMEM.  FC1 weight rows were permuted at
    # preparation time to match this order, so the PyTorch NCHW transpose+flatten is free.
    hw, c3 = a3.shape
    for p in range(hw):
        flat_ref[0:1, p * c3:(p + 1) * c3] = a3[p:p + 1, :]

    flat = flat_ref[...].astype(bf16)                       # (1, H*W*C3)

    # FC1 (cnn block + pieces block, folding the concat) -> ReLU.
    h = jnp.dot(flat, fw1_ref[...], preferred_element_type=f32)
    h = h + jnp.dot(pc_ref[0].astype(bf16), fwp_ref[...], preferred_element_type=f32)
    h = jnp.maximum(h + fb1_ref[...], 0.0)                  # (1, 128) f32

    # FC2 epilogue, lane-dense (n_pad = 128) output store.
    q = jnp.dot(h.astype(bf16), fw2_ref[...], preferred_element_type=f32)
    o_ref[0] = (q + fb2_ref[...]).astype(o_ref.dtype)


# ------------------------------ host-side wrapper ----------------------------

@functools.partial(jax.jit, static_argnames=("action_size",))
def qnetwork_forward(kparams, grid_nchw, pieces, *, action_size):
    """grid_nchw: (N, C, H, W) f32; pieces: (N, P) f32 -> (N, action_size) f32."""
    N, c_in, H, W = grid_nchw.shape
    P = pieces.shape[1]
    hw = H * W
    c1 = kparams["w1"].shape[1]
    c2 = kparams["w2"].shape[1]
    c3 = kparams["w3"].shape[1]
    fc_h = kparams["fw1"].shape[1]
    n_pad = kparams["fw2"].shape[1]

    x = jnp.transpose(grid_nchw, (0, 2, 3, 1)).astype(jnp.float32)   # NCHW -> NHWC
    pc = pieces.reshape(N, 1, P).astype(jnp.float32)

    kernel = functools.partial(_qnet_fused_kernel, H=H, W=W)

    out = pl.pallas_call(
        kernel,
        out_shape=jax.ShapeDtypeStruct((N, 1, n_pad), jnp.float32),
        grid_spec=pltpu.PrefetchScalarGridSpec(
            num_scalar_prefetch=0,
            grid=(N,),
            in_specs=[
                pl.BlockSpec((1, H, W, c_in), lambda n: (n, 0, 0, 0)),   # grid sample
                pl.BlockSpec((1, 1, P), lambda n: (n, 0, 0)),            # pieces sample
                pl.BlockSpec((9 * c_in, c1), lambda n: (0, 0)),          # conv1 w (resident)
                pl.BlockSpec((1, c1), lambda n: (0, 0)),                 # conv1 b
                pl.BlockSpec((9 * c1, c2), lambda n: (0, 0)),            # conv2 w
                pl.BlockSpec((1, c2), lambda n: (0, 0)),                 # conv2 b
                pl.BlockSpec((9 * c2, c3), lambda n: (0, 0)),            # conv3 w
                pl.BlockSpec((1, c3), lambda n: (0, 0)),                 # conv3 b
                pl.BlockSpec((hw * c3, fc_h), lambda n: (0, 0)),         # fc1 w (cnn block)
                pl.BlockSpec((P, fc_h), lambda n: (0, 0)),               # fc1 w (pieces)
                pl.BlockSpec((1, fc_h), lambda n: (0, 0)),               # fc1 b
                pl.BlockSpec((fc_h, n_pad), lambda n: (0, 0)),           # fc2 w (padded)
                pl.BlockSpec((1, n_pad), lambda n: (0, 0)),              # fc2 b (padded)
            ],
            out_specs=pl.BlockSpec((1, 1, n_pad), lambda n: (n, 0, 0)),
            scratch_shapes=[
                pltpu.VMEM((H + 2, W + 2, c_in), jnp.float32),
                pltpu.VMEM((H + 2, W + 2, c1), jnp.float32),
                pltpu.VMEM((H + 2, W + 2, c2), jnp.float32),
                pltpu.VMEM((1, hw * c3), jnp.float32),
            ],
        ),
        compiler_params=pltpu.CompilerParams(
            dimension_semantics=("parallel",),
        ),
    )(
        x, pc,
        kparams["w1"], kparams["b1"],
        kparams["w2"], kparams["b2"],
        kparams["w3"], kparams["b3"],
        kparams["fw1"], kparams["fwp"], kparams["fb1"],
        kparams["fw2"], kparams["fb2"],
    )
    return out.reshape(N, n_pad)[:, :action_size]


# ------------------------------ params (PyTorch-style) ----------------------

def init_qnetwork_params(key, grid_shape_pytorch, piece_vector_size, action_size):
    grid_channels, H, W = grid_shape_pytorch
    cnn_out = C3 * H * W
    ks = jax.random.split(key, 10)

    def conv_init(kw, kb, cout, cin):
        bound = 1.0 / jnp.sqrt(float(cin * 9))
        w = jax.random.uniform(kw, (cout, cin, 3, 3), jnp.float32, -bound, bound)
        b = jax.random.uniform(kb, (cout,), jnp.float32, -bound, bound)
        return w, b

    def fc_init(kw, kb, fin, fout):
        bound = 1.0 / jnp.sqrt(float(fin))
        w = jax.random.uniform(kw, (fin, fout), jnp.float32, -bound, bound)
        b = jax.random.uniform(kb, (fout,), jnp.float32, -bound, bound)
        return w, b

    p = {}
    p["w1"], p["b1"] = conv_init(ks[0], ks[1], C1, grid_channels)
    p["w2"], p["b2"] = conv_init(ks[2], ks[3], C2, C1)
    p["w3"], p["b3"] = conv_init(ks[4], ks[5], C3, C2)
    p["fw1"], p["fb1"] = fc_init(ks[6], ks[7], cnn_out + piece_vector_size, FC_HIDDEN)
    p["fw2"], p["fb2"] = fc_init(ks[8], ks[9], FC_HIDDEN, action_size)
    return p


def prepare_kernel_params(params, grid_shape_pytorch, action_size):
    """One-time reshuffle of PyTorch-layout params into kernel layout (bf16 matmul weights,
    NHWC-permuted FC1 rows, pieces block split out, FC2 padded to 128 lanes)."""
    _, H, W = grid_shape_pytorch
    bf16, f32 = jnp.bfloat16, jnp.float32

    def conv_w(w):  # (Cout, Cin, 3, 3) -> (9*Cin, Cout), row order = (kh, kw, cin)
        cout, cin = w.shape[0], w.shape[1]
        return jnp.transpose(w, (2, 3, 1, 0)).reshape(9 * cin, cout).astype(bf16)

    cnn_feats = C3 * H * W
    fw1 = params["fw1"].astype(f32)                       # rows in PyTorch (c, h, w) order
    fw1_cnn = jnp.transpose(
        fw1[:cnn_feats].reshape(C3, H, W, FC_HIDDEN), (1, 2, 0, 3)
    ).reshape(H * W * C3, FC_HIDDEN)                      # rows now in (h, w, c) order
    fw1_pieces = fw1[cnn_feats:]                          # (P, 128)

    n_pad = ((action_size + 127) // 128) * 128
    fw2p = jnp.zeros((FC_HIDDEN, n_pad), f32).at[:, :action_size].set(params["fw2"])
    fb2p = jnp.zeros((1, n_pad), f32).at[0, :action_size].set(params["fb2"])

    return {
        "w1": conv_w(params["w1"]), "b1": params["b1"].reshape(1, -1).astype(f32),
        "w2": conv_w(params["w2"]), "b2": params["b2"].reshape(1, -1).astype(f32),
        "w3": conv_w(params["w3"]), "b3": params["b3"].reshape(1, -1).astype(f32),
        "fw1": fw1_cnn.astype(bf16), "fwp": fw1_pieces.astype(bf16),
        "fb1": params["fb1"].reshape(1, -1).astype(f32),
        "fw2": fw2p.astype(bf16), "fb2": fb2p,
    }


# ------------------------------ pure-JAX reference ---------------------------

def qnetwork_reference(params, grid_nchw, pieces):
    def conv3x3_relu(x_nhwc, w, b):
        n, hh, ww, cin = x_nhwc.shape
        cout = w.shape[0]
        xp = jnp.pad(x_nhwc, ((0, 0), (1, 1), (1, 1), (0, 0)))
        patches = jnp.concatenate(
            [xp[:, i:i + hh, j:j + ww, :] for i in range(3) for j in range(3)],
            axis=-1,
        ).reshape(n * hh * ww, 9 * cin)
        wm = jnp.transpose(w, (2, 3, 1, 0)).reshape(9 * cin, cout)
        y = jnp.maximum(patches @ wm + b, 0.0)
        return y.reshape(n, hh, ww, cout)

    x = jnp.transpose(grid_nchw, (0, 2, 3, 1))
    x = conv3x3_relu(x, params["w1"], params["b1"])
    x = conv3x3_relu(x, params["w2"], params["b2"])
    x = conv3x3_relu(x, params["w3"], params["b3"])
    n = x.shape[0]
    feats = jnp.transpose(x, (0, 3, 1, 2)).reshape(n, -1)   # PyTorch NCHW flatten
    combined = jnp.concatenate([feats, pieces], axis=1)
    h = jnp.maximum(combined @ params["fw1"] + params["fb1"], 0.0)
    return h @ params["fw2"] + params["fb2"]


# ----------------------------------- main ------------------------------------

if __name__ == "__main__":
    key = jax.random.PRNGKey(0)
    kp, kg, kv = jax.random.split(key, 3)

    grid_shape_pytorch = (4, 8, 8)   # (channels, H, W)
    piece_vector_size = 8
    action_size = 16
    batch = 2

    params = init_qnetwork_params(kp, grid_shape_pytorch, piece_vector_size, action_size)
    kparams = prepare_kernel_params(params, grid_shape_pytorch, action_size)

    grid_input = jax.random.normal(kg, (batch, *grid_shape_pytorch), jnp.float32)
    pieces_input = jax.random.normal(kv, (batch, piece_vector_size), jnp.float32)

    q_values = qnetwork_forward(kparams, grid_input, pieces_input, action_size=action_size)
    jax.block_until_ready(q_values)

    assert q_values.shape == (batch, action_size), q_values.shape
    assert q_values.dtype == jnp.float32

    # Sanity check against an f32 pure-JAX reference (bf16 MXU inputs -> loose tolerance).
    q_ref = qnetwork_reference(params, grid_input, pieces_input)
    max_err = float(jnp.max(jnp.abs(q_values - q_ref)))
    assert max_err < 0.1, f"max abs diff vs reference too large: {max_err}"

    print("KERNEL_OK")
</pallas_src>

<mosaic_0001>
module attributes {stable_mosaic.version = 11 : i64} {
  func.func @_qnet_fused_kernel(%arg0: i32, %arg1: memref<1x8x8x4xf32, #tpu.memory_space<vmem>>, %arg2: memref<1x1x8xf32, #tpu.memory_space<vmem>>, %arg3: memref<36x32xbf16, #tpu.memory_space<vmem>>, %arg4: memref<1x32xf32, #tpu.memory_space<vmem>>, %arg5: memref<288x64xbf16, #tpu.memory_space<vmem>>, %arg6: memref<1x64xf32, #tpu.memory_space<vmem>>, %arg7: memref<576x64xbf16, #tpu.memory_space<vmem>>, %arg8: memref<1x64xf32, #tpu.memory_space<vmem>>, %arg9: memref<4096x128xbf16, #tpu.memory_space<vmem>>, %arg10: memref<8x128xbf16, #tpu.memory_space<vmem>>, %arg11: memref<1x128xf32, #tpu.memory_space<vmem>>, %arg12: memref<128x128xbf16, #tpu.memory_space<vmem>>, %arg13: memref<1x128xf32, #tpu.memory_space<vmem>>, %arg14: memref<1x1x128xf32, #tpu.memory_space<vmem>>, %arg15: memref<10x10x4xf32, #tpu.memory_space<vmem>>, %arg16: memref<10x10x32xf32, #tpu.memory_space<vmem>>, %arg17: memref<10x10x64xf32, #tpu.memory_space<vmem>>, %arg18: memref<1x4096xf32, #tpu.memory_space<vmem>>) attributes {dimension_semantics = [#tpu.dimension_semantics<parallel>], iteration_bounds = array<i64: 2>, scalar_prefetch = 0 : i64, scratch_operands = 4 : i64, tpu.core_type = #tpu.core_type<tc>, window_params = [{transform_indices = @transform_0, window_bounds = array<i64: 1, 8, 8, 4>}, {transform_indices = @transform_1, window_bounds = array<i64: 1, 1, 8>}, {pipeline_mode = #tpu.pipeline_mode<synchronous>, transform_indices = @transform_2, window_bounds = array<i64: 36, 32>}, {pipeline_mode = #tpu.pipeline_mode<synchronous>, transform_indices = @transform_3, window_bounds = array<i64: 1, 32>}, {pipeline_mode = #tpu.pipeline_mode<synchronous>, transform_indices = @transform_4, window_bounds = array<i64: 288, 64>}, {pipeline_mode = #tpu.pipeline_mode<synchronous>, transform_indices = @transform_5, window_bounds = array<i64: 1, 64>}, {pipeline_mode = #tpu.pipeline_mode<synchronous>, transform_indices = @transform_6, window_bounds = array<i64: 576, 64>}, {pipeline_mode = #tpu.pipeline_mode<synchronous>, transform_indices = @transform_7, window_bounds = array<i64: 1, 64>}, {pipeline_mode = #tpu.pipeline_mode<synchronous>, transform_indices = @transform_8, window_bounds = array<i64: 4096, 128>}, {pipeline_mode = #tpu.pipeline_mode<synchronous>, transform_indices = @transform_9, window_bounds = array<i64: 8, 128>}, {pipeline_mode = #tpu.pipeline_mode<synchronous>, transform_indices = @transform_10, window_bounds = array<i64: 1, 128>}, {pipeline_mode = #tpu.pipeline_mode<synchronous>, transform_indices = @transform_11, window_bounds = array<i64: 128, 128>}, {pipeline_mode = #tpu.pipeline_mode<synchronous>, transform_indices = @transform_12, window_bounds = array<i64: 1, 128>}, {transform_indices = @transform_13, window_bounds = array<i64: 1, 1, 128>}]} {
    %cst = arith.constant 0.000000e+00 : f32
    %0 = vector.broadcast %cst : f32 to vector<10x10x4xf32>
    %c0 = arith.constant 0 : index
    %c0_0 = arith.constant 0 : index
    %c0_1 = arith.constant 0 : index
    %1 = vector.load %arg15[%c0, %c0_0, %c0_1] : memref<10x10x4xf32, #tpu.memory_space<vmem>>, vector<10x10x4xf32>
    tpu.vector_store %arg15[%c0, %c0_0, %c0_1], %0 {strides = array<i32>} : memref<10x10x4xf32, #tpu.memory_space<vmem>>, vector<10x10x4xf32>,
    %cst_2 = arith.constant 0.000000e+00 : f32
    %2 = vector.broadcast %cst_2 : f32 to vector<10x10x32xf32>
    %c0_3 = arith.constant 0 : index
    %c0_4 = arith.constant 0 : index
    %c0_5 = arith.constant 0 : index
    %3 = vector.load %arg16[%c0_3, %c0_4, %c0_5] : memref<10x10x32xf32, #tpu.memory_space<vmem>>, vector<10x10x32xf32>
    tpu.vector_store %arg16[%c0_3, %c0_4, %c0_5], %2 {strides = array<i32>} : memref<10x10x32xf32, #tpu.memory_space<vmem>>, vector<10x10x32xf32>,
    %cst_6 = arith.constant 0.000000e+00 : f32
    %4 = vector.broadcast %cst_6 : f32 to vector<10x10x64xf32>
    %c0_7 = arith.constant 0 : index
    %c0_8 = arith.constant 0 : index
    %c0_9 = arith.constant 0 : index
    %5 = vector.load %arg17[%c0_7, %c0_8, %c0_9] : memref<10x10x64xf32, #tpu.memory_space<vmem>>, vector<10x10x64xf32>
    tpu.vector_store %arg17[%c0_7, %c0_8, %c0_9], %4 {strides = array<i32>} : memref<10x10x64xf32, #tpu.memory_space<vmem>>, vector<10x10x64xf32>,
    %c0_10 = arith.constant 0 : index
    %c0_11 = arith.constant 0 : index
    %c0_12 = arith.constant 0 : index
    %c0_13 = arith.constant 0 : index
    %6 = vector.load %arg1[%c0_10, %c0_11, %c0_12, %c0_13] : memref<1x8x8x4xf32, #tpu.memory_space<vmem>>, vector<1x8x8x4xf32>
    %7 = vector.shape_cast %6 : vector<1x8x8x4xf32> to vector<8x8x4xf32>
    %c1 = arith.constant 1 : index
    %c1_14 = arith.constant 1 : index
    %c0_15 = arith.constant 0 : index
    %8 = vector.load %arg15[%c1, %c1_14, %c0_15] : memref<10x10x4xf32, #tpu.memory_space<vmem>>, vector<8x8x4xf32>
    tpu.vector_store %arg15[%c1, %c1_14, %c0_15], %7 {strides = array<i32>} : memref<10x10x4xf32, #tpu.memory_space<vmem>>, vector<8x8x4xf32>,
    %c0_16 = arith.constant 0 : index
    %c0_17 = arith.constant 0 : index
    %c0_18 = arith.constant 0 : index
    %9 = vector.load %arg15[%c0_16, %c0_17, %c0_18] : memref<10x10x4xf32, #tpu.memory_space<vmem>>, vector<10x10x4xf32>
    %10 = vector.extract_strided_slice %9 {offsets = [0, 0, 0], sizes = [8, 8, 4], strides = [1, 1, 1]} : vector<10x10x4xf32> to vector<8x8x4xf32>
    %11 = vector.shape_cast %10 : vector<8x8x4xf32> to vector<64x4xf32>
    %12 = vector.extract_strided_slice %9 {offsets = [0, 1, 0], sizes = [8, 8, 4], strides = [1, 1, 1]} : vector<10x10x4xf32> to vector<8x8x4xf32>
    %13 = vector.shape_cast %12 : vector<8x8x4xf32> to vector<64x4xf32>
    %14 = vector.extract_strided_slice %9 {offsets = [0, 2, 0], sizes = [8, 8, 4], strides = [1, 1, 1]} : vector<10x10x4xf32> to vector<8x8x4xf32>
    %15 = vector.shape_cast %14 : vector<8x8x4xf32> to vector<64x4xf32>
    %16 = vector.extract_strided_slice %9 {offsets = [1, 0, 0], sizes = [8, 8, 4], strides = [1, 1, 1]} : vector<10x10x4xf32> to vector<8x8x4xf32>
    %17 = vector.shape_cast %16 : vector<8x8x4xf32> to vector<64x4xf32>
    %18 = vector.extract_strided_slice %9 {offsets = [1, 1, 0], sizes = [8, 8, 4], strides = [1, 1, 1]} : vector<10x10x4xf32> to vector<8x8x4xf32>
    %19 = vector.shape_cast %18 : vector<8x8x4xf32> to vector<64x4xf32>
    %20 = vector.extract_strided_slice %9 {offsets = [1, 2, 0], sizes = [8, 8, 4], strides = [1, 1, 1]} : vector<10x10x4xf32> to vector<8x8x4xf32>
    %21 = vector.shape_cast %20 : vector<8x8x4xf32> to vector<64x4xf32>
    %22 = vector.extract_strided_slice %9 {offsets = [2, 0, 0], sizes = [8, 8, 4], strides = [1, 1, 1]} : vector<10x10x4xf32> to vector<8x8x4xf32>
    %23 = vector.shape_cast %22 : vector<8x8x4xf32> to vector<64x4xf32>
    %24 = vector.extract_strided_slice %9 {offsets = [2, 1, 0], sizes = [8, 8, 4], strides = [1, 1, 1]} : vector<10x10x4xf32> to vector<8x8x4xf32>
    %25 = vector.shape_cast %24 : vector<8x8x4xf32> to vector<64x4xf32>
    %26 = vector.extract_strided_slice %9 {offsets = [2, 2, 0], sizes = [8, 8, 4], strides = [1, 1, 1]} : vector<10x10x4xf32> to vector<8x8x4xf32>
    %27 = vector.shape_cast %26 : vector<8x8x4xf32> to vector<64x4xf32>
    %28 = tpu.concatenate %11, %13, %15, %17, %19, %21, %23, %25, %27 in 1 : vector<64x4xf32>, vector<64x4xf32>, vector<64x4xf32>, vector<64x4xf32>, vector<64x4xf32>, vector<64x4xf32>, vector<64x4xf32>, vector<64x4xf32>, vector<64x4xf32> -> vector<64x36xf32>
    %29 = arith.truncf %28 : vector<64x36xf32> to vector<64x36xbf16>
    %c0_19 = arith.constant 0 : index
    %c0_20 = arith.constant 0 : index
    %30 = vector.load %arg3[%c0_19, %c0_20] : memref<36x32xbf16, #tpu.memory_space<vmem>>, vector<36x32xbf16>
    %cst_21 = arith.constant dense<0.000000e+00> : vector<64x32xf32>
    %31 = tpu.matmul %29, %30, %cst_21 {dimension_numbers = #tpu.dot_dimension_numbers<[1], [0], [0], [1], [0, 0, 1, 1], [], []>} : vector<64x36xbf16>, vector<36x32xbf16>, vector<64x32xf32> -> vector<64x32xf32>
    %c0_22 = arith.constant 0 : index
    %c0_23 = arith.constant 0 : index
    %32 = vector.load %arg4[%c0_22, %c0_23] : memref<1x32xf32, #tpu.memory_space<vmem>>, vector<1x32xf32>
    %33 = vector.broadcast %32 : vector<1x32xf32> to vector<64x32xf32>
    %34 = arith.addf %31, %33 : vector<64x32xf32>
    %cst_24 = arith.constant 0.000000e+00 : f32
    %35 = vector.broadcast %cst_24 : f32 to vector<64x32xf32>
    %36 = arith.maximumf %34, %35 : vector<64x32xf32>
    %37 = vector.shape_cast %36 : vector<64x32xf32> to vector<8x8x32xf32>
    %c1_25 = arith.constant 1 : index
    %c1_26 = arith.constant 1 : index
    %c0_27 = arith.constant 0 : index
    %38 = vector.load %arg16[%c1_25, %c1_26, %c0_27] : memref<10x10x32xf32, #tpu.memory_space<vmem>>, vector<8x8x32xf32>
    tpu.vector_store %arg16[%c1_25, %c1_26, %c0_27], %37 {strides = array<i32>} : memref<10x10x32xf32, #tpu.memory_space<vmem>>, vector<8x8x32xf32>,
    %c0_28 = arith.constant 0 : index
    %c0_29 = arith.constant 0 : index
    %c0_30 = arith.constant 0 : index
    %39 = vector.load %arg16[%c0_28, %c0_29, %c0_30] : memref<10x10x32xf32, #tpu.memory_space<vmem>>, vector<10x10x32xf32>
    %40 = vector.extract_strided_slice %39 {offsets = [0, 0, 0], sizes = [8, 8, 32], strides = [1, 1, 1]} : vector<10x10x32xf32> to vector<8x8x32xf32>
    %41 = vector.shape_cast %40 : vector<8x8x32xf32> to vector<64x32xf32>
    %42 = vector.extract_strided_slice %39 {offsets = [0, 1, 0], sizes = [8, 8, 32], strides = [1, 1, 1]} : vector<10x10x32xf32> to vector<8x8x32xf32>
    %43 = vector.shape_cast %42 : vector<8x8x32xf32> to vector<64x32xf32>
    %44 = vector.extract_strided_slice %39 {offsets = [0, 2, 0], sizes = [8, 8, 32], strides = [1, 1, 1]} : vector<10x10x32xf32> to vector<8x8x32xf32>
    %45 = vector.shape_cast %44 : vector<8x8x32xf32> to vector<64x32xf32>
    %46 = vector.extract_strided_slice %39 {offsets = [1, 0, 0], sizes = [8, 8, 32], strides = [1, 1, 1]} : vector<10x10x32xf32> to vector<8x8x32xf32>
    %47 = vector.shape_cast %46 : vector<8x8x32xf32> to vector<64x32xf32>
    %48 = vector.extract_strided_slice %39 {offsets = [1, 1, 0], sizes = [8, 8, 32], strides = [1, 1, 1]} : vector<10x10x32xf32> to vector<8x8x32xf32>
    %49 = vector.shape_cast %48 : vector<8x8x32xf32> to vector<64x32xf32>
    %50 = vector.extract_strided_slice %39 {offsets = [1, 2, 0], sizes = [8, 8, 32], strides = [1, 1, 1]} : vector<10x10x32xf32> to vector<8x8x32xf32>
    %51 = vector.shape_cast %50 : vector<8x8x32xf32> to vector<64x32xf32>
    %52 = vector.extract_strided_slice %39 {offsets = [2, 0, 0], sizes = [8, 8, 32], strides = [1, 1, 1]} : vector<10x10x32xf32> to vector<8x8x32xf32>
    %53 = vector.shape_cast %52 : vector<8x8x32xf32> to vector<64x32xf32>
    %54 = vector.extract_strided_slice %39 {offsets = [2, 1, 0], sizes = [8, 8, 32], strides = [1, 1, 1]} : vector<10x10x32xf32> to vector<8x8x32xf32>
    %55 = vector.shape_cast %54 : vector<8x8x32xf32> to vector<64x32xf32>
    %56 = vector.extract_strided_slice %39 {offsets = [2, 2, 0], sizes = [8, 8, 32], strides = [1, 1, 1]} : vector<10x10x32xf32> to vector<8x8x32xf32>
    %57 = vector.shape_cast %56 : vector<8x8x32xf32> to vector<64x32xf32>
    %58 = tpu.concatenate %41, %43, %45, %47, %49, %51, %53, %55, %57 in 1 : vector<64x32xf32>, vector<64x32xf32>, vector<64x32xf32>, vector<64x32xf32>, vector<64x32xf32>, vector<64x32xf32>, vector<64x32xf32>, vector<64x32xf32>, vector<64x32xf32> -> vector<64x288xf32>
    %59 = arith.truncf %58 : vector<64x288xf32> to vector<64x288xbf16>
    %c0_31 = arith.constant 0 : index
    %c0_32 = arith.constant 0 : index
    %60 = vector.load %arg5[%c0_31, %c0_32] : memref<288x64xbf16, #tpu.memory_space<vmem>>, vector<288x64xbf16>
    %cst_33 = arith.constant dense<0.000000e+00> : vector<64x64xf32>
    %61 = tpu.matmul %59, %60, %cst_33 {dimension_numbers = #tpu.dot_dimension_numbers<[1], [0], [0], [1], [0, 0, 1, 1], [], []>} : vector<64x288xbf16>, vector<288x64xbf16>, vector<64x64xf32> -> vector<64x64xf32>
    %c0_34 = arith.constant 0 : index
    %c0_35 = arith.constant 0 : index
    %62 = vector.load %arg6[%c0_34, %c0_35] : memref<1x64xf32, #tpu.memory_space<vmem>>, vector<1x64xf32>
    %63 = vector.broadcast %62 : vector<1x64xf32> to vector<64x64xf32>
    %64 = arith.addf %61, %63 : vector<64x64xf32>
    %cst_36 = arith.constant 0.000000e+00 : f32
    %65 = vector.broadcast %cst_36 : f32 to vector<64x64xf32>
    %66 = arith.maximumf %64, %65 : vector<64x64xf32>
    %67 = vector.shape_cast %66 : vector<64x64xf32> to vector<8x8x64xf32>
    %c1_37 = arith.constant 1 : index
    %c1_38 = arith.constant 1 : index
    %c0_39 = arith.constant 0 : index
    %68 = vector.load %arg17[%c1_37, %c1_38, %c0_39] : memref<10x10x64xf32, #tpu.memory_space<vmem>>, vector<8x8x64xf32>
    tpu.vector_store %arg17[%c1_37, %c1_38, %c0_39], %67 {strides = array<i32>} : memref<10x10x64xf32, #tpu.memory_space<vmem>>, vector<8x8x64xf32>,
    %c0_40 = arith.constant 0 : index
    %c0_41 = arith.constant 0 : index
    %c0_42 = arith.constant 0 : index
    %69 = vector.load %arg17[%c0_40, %c0_41, %c0_42] : memref<10x10x64xf32, #tpu.memory_space<vmem>>, vector<10x10x64xf32>
    %70 = vector.extract_strided_slice %69 {offsets = [0, 0, 0], sizes = [8, 8, 64], strides = [1, 1, 1]} : vector<10x10x64xf32> to vector<8x8x64xf32>
    %71 = vector.shape_cast %70 : vector<8x8x64xf32> to vector<64x64xf32>
    %72 = vector.extract_strided_slice %69 {offsets = [0, 1, 0], sizes = [8, 8, 64], strides = [1, 1, 1]} : vector<10x10x64xf32> to vector<8x8x64xf32>
    %73 = vector.shape_cast %72 : vector<8x8x64xf32> to vector<64x64xf32>
    %74 = vector.extract_strided_slice %69 {offsets = [0, 2, 0], sizes = [8, 8, 64], strides = [1, 1, 1]} : vector<10x10x64xf32> to vector<8x8x64xf32>
    %75 = vector.shape_cast %74 : vector<8x8x64xf32> to vector<64x64xf32>
    %76 = vector.extract_strided_slice %69 {offsets = [1, 0, 0], sizes = [8, 8, 64], strides = [1, 1, 1]} : vector<10x10x64xf32> to vector<8x8x64xf32>
    %77 = vector.shape_cast %76 : vector<8x8x64xf32> to vector<64x64xf32>
    %78 = vector.extract_strided_slice %69 {offsets = [1, 1, 0], sizes = [8, 8, 64], strides = [1, 1, 1]} : vector<10x10x64xf32> to vector<8x8x64xf32>
    %79 = vector.shape_cast %78 : vector<8x8x64xf32> to vector<64x64xf32>
    %80 = vector.extract_strided_slice %69 {offsets = [1, 2, 0], sizes = [8, 8, 64], strides = [1, 1, 1]} : vector<10x10x64xf32> to vector<8x8x64xf32>
    %81 = vector.shape_cast %80 : vector<8x8x64xf32> to vector<64x64xf32>
    %82 = vector.extract_strided_slice %69 {offsets = [2, 0, 0], sizes = [8, 8, 64], strides = [1, 1, 1]} : vector<10x10x64xf32> to vector<8x8x64xf32>
    %83 = vector.shape_cast %82 : vector<8x8x64xf32> to vector<64x64xf32>
    %84 = vector.extract_strided_slice %69 {offsets = [2, 1, 0], sizes = [8, 8, 64], strides = [1, 1, 1]} : vector<10x10x64xf32> to vector<8x8x64xf32>
    %85 = vector.shape_cast %84 : vector<8x8x64xf32> to vector<64x64xf32>
    %86 = vector.extract_strided_slice %69 {offsets = [2, 2, 0], sizes = [8, 8, 64], strides = [1, 1, 1]} : vector<10x10x64xf32> to vector<8x8x64xf32>
    %87 = vector.shape_cast %86 : vector<8x8x64xf32> to vector<64x64xf32>
    %88 = tpu.concatenate %71, %73, %75, %77, %79, %81, %83, %85, %87 in 1 : vector<64x64xf32>, vector<64x64xf32>, vector<64x64xf32>, vector<64x64xf32>, vector<64x64xf32>, vector<64x64xf32>, vector<64x64xf32>, vector<64x64xf32>, vector<64x64xf32> -> vector<64x576xf32>
    %89 = arith.truncf %88 : vector<64x576xf32> to vector<64x576xbf16>
    %c0_43 = arith.constant 0 : index
    %c0_44 = arith.constant 0 : index
    %90 = vector.load %arg7[%c0_43, %c0_44] : memref<576x64xbf16, #tpu.memory_space<vmem>>, vector<576x64xbf16>
    %cst_45 = arith.constant dense<0.000000e+00> : vector<64x64xf32>
    %91 = tpu.matmul %89, %90, %cst_45 {dimension_numbers = #tpu.dot_dimension_numbers<[1], [0], [0], [1], [0, 0, 1, 1], [], []>} : vector<64x576xbf16>, vector<576x64xbf16>, vector<64x64xf32> -> vector<64x64xf32>
    %c0_46 = arith.constant 0 : index
    %c0_47 = arith.constant 0 : index
    %92 = vector.load %arg8[%c0_46, %c0_47] : memref<1x64xf32, #tpu.memory_space<vmem>>, vector<1x64xf32>
    %93 = vector.broadcast %92 : vector<1x64xf32> to vector<64x64xf32>
    %94 = arith.addf %91, %93 : vector<64x64xf32>
    %cst_48 = arith.constant 0.000000e+00 : f32
    %95 = vector.broadcast %cst_48 : f32 to vector<64x64xf32>
    %96 = arith.maximumf %94, %95 : vector<64x64xf32>
    %97 = vector.extract_strided_slice %96 {offsets = [0, 0], sizes = [1, 64], strides = [1, 1]} : vector<64x64xf32> to vector<1x64xf32>
    %c0_49 = arith.constant 0 : index
    %c0_50 = arith.constant 0 : index
    %98 = vector.load %arg18[%c0_49, %c0_50] : memref<1x4096xf32, #tpu.memory_space<vmem>>, vector<1x64xf32>
    tpu.vector_store %arg18[%c0_49, %c0_50], %97 {strides = array<i32>} : memref<1x4096xf32, #tpu.memory_space<vmem>>, vector<1x64xf32>,
    %99 = vector.extract_strided_slice %96 {offsets = [1, 0], sizes = [1, 64], strides = [1, 1]} : vector<64x64xf32> to vector<1x64xf32>
    %c0_51 = arith.constant 0 : index
    %c64 = arith.constant 64 : index
    %100 = vector.load %arg18[%c0_51, %c64] : memref<1x4096xf32, #tpu.memory_space<vmem>>, vector<1x64xf32>
    tpu.vector_store %arg18[%c0_51, %c64], %99 {strides = array<i32>} : memref<1x4096xf32, #tpu.memory_space<vmem>>, vector<1x64xf32>,
    %101 = vector.extract_strided_slice %96 {offsets = [2, 0], sizes = [1, 64], strides = [1, 1]} : vector<64x64xf32> to vector<1x64xf32>
    %c0_52 = arith.constant 0 : index
    %c128 = arith.constant 128 : index
    %102 = vector.load %arg18[%c0_52, %c128] : memref<1x4096xf32, #tpu.memory_space<vmem>>, vector<1x64xf32>
    tpu.vector_store %arg18[%c0_52, %c128], %101 {strides = array<i32>} : memref<1x4096xf32, #tpu.memory_space<vmem>>, vector<1x64xf32>,
    %103 = vector.extract_strided_slice %96 {offsets = [3, 0], sizes = [1, 64], strides = [1, 1]} : vector<64x64xf32> to vector<1x64xf32>
    %c0_53 = arith.constant 0 : index
    %c192 = arith.constant 192 : index
    %104 = vector.load %arg18[%c0_53, %c192] : memref<1x4096xf32, #tpu.memory_space<vmem>>, vector<1x64xf32>
    tpu.vector_store %arg18[%c0_53, %c192], %103 {strides = array<i32>} : memref<1x4096xf32, #tpu.memory_space<vmem>>, vector<1x64xf32>,
    %105 = vector.extract_strided_slice %96 {offsets = [4, 0], sizes = [1, 64], strides = [1, 1]} : vector<64x64xf32> to vector<1x64xf32>
    %c0_54 = arith.constant 0 : index
    %c256 = arith.constant 256 : index
    %106 = vector.load %arg18[%c0_54, %c256] : memref<1x4096xf32, #tpu.memory_space<vmem>>, vector<1x64xf32>
    tpu.vector_store %arg18[%c0_54, %c256], %105 {strides = array<i32>} : memref<1x4096xf32, #tpu.memory_space<vmem>>, vector<1x64xf32>,
    %107 = vector.extract_strided_slice %96 {offsets = [5, 0], sizes = [1, 64], strides = [1, 1]} : vector<64x64xf32> to vector<1x64xf32>
    %c0_55 = arith.constant 0 : index
    %c320 = arith.constant 320 : index
    %108 = vector.load %arg18[%c0_55, %c320] : memref<1x4096xf32, #tpu.memory_space<vmem>>, vector<1x64xf32>
    tpu.vector_store %arg18[%c0_55, %c320], %107 {strides = array<i32>} : memref<1x4096xf32, #tpu.memory_space<vmem>>, vector<1x64xf32>,
    %109 = vector.extract_strided_slice %96 {offsets = [6, 0], sizes = [1, 64], strides = [1, 1]} : vector<64x64xf32> to vector<1x64xf32>
    %c0_56 = arith.constant 0 : index
    %c384 = arith.constant 384 : index
    %110 = vector.load %arg18[%c0_56, %c384] : memref<1x4096xf32, #tpu.memory_space<vmem>>, vector<1x64xf32>
    tpu.vector_store %arg18[%c0_56, %c384], %109 {strides = array<i32>} : memref<1x4096xf32, #tpu.memory_space<vmem>>, vector<1x64xf32>,
    %111 = vector.extract_strided_slice %96 {offsets = [7, 0], sizes = [1, 64], strides = [1, 1]} : vector<64x64xf32> to vector<1x64xf32>
    %c0_57 = arith.constant 0 : index
    %c448 = arith.constant 448 : index
    %112 = vector.load %arg18[%c0_57, %c448] : memref<1x4096xf32, #tpu.memory_space<vmem>>, vector<1x64xf32>
    tpu.vector_store %arg18[%c0_57, %c448], %111 {strides = array<i32>} : memref<1x4096xf32, #tpu.memory_space<vmem>>, vector<1x64xf32>,
    %113 = vector.extract_strided_slice %96 {offsets = [8, 0], sizes = [1, 64], strides = [1, 1]} : vector<64x64xf32> to vector<1x64xf32>
    %c0_58 = arith.constant 0 : index
    %c512 = arith.constant 512 : index
    %114 = vector.load %arg18[%c0_58, %c512] : memref<1x4096xf32, #tpu.memory_space<vmem>>, vector<1x64xf32>
    tpu.vector_store %arg18[%c0_58, %c512], %113 {strides = array<i32>} : memref<1x4096xf32, #tpu.memory_space<vmem>>, vector<1x64xf32>,
    %115 = vector.extract_strided_slice %96 {offsets = [9, 0], sizes = [1, 64], strides = [1, 1]} : vector<64x64xf32> to vector<1x64xf32>
    %c0_59 = arith.constant 0 : index
    %c576 = arith.constant 576 : index
    %116 = vector.load %arg18[%c0_59, %c576] : memref<1x4096xf32, #tpu.memory_space<vmem>>, vector<1x64xf32>
    tpu.vector_store %arg18[%c0_59, %c576], %115 {strides = array<i32>} : memref<1x4096xf32, #tpu.memory_space<vmem>>, vector<1x64xf32>,
    %117 = vector.extract_strided_slice %96 {offsets = [10, 0], sizes = [1, 64], strides = [1, 1]} : vector<64x64xf32> to vector<1x64xf32>
    %c0_60 = arith.constant 0 : index
    %c640 = arith.constant 640 : index
    %118 = vector.load %arg18[%c0_60, %c640] : memref<1x4096xf32, #tpu.memory_space<vmem>>, vector<1x64xf32>
    tpu.vector_store %arg18[%c0_60, %c640], %117 {strides = array<i32>} : memref<1x4096xf32, #tpu.memory_space<vmem>>, vector<1x64xf32>,
    %119 = vector.extract_strided_slice %96 {offsets = [11, 0], sizes = [1, 64], strides = [1, 1]} : vector<64x64xf32> to vector<1x64xf32>
    %c0_61 = arith.constant 0 : index
    %c704 = arith.constant 704 : index
    %120 = vector.load %arg18[%c0_61, %c704] : memref<1x4096xf32, #tpu.memory_space<vmem>>, vector<1x64xf32>
    tpu.vector_store %arg18[%c0_61, %c704], %119 {strides = array<i32>} : memref<1x4096xf32, #tpu.memory_space<vmem>>, vector<1x64xf32>,
    %121 = vector.extract_strided_slice %96 {offsets = [12, 0], sizes = [1, 64], strides = [1, 1]} : vector<64x64xf32> to vector<1x64xf32>
    %c0_62 = arith.constant 0 : index
    %c768 = arith.constant 768 : index
    %122 = vector.load %arg18[%c0_62, %c768] : memref<1x4096xf32, #tpu.memory_space<vmem>>, vector<1x64xf32>
    tpu.vector_store %arg18[%c0_62, %c768], %121 {strides = array<i32>} : memref<1x4096xf32, #tpu.memory_space<vmem>>, vector<1x64xf32>,
    %123 = vector.extract_strided_slice %96 {offsets = [13, 0], sizes = [1, 64], strides = [1, 1]} : vector<64x64xf32> to vector<1x64xf32>
    %c0_63 = arith.constant 0 : index
    %c832 = arith.constant 832 : index
    %124 = vector.load %arg18[%c0_63, %c832] : memref<1x4096xf32, #tpu.memory_space<vmem>>, vector<1x64xf32>
    tpu.vector_store %arg18[%c0_63, %c832], %123 {strides = array<i32>} : memref<1x4096xf32, #tpu.memory_space<vmem>>, vector<1x64xf32>,
    %125 = vector.extract_strided_slice %96 {offsets = [14, 0], sizes = [1, 64], strides = [1, 1]} : vector<64x64xf32> to vector<1x64xf32>
    %c0_64 = arith.constant 0 : index
    %c896 = arith.constant 896 : index
    %126 = vector.load %arg18[%c0_64, %c896] : memref<1x4096xf32, #tpu.memory_space<vmem>>, vector<1x64xf32>
    tpu.vector_store %arg18[%c0_64, %c896], %125 {strides = array<i32>} : memref<1x4096xf32, #tpu.memory_space<vmem>>, vector<1x64xf32>,
    %127 = vector.extract_strided_slice %96 {offsets = [15, 0], sizes = [1, 64], strides = [1, 1]} : vector<64x64xf32> to vector<1x64xf32>
    %c0_65 = arith.constant 0 : index
    %c960 = arith.constant 960 : index
    %128 = vector.load %arg18[%c0_65, %c960] : memref<1x4096xf32, #tpu.memory_space<vmem>>, vector<1x64xf32>
    tpu.vector_store %arg18[%c0_65, %c960], %127 {strides = array<i32>} : memref<1x4096xf32, #tpu.memory_space<vmem>>, vector<1x64xf32>,
    %129 = vector.extract_strided_slice %96 {offsets = [16, 0], sizes = [1, 64], strides = [1, 1]} : vector<64x64xf32> to vector<1x64xf32>
    %c0_66 = arith.constant 0 : index
    %c1024 = arith.constant 1024 : index
    %130 = vector.load %arg18[%c0_66, %c1024] : memref<1x4096xf32, #tpu.memory_space<vmem>>, vector<1x64xf32>
    tpu.vector_store %arg18[%c0_66, %c1024], %129 {strides = array<i32>} : memref<1x4096xf32, #tpu.memory_space<vmem>>, vector<1x64xf32>,
    %131 = vector.extract_strided_slice %96 {offsets = [17, 0], sizes = [1, 64], strides = [1, 1]} : vector<64x64xf32> to vector<1x64xf32>
    %c0_67 = arith.constant 0 : index
    %c1088 = arith.constant 1088 : index
    %132 = vector.load %arg18[%c0_67, %c1088] : memref<1x4096xf32, #tpu.memory_space<vmem>>, vector<1x64xf32>
    tpu.vector_store %arg18[%c0_67, %c1088], %131 {strides = array<i32>} : memref<1x4096xf32, #tpu.memory_space<vmem>>, vector<1x64xf32>,
    %133 = vector.extract_strided_slice %96 {offsets = [18, 0], sizes = [1, 64], strides = [1, 1]} : vector<64x64xf32> to vector<1x64xf32>
    %c0_68 = arith.constant 0 : index
    %c1152 = arith.constant 1152 : index
    %134 = vector.load %arg18[%c0_68, %c1152] : memref<1x4096xf32, #tpu.memory_space<vmem>>, vector<1x64xf32>
    tpu.vector_store %arg18[%c0_68, %c1152], %133 {strides = array<i32>} : memref<1x4096xf32, #tpu.memory_space<vmem>>, vector<1x64xf32>,
    %135 = vector.extract_strided_slice %96 {offsets = [19, 0], sizes = [1, 64], strides = [1, 1]} : vector<64x64xf32> to vector<1x64xf32>
    %c0_69 = arith.constant 0 : index
    %c1216 = arith.constant 1216 : index
    %136 = vector.load %arg18[%c0_69, %c1216] : memref<1x4096xf32, #tpu.memory_space<vmem>>, vector<1x64xf32>
    tpu.vector_store %arg18[%c0_69, %c1216], %135 {strides = array<i32>} : memref<1x4096xf32, #tpu.memory_space<vmem>>, vector<1x64xf32>,
    %137 = vector.extract_strided_slice %96 {offsets = [20, 0], sizes = [1, 64], strides = [1, 1]} : vector<64x64xf32> to vector<1x64xf32>
    %c0_70 = arith.constant 0 : index
    %c1280 = arith.constant 1280 : index
    %138 = vector.load %arg18[%c0_70, %c1280] : memref<1x4096xf32, #tpu.memory_space<vmem>>, vector<1x64xf32>
    tpu.vector_store %arg18[%c0_70, %c1280], %137 {strides = array<i32>} : memref<1x4096xf32, #tpu.memory_space<vmem>>, vector<1x64xf32>,
    %139 = vector.extract_strided_slice %96 {offsets = [21, 0], sizes = [1, 64], strides = [1, 1]} : vector<64x64xf32> to vector<1x64xf32>
    %c0_71 = arith.constant 0 : index
    %c1344 = arith.constant 1344 : index
    %140 = vector.load %arg18[%c0_71, %c1344] : memref<1x4096xf32, #tpu.memory_space<vmem>>, vector<1x64xf32>
    tpu.vector_store %arg18[%c0_71, %c1344], %139 {strides = array<i32>} : memref<1x4096xf32, #tpu.memory_space<vmem>>, vector<1x64xf32>,
    %141 = vector.extract_strided_slice %96 {offsets = [22, 0], sizes = [1, 64], strides = [1, 1]} : vector<64x64xf32> to vector<1x64xf32>
    %c0_72 = arith.constant 0 : index
    %c1408 = arith.constant 1408 : index
    %142 = vector.load %arg18[%c0_72, %c1408] : memref<1x4096xf32, #tpu.memory_space<vmem>>, vector<1x64xf32>
    tpu.vector_store %arg18[%c0_72, %c1408], %141 {strides = array<i32>} : memref<1x4096xf32, #tpu.memory_space<vmem>>, vector<1x64xf32>,
    %143 = vector.extract_strided_slice %96 {offsets = [23, 0], sizes = [1, 64], strides = [1, 1]} : vector<64x64xf32> to vector<1x64xf32>
    %c0_73 = arith.constant 0 : index
    %c1472 = arith.constant 1472 : index
    %144 = vector.load %arg18[%c0_73, %c1472] : memref<1x4096xf32, #tpu.memory_space<vmem>>, vector<1x64xf32>
    tpu.vector_store %arg18[%c0_73, %c1472], %143 {strides = array<i32>} : memref<1x4096xf32, #tpu.memory_space<vmem>>, vector<1x64xf32>,
    %145 = vector.extract_strided_slice %96 {offsets = [24, 0], sizes = [1, 64], strides = [1, 1]} : vector<64x64xf32> to vector<1x64xf32>
    %c0_74 = arith.constant 0 : index
    %c1536 = arith.constant 1536 : index
    %146 = vector.load %arg18[%c0_74, %c1536] : memref<1x4096xf32, #tpu.memory_space<vmem>>, vector<1x64xf32>
    tpu.vector_store %arg18[%c0_74, %c1536], %145 {strides = array<i32>} : memref<1x4096xf32, #tpu.memory_space<vmem>>, vector<1x64xf32>,
    %147 = vector.extract_strided_slice %96 {offsets = [25, 0], sizes = [1, 64], strides = [1, 1]} : vector<64x64xf32> to vector<1x64xf32>
    %c0_75 = arith.constant 0 : index
    %c1600 = arith.constant 1600 : index
    %148 = vector.load %arg18[%c0_75, %c1600] : memref<1x4096xf32, #tpu.memory_space<vmem>>, vector<1x64xf32>
    tpu.vector_store %arg18[%c0_75, %c1600], %147 {strides = array<i32>} : memref<1x4096xf32, #tpu.memory_space<vmem>>, vector<1x64xf32>,
    %149 = vector.extract_strided_slice %96 {offsets = [26, 0], sizes = [1, 64], strides = [1, 1]} : vector<64x64xf32> to vector<1x64xf32>
    %c0_76 = arith.constant 0 : index
    %c1664 = arith.constant 1664 : index
    %150 = vector.load %arg18[%c0_76, %c1664] : memref<1x4096xf32, #tpu.memory_space<vmem>>, vector<1x64xf32>
    tpu.vector_store %arg18[%c0_76, %c1664], %149 {strides = array<i32>} : memref<1x4096xf32, #tpu.memory_space<vmem>>, vector<1x64xf32>,
    %151 = vector.extract_strided_slice %96 {offsets = [27, 0], sizes = [1, 64], strides = [1, 1]} : vector<64x64xf32> to vector<1x64xf32>
    %c0_77 = arith.constant 0 : index
    %c1728 = arith.constant 1728 : index
    %152 = vector.load %arg18[%c0_77, %c1728] : memref<1x4096xf32, #tpu.memory_space<vmem>>, vector<1x64xf32>
    tpu.vector_store %arg18[%c0_77, %c1728], %151 {strides = array<i32>} : memref<1x4096xf32, #tpu.memory_space<vmem>>, vector<1x64xf32>,
    %153 = vector.extract_strided_slice %96 {offsets = [28, 0], sizes = [1, 64], strides = [1, 1]} : vector<64x64xf32> to vector<1x64xf32>
    %c0_78 = arith.constant 0 : index
    %c1792 = arith.constant 1792 : index
    %154 = vector.load %arg18[%c0_78, %c1792] : memref<1x4096xf32, #tpu.memory_space<vmem>>, vector<1x64xf32>
    tpu.vector_store %arg18[%c0_78, %c1792], %153 {strides = array<i32>} : memref<1x4096xf32, #tpu.memory_space<vmem>>, vector<1x64xf32>,
    %155 = vector.extract_strided_slice %96 {offsets = [29, 0], sizes = [1, 64], strides = [1, 1]} : vector<64x64xf32> to vector<1x64xf32>
    %c0_79 = arith.constant 0 : index
    %c1856 = arith.constant 1856 : index
    %156 = vector.load %arg18[%c0_79, %c1856] : memref<1x4096xf32, #tpu.memory_space<vmem>>, vector<1x64xf32>
    tpu.vector_store %arg18[%c0_79, %c1856], %155 {strides = array<i32>} : memref<1x4096xf32, #tpu.memory_space<vmem>>, vector<1x64xf32>,
    %157 = vector.extract_strided_slice %96 {offsets = [30, 0], sizes = [1, 64], strides = [1, 1]} : vector<64x64xf32> to vector<1x64xf32>
    %c0_80 = arith.constant 0 : index
    %c1920 = arith.constant 1920 : index
    %158 = vector.load %arg18[%c0_80, %c1920] : memref<1x4096xf32, #tpu.memory_space<vmem>>, vector<1x64xf32>
    tpu.vector_store %arg18[%c0_80, %c1920], %157 {strides = array<i32>} : memref<1x4096xf32, #tpu.memory_space<vmem>>, vector<1x64xf32>,
    %159 = vector.extract_strided_slice %96 {offsets = [31, 0], sizes = [1, 64], strides = [1, 1]} : vector<64x64xf32> to vector<1x64xf32>
    %c0_81 = arith.constant 0 : index
    %c1984 = arith.constant 1984 : index
    %160 = vector.load %arg18[%c0_81, %c1984] : memref<1x4096xf32, #tpu.memory_space<vmem>>, vector<1x64xf32>
    tpu.vector_store %arg18[%c0_81, %c1984], %159 {strides = array<i32>} : memref<1x4096xf32, #tpu.memory_space<vmem>>, vector<1x64xf32>,
    %161 = vector.extract_strided_slice %96 {offsets = [32, 0], sizes = [1, 64], strides = [1, 1]} : vector<64x64xf32> to vector<1x64xf32>
    %c0_82 = arith.constant 0 : index
    %c2048 = arith.constant 2048 : index
    %162 = vector.load %arg18[%c0_82, %c2048] : memref<1x4096xf32, #tpu.memory_space<vmem>>, vector<1x64xf32>
    tpu.vector_store %arg18[%c0_82, %c2048], %161 {strides = array<i32>} : memref<1x4096xf32, #tpu.memory_space<vmem>>, vector<1x64xf32>,
    %163 = vector.extract_strided_slice %96 {offsets = [33, 0], sizes = [1, 64], strides = [1, 1]} : vector<64x64xf32> to vector<1x64xf32>
    %c0_83 = arith.constant 0 : index
    %c2112 = arith.constant 2112 : index
    %164 = vector.load %arg18[%c0_83, %c2112] : memref<1x4096xf32, #tpu.memory_space<vmem>>, vector<1x64xf32>
    tpu.vector_store %arg18[%c0_83, %c2112], %163 {strides = array<i32>} : memref<1x4096xf32, #tpu.memory_space<vmem>>, vector<1x64xf32>,
    %165 = vector.extract_strided_slice %96 {offsets = [34, 0], sizes = [1, 64], strides = [1, 1]} : vector<64x64xf32> to vector<1x64xf32>
    %c0_84 = arith.constant 0 : index
    %c2176 = arith.constant 2176 : index
    %166 = vector.load %arg18[%c0_84, %c2176] : memref<1x4096xf32, #tpu.memory_space<vmem>>, vector<1x64xf32>
    tpu.vector_store %arg18[%c0_84, %c2176], %165 {strides = array<i32>} : memref<1x4096xf32, #tpu.memory_space<vmem>>, vector<1x64xf32>,
    %167 = vector.extract_strided_slice %96 {offsets = [35, 0], sizes = [1, 64], strides = [1, 1]} : vector<64x64xf32> to vector<1x64xf32>
    %c0_85 = arith.constant 0 : index
    %c2240 = arith.constant 2240 : index
    %168 = vector.load %arg18[%c0_85, %c2240] : memref<1x4096xf32, #tpu.memory_space<vmem>>, vector<1x64xf32>
    tpu.vector_store %arg18[%c0_85, %c2240], %167 {strides = array<i32>} : memref<1x4096xf32, #tpu.memory_space<vmem>>, vector<1x64xf32>,
    %169 = vector.extract_strided_slice %96 {offsets = [36, 0], sizes = [1, 64], strides = [1, 1]} : vector<64x64xf32> to vector<1x64xf32>
    %c0_86 = arith.constant 0 : index
    %c2304 = arith.constant 2304 : index
    %170 = vector.load %arg18[%c0_86, %c2304] : memref<1x4096xf32, #tpu.memory_space<vmem>>, vector<1x64xf32>
    tpu.vector_store %arg18[%c0_86, %c2304], %169 {strides = array<i32>} : memref<1x4096xf32, #tpu.memory_space<vmem>>, vector<1x64xf32>,
    %171 = vector.extract_strided_slice %96 {offsets = [37, 0], sizes = [1, 64], strides = [1, 1]} : vector<64x64xf32> to vector<1x64xf32>
    %c0_87 = arith.constant 0 : index
    %c2368 = arith.constant 2368 : index
    %172 = vector.load %arg18[%c0_87, %c2368] : memref<1x4096xf32, #tpu.memory_space<vmem>>, vector<1x64xf32>
    tpu.vector_store %arg18[%c0_87, %c2368], %171 {strides = array<i32>} : memref<1x4096xf32, #tpu.memory_space<vmem>>, vector<1x64xf32>,
    %173 = vector.extract_strided_slice %96 {offsets = [38, 0], sizes = [1, 64], strides = [1, 1]} : vector<64x64xf32> to vector<1x64xf32>
    %c0_88 = arith.constant 0 : index
    %c2432 = arith.constant 2432 : index
    %174 = vector.load %arg18[%c0_88, %c2432] : memref<1x4096xf32, #tpu.memory_space<vmem>>, vector<1x64xf32>
    tpu.vector_store %arg18[%c0_88, %c2432], %173 {strides = array<i32>} : memref<1x4096xf32, #tpu.memory_space<vmem>>, vector<1x64xf32>,
    %175 = vector.extract_strided_slice %96 {offsets = [39, 0], sizes = [1, 64], strides = [1, 1]} : vector<64x64xf32> to vector<1x64xf32>
    %c0_89 = arith.constant 0 : index
    %c2496 = arith.constant 2496 : index
    %176 = vector.load %arg18[%c0_89, %c2496] : memref<1x4096xf32, #tpu.memory_space<vmem>>, vector<1x64xf32>
    tpu.vector_store %arg18[%c0_89, %c2496], %175 {strides = array<i32>} : memref<1x4096xf32, #tpu.memory_space<vmem>>, vector<1x64xf32>,
    %177 = vector.extract_strided_slice %96 {offsets = [40, 0], sizes = [1, 64], strides = [1, 1]} : vector<64x64xf32> to vector<1x64xf32>
    %c0_90 = arith.constant 0 : index
    %c2560 = arith.constant 2560 : index
    %178 = vector.load %arg18[%c0_90, %c2560] : memref<1x4096xf32, #tpu.memory_space<vmem>>, vector<1x64xf32>
    tpu.vector_store %arg18[%c0_90, %c2560], %177 {strides = array<i32>} : memref<1x4096xf32, #tpu.memory_space<vmem>>, vector<1x64xf32>,
    %179 = vector.extract_strided_slice %96 {offsets = [41, 0], sizes = [1, 64], strides = [1, 1]} : vector<64x64xf32> to vector<1x64xf32>
    %c0_91 = arith.constant 0 : index
    %c2624 = arith.constant 2624 : index
    %180 = vector.load %arg18[%c0_91, %c2624] : memref<1x4096xf32, #tpu.memory_space<vmem>>, vector<1x64xf32>
    tpu.vector_store %arg18[%c0_91, %c2624], %179 {strides = array<i32>} : memref<1x4096xf32, #tpu.memory_space<vmem>>, vector<1x64xf32>,
    %181 = vector.extract_strided_slice %96 {offsets = [42, 0], sizes = [1, 64], strides = [1, 1]} : vector<64x64xf32> to vector<1x64xf32>
    %c0_92 = arith.constant 0 : index
    %c2688 = arith.constant 2688 : index
    %182 = vector.load %arg18[%c0_92, %c2688] : memref<1x4096xf32, #tpu.memory_space<vmem>>, vector<1x64xf32>
    tpu.vector_store %arg18[%c0_92, %c2688], %181 {strides = array<i32>} : memref<1x4096xf32, #tpu.memory_space<vmem>>, vector<1x64xf32>,
    %183 = vector.extract_strided_slice %96 {offsets = [43, 0], sizes = [1, 64], strides = [1, 1]} : vector<64x64xf32> to vector<1x64xf32>
    %c0_93 = arith.constant 0 : index
    %c2752 = arith.constant 2752 : index
    %184 = vector.load %arg18[%c0_93, %c2752] : memref<1x4096xf32, #tpu.memory_space<vmem>>, vector<1x64xf32>
    tpu.vector_store %arg18[%c0_93, %c2752], %183 {strides = array<i32>} : memref<1x4096xf32, #tpu.memory_space<vmem>>, vector<1x64xf32>,
    %185 = vector.extract_strided_slice %96 {offsets = [44, 0], sizes = [1, 64], strides = [1, 1]} : vector<64x64xf32> to vector<1x64xf32>
    %c0_94 = arith.constant 0 : index
    %c2816 = arith.constant 2816 : index
    %186 = vector.load %arg18[%c0_94, %c2816] : memref<1x4096xf32, #tpu.memory_space<vmem>>, vector<1x64xf32>
    tpu.vector_store %arg18[%c0_94, %c2816], %185 {strides = array<i32>} : memref<1x4096xf32, #tpu.memory_space<vmem>>, vector<1x64xf32>,
    %187 = vector.extract_strided_slice %96 {offsets = [45, 0], sizes = [1, 64], strides = [1, 1]} : vector<64x64xf32> to vector<1x64xf32>
    %c0_95 = arith.constant 0 : index
    %c2880 = arith.constant 2880 : index
    %188 = vector.load %arg18[%c0_95, %c2880] : memref<1x4096xf32, #tpu.memory_space<vmem>>, vector<1x64xf32>
    tpu.vector_store %arg18[%c0_95, %c2880], %187 {strides = array<i32>} : memref<1x4096xf32, #tpu.memory_space<vmem>>, vector<1x64xf32>,
    %189 = vector.extract_strided_slice %96 {offsets = [46, 0], sizes = [1, 64], strides = [1, 1]} : vector<64x64xf32> to vector<1x64xf32>
    %c0_96 = arith.constant 0 : index
    %c2944 = arith.constant 2944 : index
    %190 = vector.load %arg18[%c0_96, %c2944] : memref<1x4096xf32, #tpu.memory_space<vmem>>, vector<1x64xf32>
    tpu.vector_store %arg18[%c0_96, %c2944], %189 {strides = array<i32>} : memref<1x4096xf32, #tpu.memory_space<vmem>>, vector<1x64xf32>,
    %191 = vector.extract_strided_slice %96 {offsets = [47, 0], sizes = [1, 64], strides = [1, 1]} : vector<64x64xf32> to vector<1x64xf32>
    %c0_97 = arith.constant 0 : index
    %c3008 = arith.constant 3008 : index
    %192 = vector.load %arg18[%c0_97, %c3008] : memref<1x4096xf32, #tpu.memory_space<vmem>>, vector<1x64xf32>
    tpu.vector_store %arg18[%c0_97, %c3008], %191 {strides = array<i32>} : memref<1x4096xf32, #tpu.memory_space<vmem>>, vector<1x64xf32>,
    %193 = vector.extract_strided_slice %96 {offsets = [48, 0], sizes = [1, 64], strides = [1, 1]} : vector<64x64xf32> to vector<1x64xf32>
    %c0_98 = arith.constant 0 : index
    %c3072 = arith.constant 3072 : index
    %194 = vector.load %arg18[%c0_98, %c3072] : memref<1x4096xf32, #tpu.memory_space<vmem>>, vector<1x64xf32>
    tpu.vector_store %arg18[%c0_98, %c3072], %193 {strides = array<i32>} : memref<1x4096xf32, #tpu.memory_space<vmem>>, vector<1x64xf32>,
    %195 = vector.extract_strided_slice %96 {offsets = [49, 0], sizes = [1, 64], strides = [1, 1]} : vector<64x64xf32> to vector<1x64xf32>
    %c0_99 = arith.constant 0 : index
    %c3136 = arith.constant 3136 : index
    %196 = vector.load %arg18[%c0_99, %c3136] : memref<1x4096xf32, #tpu.memory_space<vmem>>, vector<1x64xf32>
    tpu.vector_store %arg18[%c0_99, %c3136], %195 {strides = array<i32>} : memref<1x4096xf32, #tpu.memory_space<vmem>>, vector<1x64xf32>,
    %197 = vector.extract_strided_slice %96 {offsets = [50, 0], sizes = [1, 64], strides = [1, 1]} : vector<64x64xf32> to vector<1x64xf32>
    %c0_100 = arith.constant 0 : index
    %c3200 = arith.constant 3200 : index
    %198 = vector.load %arg18[%c0_100, %c3200] : memref<1x4096xf32, #tpu.memory_space<vmem>>, vector<1x64xf32>
    tpu.vector_store %arg18[%c0_100, %c3200], %197 {strides = array<i32>} : memref<1x4096xf32, #tpu.memory_space<vmem>>, vector<1x64xf32>,
    %199 = vector.extract_strided_slice %96 {offsets = [51, 0], sizes = [1, 64], strides = [1, 1]} : vector<64x64xf32> to vector<1x64xf32>
    %c0_101 = arith.constant 0 : index
    %c3264 = arith.constant 3264 : index
    %200 = vector.load %arg18[%c0_101, %c3264] : memref<1x4096xf32, #tpu.memory_space<vmem>>, vector<1x64xf32>
    tpu.vector_store %arg18[%c0_101, %c3264], %199 {strides = array<i32>} : memref<1x4096xf32, #tpu.memory_space<vmem>>, vector<1x64xf32>,
    %201 = vector.extract_strided_slice %96 {offsets = [52, 0], sizes = [1, 64], strides = [1, 1]} : vector<64x64xf32> to vector<1x64xf32>
    %c0_102 = arith.constant 0 : index
    %c3328 = arith.constant 3328 : index
    %202 = vector.load %arg18[%c0_102, %c3328] : memref<1x4096xf32, #tpu.memory_space<vmem>>, vector<1x64xf32>
    tpu.vector_store %arg18[%c0_102, %c3328], %201 {strides = array<i32>} : memref<1x4096xf32, #tpu.memory_space<vmem>>, vector<1x64xf32>,
    %203 = vector.extract_strided_slice %96 {offsets = [53, 0], sizes = [1, 64], strides = [1, 1]} : vector<64x64xf32> to vector<1x64xf32>
    %c0_103 = arith.constant 0 : index
    %c3392 = arith.constant 3392 : index
    %204 = vector.load %arg18[%c0_103, %c3392] : memref<1x4096xf32, #tpu.memory_space<vmem>>, vector<1x64xf32>
    tpu.vector_store %arg18[%c0_103, %c3392], %203 {strides = array<i32>} : memref<1x4096xf32, #tpu.memory_space<vmem>>, vector<1x64xf32>,
    %205 = vector.extract_strided_slice %96 {offsets = [54, 0], sizes = [1, 64], strides = [1, 1]} : vector<64x64xf32> to vector<1x64xf32>
    %c0_104 = arith.constant 0 : index
    %c3456 = arith.constant 3456 : index
    %206 = vector.load %arg18[%c0_104, %c3456] : memref<1x4096xf32, #tpu.memory_space<vmem>>, vector<1x64xf32>
    tpu.vector_store %arg18[%c0_104, %c3456], %205 {strides = array<i32>} : memref<1x4096xf32, #tpu.memory_space<vmem>>, vector<1x64xf32>,
    %207 = vector.extract_strided_slice %96 {offsets = [55, 0], sizes = [1, 64], strides = [1, 1]} : vector<64x64xf32> to vector<1x64xf32>
    %c0_105 = arith.constant 0 : index
    %c3520 = arith.constant 3520 : index
    %208 = vector.load %arg18[%c0_105, %c3520] : memref<1x4096xf32, #tpu.memory_space<vmem>>, vector<1x64xf32>
    tpu.vector_store %arg18[%c0_105, %c3520], %207 {strides = array<i32>} : memref<1x4096xf32, #tpu.memory_space<vmem>>, vector<1x64xf32>,
    %209 = vector.extract_strided_slice %96 {offsets = [56, 0], sizes = [1, 64], strides = [1, 1]} : vector<64x64xf32> to vector<1x64xf32>
    %c0_106 = arith.constant 0 : index
    %c3584 = arith.constant 3584 : index
    %210 = vector.load %arg18[%c0_106, %c3584] : memref<1x4096xf32, #tpu.memory_space<vmem>>, vector<1x64xf32>
    tpu.vector_store %arg18[%c0_106, %c3584], %209 {strides = array<i32>} : memref<1x4096xf32, #tpu.memory_space<vmem>>, vector<1x64xf32>,
    %211 = vector.extract_strided_slice %96 {offsets = [57, 0], sizes = [1, 64], strides = [1, 1]} : vector<64x64xf32> to vector<1x64xf32>
    %c0_107 = arith.constant 0 : index
    %c3648 = arith.constant 3648 : index
    %212 = vector.load %arg18[%c0_107, %c3648] : memref<1x4096xf32, #tpu.memory_space<vmem>>, vector<1x64xf32>
    tpu.vector_store %arg18[%c0_107, %c3648], %211 {strides = array<i32>} : memref<1x4096xf32, #tpu.memory_space<vmem>>, vector<1x64xf32>,
    %213 = vector.extract_strided_slice %96 {offsets = [58, 0], sizes = [1, 64], strides = [1, 1]} : vector<64x64xf32> to vector<1x64xf32>
    %c0_108 = arith.constant 0 : index
    %c3712 = arith.constant 3712 : index
    %214 = vector.load %arg18[%c0_108, %c3712] : memref<1x4096xf32, #tpu.memory_space<vmem>>, vector<1x64xf32>
    tpu.vector_store %arg18[%c0_108, %c3712], %213 {strides = array<i32>} : memref<1x4096xf32, #tpu.memory_space<vmem>>, vector<1x64xf32>,
    %215 = vector.extract_strided_slice %96 {offsets = [59, 0], sizes = [1, 64], strides = [1, 1]} : vector<64x64xf32> to vector<1x64xf32>
    %c0_109 = arith.constant 0 : index
    %c3776 = arith.constant 3776 : index
    %216 = vector.load %arg18[%c0_109, %c3776] : memref<1x4096xf32, #tpu.memory_space<vmem>>, vector<1x64xf32>
    tpu.vector_store %arg18[%c0_109, %c3776], %215 {strides = array<i32>} : memref<1x4096xf32, #tpu.memory_space<vmem>>, vector<1x64xf32>,
    %217 = vector.extract_strided_slice %96 {offsets = [60, 0], sizes = [1, 64], strides = [1, 1]} : vector<64x64xf32> to vector<1x64xf32>
    %c0_110 = arith.constant 0 : index
    %c3840 = arith.constant 3840 : index
    %218 = vector.load %arg18[%c0_110, %c3840] : memref<1x4096xf32, #tpu.memory_space<vmem>>, vector<1x64xf32>
    tpu.vector_store %arg18[%c0_110, %c3840], %217 {strides = array<i32>} : memref<1x4096xf32, #tpu.memory_space<vmem>>, vector<1x64xf32>,
    %219 = vector.extract_strided_slice %96 {offsets = [61, 0], sizes = [1, 64], strides = [1, 1]} : vector<64x64xf32> to vector<1x64xf32>
    %c0_111 = arith.constant 0 : index
    %c3904 = arith.constant 3904 : index
    %220 = vector.load %arg18[%c0_111, %c3904] : memref<1x4096xf32, #tpu.memory_space<vmem>>, vector<1x64xf32>
    tpu.vector_store %arg18[%c0_111, %c3904], %219 {strides = array<i32>} : memref<1x4096xf32, #tpu.memory_space<vmem>>, vector<1x64xf32>,
    %221 = vector.extract_strided_slice %96 {offsets = [62, 0], sizes = [1, 64], strides = [1, 1]} : vector<64x64xf32> to vector<1x64xf32>
    %c0_112 = arith.constant 0 : index
    %c3968 = arith.constant 3968 : index
    %222 = vector.load %arg18[%c0_112, %c3968] : memref<1x4096xf32, #tpu.memory_space<vmem>>, vector<1x64xf32>
    tpu.vector_store %arg18[%c0_112, %c3968], %221 {strides = array<i32>} : memref<1x4096xf32, #tpu.memory_space<vmem>>, vector<1x64xf32>,
    %223 = vector.extract_strided_slice %96 {offsets = [63, 0], sizes = [1, 64], strides = [1, 1]} : vector<64x64xf32> to vector<1x64xf32>
    %c0_113 = arith.constant 0 : index
    %c4032 = arith.constant 4032 : index
    %224 = vector.load %arg18[%c0_113, %c4032] : memref<1x4096xf32, #tpu.memory_space<vmem>>, vector<1x64xf32>
    tpu.vector_store %arg18[%c0_113, %c4032], %223 {strides = array<i32>} : memref<1x4096xf32, #tpu.memory_space<vmem>>, vector<1x64xf32>,
    %c0_114 = arith.constant 0 : index
    %c0_115 = arith.constant 0 : index
    %225 = vector.load %arg18[%c0_114, %c0_115] : memref<1x4096xf32, #tpu.memory_space<vmem>>, vector<1x4096xf32>
    %226 = arith.truncf %225 : vector<1x4096xf32> to vector<1x4096xbf16>
    %c0_116 = arith.constant 0 : index
    %c0_117 = arith.constant 0 : index
    %227 = vector.load %arg9[%c0_116, %c0_117] : memref<4096x128xbf16, #tpu.memory_space<vmem>>, vector<4096x128xbf16>
    %cst_118 = arith.constant dense<0.000000e+00> : vector<1x128xf32>
    %228 = tpu.matmul %226, %227, %cst_118 {dimension_numbers = #tpu.dot_dimension_numbers<[1], [0], [0], [1], [0, 0, 1, 1], [], []>} : vector<1x4096xbf16>, vector<4096x128xbf16>, vector<1x128xf32> -> vector<1x128xf32>
    %c0_119 = arith.constant 0 : index
    %c0_120 = arith.constant 0 : index
    %c0_121 = arith.constant 0 : index
    %229 = vector.load %arg2[%c0_119, %c0_120, %c0_121] : memref<1x1x8xf32, #tpu.memory_space<vmem>>, vector<1x1x8xf32>
    %230 = vector.shape_cast %229 : vector<1x1x8xf32> to vector<1x8xf32>
    %231 = arith.truncf %230 : vector<1x8xf32> to vector<1x8xbf16>
    %c0_122 = arith.constant 0 : index
    %c0_123 = arith.constant 0 : index
    %232 = vector.load %arg10[%c0_122, %c0_123] : memref<8x128xbf16, #tpu.memory_space<vmem>>, vector<8x128xbf16>
    %cst_124 = arith.constant dense<0.000000e+00> : vector<1x128xf32>
    %233 = tpu.matmul %231, %232, %cst_124 {dimension_numbers = #tpu.dot_dimension_numbers<[1], [0], [0], [1], [0, 0, 1, 1], [], []>} : vector<1x8xbf16>, vector<8x128xbf16>, vector<1x128xf32> -> vector<1x128xf32>
    %234 = arith.addf %228, %233 : vector<1x128xf32>
    %c0_125 = arith.constant 0 : index
    %c0_126 = arith.constant 0 : index
    %235 = vector.load %arg11[%c0_125, %c0_126] : memref<1x128xf32, #tpu.memory_space<vmem>>, vector<1x128xf32>
    %236 = arith.addf %234, %235 : vector<1x128xf32>
    %cst_127 = arith.constant 0.000000e+00 : f32
    %237 = vector.broadcast %cst_127 : f32 to vector<1x128xf32>
    %238 = arith.maximumf %236, %237 : vector<1x128xf32>
    %239 = arith.truncf %238 : vector<1x128xf32> to vector<1x128xbf16>
    %c0_128 = arith.constant 0 : index
    %c0_129 = arith.constant 0 : index
    %240 = vector.load %arg12[%c0_128, %c0_129] : memref<128x128xbf16, #tpu.memory_space<vmem>>, vector<128x128xbf16>
    %cst_130 = arith.constant dense<0.000000e+00> : vector<1x128xf32>
    %241 = tpu.matmul %239, %240, %cst_130 {dimension_numbers = #tpu.dot_dimension_numbers<[1], [0], [0], [1], [0, 0, 1, 1], [], []>} : vector<1x128xbf16>, vector<128x128xbf16>, vector<1x128xf32> -> vector<1x128xf32>
    %c0_131 = arith.constant 0 : index
    %c0_132 = arith.constant 0 : index
    %242 = vector.load %arg13[%c0_131, %c0_132] : memref<1x128xf32, #tpu.memory_space<vmem>>, vector<1x128xf32>
    %243 = arith.addf %241, %242 : vector<1x128xf32>
    %c0_133 = arith.constant 0 : index
    %c0_134 = arith.constant 0 : index
    %c0_135 = arith.constant 0 : index
    %244 = vector.load %arg14[%c0_133, %c0_134, %c0_135] : memref<1x1x128xf32, #tpu.memory_space<vmem>>, vector<1x1x128xf32>
    %245 = vector.shape_cast %244 : vector<1x1x128xf32> to vector<1x128xf32>
    %246 = vector.shape_cast %243 : vector<1x128xf32> to vector<1x1x128xf32>
    tpu.vector_store %arg14[%c0_133, %c0_134, %c0_135], %246 {strides = array<i32>} : memref<1x1x128xf32, #tpu.memory_space<vmem>>, vector<1x1x128xf32>,
    return
  }
  func.func @transform_0(%arg0: i32) -> (i32, i32, i32, i32) {
    %c0_i32 = arith.constant 0 : i32
    %c0_i32_0 = arith.constant 0 : i32
    %c0_i32_1 = arith.constant 0 : i32
    %c0_i32_2 = arith.constant 0 : i32
    return %arg0, %c0_i32, %c0_i32_0, %c0_i32_1 : i32, i32, i32, i32
  }
  func.func @transform_1(%arg0: i32) -> (i32, i32, i32) {
    %c0_i32 = arith.constant 0 : i32
    %c0_i32_0 = arith.constant 0 : i32
    %c0_i32_1 = arith.constant 0 : i32
    return %arg0, %c0_i32, %c0_i32_0 : i32, i32, i32
  }
  func.func @transform_2(%arg0: i32) -> (i32, i32) {
    %c0_i32 = arith.constant 0 : i32
    %c0_i32_0 = arith.constant 0 : i32
    %c0_i32_1 = arith.constant 0 : i32
    return %c0_i32, %c0_i32_0 : i32, i32
  }
  func.func @transform_3(%arg0: i32) -> (i32, i32) {
    %c0_i32 = arith.constant 0 : i32
    %c0_i32_0 = arith.constant 0 : i32
    %c0_i32_1 = arith.constant 0 : i32
    return %c0_i32, %c0_i32_0 : i32, i32
  }
  func.func @transform_4(%arg0: i32) -> (i32, i32) {
    %c0_i32 = arith.constant 0 : i32
    %c0_i32_0 = arith.constant 0 : i32
    %c0_i32_1 = arith.constant 0 : i32
    return %c0_i32, %c0_i32_0 : i32, i32
  }
  func.func @transform_5(%arg0: i32) -> (i32, i32) {
    %c0_i32 = arith.constant 0 : i32
    %c0_i32_0 = arith.constant 0 : i32
    %c0_i32_1 = arith.constant 0 : i32
    return %c0_i32, %c0_i32_0 : i32, i32
  }
  func.func @transform_6(%arg0: i32) -> (i32, i32) {
    %c0_i32 = arith.constant 0 : i32
    %c0_i32_0 = arith.constant 0 : i32
    %c0_i32_1 = arith.constant 0 : i32
    return %c0_i32, %c0_i32_0 : i32, i32
  }
  func.func @transform_7(%arg0: i32) -> (i32, i32) {
    %c0_i32 = arith.constant 0 : i32
    %c0_i32_0 = arith.constant 0 : i32
    %c0_i32_1 = arith.constant 0 : i32
    return %c0_i32, %c0_i32_0 : i32, i32
  }
  func.func @transform_8(%arg0: i32) -> (i32, i32) {
    %c0_i32 = arith.constant 0 : i32
    %c0_i32_0 = arith.constant 0 : i32
    %c0_i32_1 = arith.constant 0 : i32
    return %c0_i32, %c0_i32_0 : i32, i32
  }
  func.func @transform_9(%arg0: i32) -> (i32, i32) {
    %c0_i32 = arith.constant 0 : i32
    %c0_i32_0 = arith.constant 0 : i32
    %c0_i32_1 = arith.constant 0 : i32
    return %c0_i32, %c0_i32_0 : i32, i32
  }
  func.func @transform_10(%arg0: i32) -> (i32, i32) {
    %c0_i32 = arith.constant 0 : i32
    %c0_i32_0 = arith.constant 0 : i32
    %c0_i32_1 = arith.constant 0 : i32
    return %c0_i32, %c0_i32_0 : i32, i32
  }
  func.func @transform_11(%arg0: i32) -> (i32, i32) {
    %c0_i32 = arith.constant 0 : i32
    %c0_i32_0 = arith.constant 0 : i32
    %c0_i32_1 = arith.constant 0 : i32
    return %c0_i32, %c0_i32_0 : i32, i32
  }
  func.func @transform_12(%arg0: i32) -> (i32, i32) {
    %c0_i32 = arith.constant 0 : i32
    %c0_i32_0 = arith.constant 0 : i32
    %c0_i32_1 = arith.constant 0 : i32
    return %c0_i32, %c0_i32_0 : i32, i32
  }
  func.func @transform_13(%arg0: i32) -> (i32, i32, i32) {
    %c0_i32 = arith.constant 0 : i32
    %c0_i32_0 = arith.constant 0 : i32
    %c0_i32_1 = arith.constant 0 : i32
    return %arg0, %c0_i32, %c0_i32_0 : i32, i32, i32
  }
}

</mosaic_0001>

<bundles_post_ra>
// kernel: qnetwork_forward.1
= control target key start
LH: loop header
LB: loop body
LE: loop exit
PB: predicated region body
PF: predicated region fallthrough
CT: control target
= control target key end

     0   :  { %18 = vsyncpa [#allocation7], 0  ;;  %s9599_s0 = inlined_call_operand.vmem [shape: f32[2,8,8,4], index: 0, kind: input, shape index: {}]   ;;  %s9600_s1 = inlined_call_operand.vmem [shape: f32[2,1,8], index: 1, kind: input, shape index: {}]   ;;  %s9601_s2 = inlined_call_operand.vmem [shape: bf16[36,32], index: 2, kind: input, shape index: {}]   ;;  %s9602_s3 = inlined_call_operand.vmem [shape: f32[1,32], index: 3, kind: input, shape index: {}]   ;;  %s9603_s4 = inlined_call_operand.vmem [shape: bf16[288,64], index: 4, kind: input, shape index: {}]   ;;  %s9604_s5 = inlined_call_operand.vmem [shape: f32[1,64], index: 5, kind: input, shape index: {}]   ;;  %s9605_s6 = inlined_call_operand.vmem [shape: bf16[576,64], index: 6, kind: input, shape index: {}]   ;;  %s9606_s7 = inlined_call_operand.vmem [shape: f32[1,64], index: 7, kind: input, shape index: {}]   ;;  %s9607_s8 = inlined_call_operand.hbm [shape: bf16[4096,128], index: 8, kind: input, shape index: {}]   ;;  %s9608_s9 = inlined_call_operand.vmem [shape: bf16[8,128], index: 9, kind: input, shape index: {}]   ;;  %s9609_s10 = inlined_call_operand.vmem [shape: f32[1,128], index: 10, kind: input, shape index: {}]   ;;  %s9610_s11 = inlined_call_operand.vmem [shape: bf16[128,128], index: 11, kind: input, shape index: {}]   ;;  %s9611_s12 = inlined_call_operand.vmem [shape: f32[1,128], index: 12, kind: input, shape index: {}]   ;;  %s9612_s13 = inlined_call_operand.hbm [shape: f32[2,1,128], index: 13, kind: output, shape index: {}]  }
   0x1   :  { %19 = vsyncpa [#allocation8], 0 }
   0x2   :  { %21 = vsyncpa [#allocation8 + $0x1], 0  ;;  %s7997_s25 = smov 0   ;;  %s7999_s26 = smov 0  }
   0x3   :  { %s8001_s27 = smov 0   ;;  %s8003_s28 = smov 0  }
   0x4 LB: > { %9623 = sst [smem:[#allocation12_spill]] %s7904_s27  ;;  %s8018_s29 = sadd.s32 4294967295, %s7908_s28   ;;  %s7908_s28 = sphi %s8003_s28, %s9641_s28   ;;  %s7904_s27 = sphi %s8001_s27, %s9646_s27   ;;  %s7900_s26 = sphi %s7999_s26, %s9645_s26   ;;  %s7896_s25 = sphi %s7997_s25, %s9644_s25  }
   0x5   : > { %s6153_s30 = sadd.s32 4294967294, %s7908_s28   ;;  %s8022_s14 = sadd.s32 1, %s7908_s28  }
   0x6   : > { %9624 = sst [smem:[#allocation13_spill]] %s8022_s14  ;;  %s317_s15 = sadd.s32 1, %s7904_s27 }
   0x7   : > { %s314_s16 = ssub.s32 %s7908_s28, %s8022_s14  ;;  %p327_p0 = scmp.ne.s32.totalorder %s7904_s27, %s7900_s26 }
   0x8   : > { %p315_p1 = scmp.eq.s32.totalorder %s314_s16, 0  ;;  %p328_p2 = scmp.eq.s32.totalorder %s8018_s29, 1 }
   0x9   : > { %p333_p3 = scmp.ne.s32.totalorder %s7900_s26, %s7896_s25  ;;  %p334_p4 = scmp.eq.s32.totalorder %s6153_s30, 1 }
   0xa   : > { %s8033_s17 = scalar_select %p315_p1, %s7904_s27, %s317_s15  }
   0xb   : > { %p8035_p5 = por %p328_p2, %p327_p0  ;;  %p8039_p6 = por %p334_p4, %p333_p3 }
   0xc   : > { %9625 = sst [smem:[#allocation14_spill]] %s8033_s17  ;;  %p6154_p7 = scmp.ge.s32.totalorder %s7908_s28, 1 }
   0xd   : > { %s9626_s18 = scalar_select %p8035_p5, 1, 0 }
   0xe   : > { %s9627_s19 = scalar_select %p8039_p6, 1, 0 }
   0xf   : > { %p341_p8 = scmp.lt.s32.totalorder %s7908_s28, 3  ;;  %p9616_p9 = scmp.eq.s32.totalorder %s8018_s29, 0 }
  0x10   : > { %s7910_s21 = smov [#allocation6]   ;;  %s7814_s15 = scalar_lea.hbm %s9607_s8, 32768 }
  0x11   : > { %p8046_p10 = pnand %p6154_p7, %p341_p8  ;;  %s371_s22 = sshll.u32 %s7910_s21, 4  ;;  %s372_s22 = int_to_ptr.vmem [resolvable:$true] %s371_s22 }
  0x12   : > { %p7815_p13 = scmp.ne.s32.totalorder %s9607_s8, %s7814_s15  ;;  %p7821_p3 = scmp.lt.u32.totalorder %s7814_s15, %s9607_s8 }
  0x13   : > { %s9628_s20 = scalar_select %p8046_p10, 1, 0 }
  0x14   : > { %p7081_p11 = pneg %p8046_p10 }
  0x16   : > { %p8054_p12 = pnand %p9616_p9, %p7081_p11 }
  0x18   : > { %p7816_p0 = pneg %p8054_p12 }
  0x1a   : > { %p7817_p1 = pnand %p7816_p0, %p7815_p13 }
  0x1c   : > { %p7818_p2 = pneg %p7817_p1 }
  0x1e   : > { %p7823_p4 = pnand %p7821_p3, %p7818_p2 }
  0x20   : > { %7826 = shalt.err (!%p7823_p4)
}
  0x21   : > { %s7827_s14 = scalar_lea.vmem %s372_s22, 32768  ;;  %p7835_p9 = scmp.lt.s32.totalorder %s372_s22, %s372_s22 }
  0x22   : > { %p7828_p7 = scmp.ne.s32.totalorder %s372_s22, %s7827_s14  ;;  %p7836_p6 = scmp.lt.s32.totalorder %s7827_s14, %s7827_s14 }
  0x24   : > { %p7830_p8 = pnand %p7828_p7, %p7816_p0  ;;  %p7837_p5 = por %p7836_p6, %p7835_p9 }
  0x26   : > { %p7831_p11 = pneg %p7830_p8 }
  0x28   : > { %p7838_p10 = pnand %p7837_p5, %p7831_p11 }
  0x2a   : > { %7841 = shalt.err (!%p7838_p10)
}
  0x2b   : > { %s7911_s17 = smov 64   ;;  %s7912_s24 = smov 4  }
  0x2c   : > { %7084 = dma.hbm_to_vmem [thread:$0]  (!%p8054_p12), %s9607_s8, 32768, %s372_s22, [#allocation7], %s7911_s17, %s7911_s17, %s7912_s24  }
  0x2d   : > { %p9630_p13 = scmp.ne.s32.totalorder %s9628_s20, 0 }
  0x2e   : > { %p9631_p1 = scmp.eq.s32.totalorder (!%p9630_p13), %s8018_s29, 0 }
  0x2f   : > { %413 = sbr.rel (%p9630_p13) target bundleno = 2041 (0x7f9), region = 72 }
  0x36   : > { %7887 = dma.done.wait (%p9631_p1), [#allocation7], 32768   ;;  %p9632_p0 = pmov %p9631_p1 }
  0x37   : > { %p459_p5 = scmp.lt.s32.totalorder %s8018_s29, 1  ;;  %vm468_vm0 = vcmask 31744   ;;  %vm470_vm1 = vcmask 25600   ;;  %v7913_v0 = vmov 0.0   ;;  %vm612_vm2 = vcmask 1045504   ;;  %s7914_s15 = smov 12  }
  0x38   : > { %7889 = vsyncadd (%p9632_p0), [#allocation7], 4294934528  ;;  %476 = vst.msk [vmem:[#allocation2 + $0x30] sm:$0xff] %vm468_vm0, %v7913_v0  ;;  %vm587_vm3 = vcmask 1046528   ;;  %s7915_s21 = smov 8   ;;  %s7916_s17 = smov 4  }
  0x39   : > { %477 = vst.msk [vmem:[#allocation2 + $0x38] sm:$0x3] %vm470_vm1, %v7913_v0  ;;  %479 = vst.msk [vmem:[#allocation2 + $0x48] sm:$0x3] %vm470_vm1, %v7913_v0  ;;  %s8124_s27 = scalar_select %p459_p5, %s8018_s29, 1  ;;  %vm490_vm4 = vcmask 261120  }
  0x3a   : > { %478 = vst.msk [vmem:[#allocation2 + $0x40] sm:$0xff] %vm468_vm0, %v7913_v0  ;;  %469 = vst.msk [vmem:[#allocation2] sm:$0xff] %vm468_vm0, %v7913_v0  ;;  %s7917_s16 = smov 16   ;;  %s7918_s22 = smov 20   ;;  %vm959_vm5 = vcmask 1041408   ;;  %vm492_vm6 = vcmask 254976  }
  0x3b   : > { %471 = vst.msk [vmem:[#allocation2 + $0x8] sm:$0x3] %vm470_vm1, %v7913_v0  ;;  %473 = vst.msk [vmem:[#allocation2 + $0x18] sm:$0x3] %vm470_vm1, %v7913_v0  ;;  %s6501_s14 = sshll.u32 %s8124_s27, 6  ;;  %s7919_s30 = smov 24  }
  0x3c   : > { %472 = vst.msk [vmem:[#allocation2 + $0x10] sm:$0xff] %vm468_vm0, %v7913_v0  ;;  %474 = vst.msk [vmem:[#allocation2 + $0x20] sm:$0xff] %vm468_vm0, %v7913_v0  ;;  %s463_s23 = scalar_lea.vmem %s9599_s0, %s6501_s14  ;;  %s7920_s14 = smov 28   ;;  %vm853_vm7 = vcmask 64512   ;;  %vm862_vm8 = vcmask 97280   ;;  %vm871_vm9 = vcmask 130048  }
  0x3d   : > { %475 = vst.msk [vmem:[#allocation2 + $0x28] sm:$0x3] %vm470_vm1, %v7913_v0  ;;  %481 = vst.msk [vmem:[#allocation2 + $0x58] sm:$0x3] %vm470_vm1, %v7913_v0  ;;  %v536_v1 = vld [vmem:[%s463_s23 + $0x10] sm:$0xff]  ;;  %v537_v2 = vld [vmem:[%s463_s23 + $0x18] sm:$0xff] }
  0x3e   : > { %480 = vst.msk [vmem:[#allocation2 + $0x50] sm:$0xff] %vm468_vm0, %v7913_v0  ;;  %482 = vst.msk [vmem:[#allocation2 + $0x60] sm:$0xff] %vm468_vm0, %v7913_v0  ;;  %v534_v3 = vld [vmem:[%s463_s23] sm:$0xff]  ;;  %v535_v4 = vld [vmem:[%s463_s23 + $0x8] sm:$0xff]  ;;  %s9619_s20 = smov 32   ;;  %vm880_vm10 = vcmask 162816  }
  0x3f   : > { %483 = vst.msk [vmem:[#allocation2 + $0x68] sm:$0x3] %vm470_vm1, %v7913_v0  ;;  %485 = vst.msk [vmem:[#allocation2 + $0x78] sm:$0x3] %vm470_vm1, %v7913_v0  ;;  %v538_v7 = vld [vmem:[%s463_s23 + $0x20] sm:$0xff]  ;;  %v539_v8 = vld [vmem:[%s463_s23 + $0x28] sm:$0xff] }
  0x40   : > { %484 = vst.msk [vmem:[#allocation2 + $0x70] sm:$0xff] %vm468_vm0, %v7913_v0  ;;  %486 = vst.msk [vmem:[#allocation2 + $0x80] sm:$0xff] %vm468_vm0, %v7913_v0  ;;  %v540_v9 = vld [vmem:[%s463_s23 + $0x30] sm:$0xff]  ;;  %v541_v10 = vld [vmem:[%s463_s23 + $0x38] sm:$0xff]  ;;  %vm889_vm11 = vcmask 195584   ;;  %vm898_vm12 = vcmask 228352   ;;  %s466_s23 = scalar_lea.vmem %s9600_s1, %s8124_s27 }
  0x41   : > { %487 = vst.msk [vmem:[#allocation2 + $0x88] sm:$0x3] %vm470_vm1, %v7913_v0  ;;  %489 = vst.msk [vmem:[#allocation2 + $0x98] sm:$0x3] %vm470_vm1, %v7913_v0  ;;  %v551_v5 = vld [vmem:[#allocation2] sm:$0xff]  ;;  %vm946_vm13 = vcmask 293888  }
  0x42   : > { %488 = vst.msk [vmem:[#allocation2 + $0x90] sm:$0xff] %vm468_vm0, %v7913_v0  ;;  %545 = vst.msk [vmem:[#allocation2 + $0x31] sm:$0xff] %vm468_vm0, %v536_v1  ;;  %v552_v6 = vld [vmem:[#allocation2 + $0x8] sm:$0x3]  ;;  %v613_v11 = vrot.slane %v551_v5, 2  ;;  %v588_v14 = vrot.slane %v551_v5, 1 }
  0x43   : > { %546 = vst.msk [vmem:[#allocation2 + $0x41] sm:$0xff] %vm468_vm0, %v537_v2  ;;  %543 = vst.msk [vmem:[#allocation2 + $0x11] sm:$0xff] %vm468_vm0, %v534_v3  ;;  %v614_v12 = vrot.slane %v552_v6, 2  ;;  %v589_v15 = vrot.slane %v552_v6, 1  ;;  %v7485_v2 = vld [vmem:[%s9601_s2] sm:$0xff]   ;;  %vm512_vm14 = vcmask 523264  }
  0x44   : > { %544 = vst.msk [vmem:[#allocation2 + $0x21] sm:$0xff] %vm468_vm0, %v535_v4  ;;  %547 = vst.msk [vmem:[#allocation2 + $0x51] sm:$0xff] %vm468_vm0, %v538_v7  ;;  %7006 = vmatprep.subr.bf16.mxu1 %v7485_v2  ;;  %vm1321_vm15 = vcmask 785408   ;;  %vm3734_vm1 = vcmask 1043456   ;;  %s6498_s24 = sshll.u32 %s8018_s29, 4  ;;  %p9639_p9 = scmp.ne.s32.totalorder %s9626_s18, 0 }
  0x45   : > { %548 = vst.msk [vmem:[#allocation2 + $0x61] sm:$0xff] %vm468_vm0, %v539_v8  ;;  %549 = vst.msk [vmem:[#allocation2 + $0x71] sm:$0xff] %vm468_vm0, %v540_v9  ;;  %v615_v19 = vsel %vm612_vm2, %v613_v11, %v614_v12  ;;  %v590_v29 = vsel %vm587_vm3, %v588_v14, %v589_v15  ;;  %7007 = vmatpush3.bf16.msra.mxu1 %v7485_v2  ;;  %v7486_v15 = vld [vmem:[%s9601_s2 + $0x8] sm:$0xff]  }
  0x46   : > { %550 = vst.msk [vmem:[#allocation2 + $0x81] sm:$0xff] %vm468_vm0, %v541_v10  ;;  %7008 = vmatprep.subr.bf16.mxu1 %v7486_v15 }
  0x47   : > { %491 = vst.msk [vmem:[#allocation3] sm:$0xff] %vm490_vm4, %v7913_v0  ;;  %494 = vst.msk [vmem:[#allocation3 + $0x10] sm:$0xff] %vm490_vm4, %v7913_v0 }
  0x48   : > { %v8173_v53 = vld [vmem:[#allocation2 + $0x98] sm:$0x3]  ;;  %496 = vst.msk [vmem:[#allocation3 + $0x20] sm:$0xff] %vm490_vm4, %v7913_v0  ;;  %498 = vst.msk [vmem:[#allocation3 + $0x30] sm:$0xff] %vm490_vm4, %v7913_v0 }
  0x49   : > { %v8138_v13 = vld [vmem:[#allocation2 + $0x90] sm:$0xff]  ;;  %v558_v32 = vld [vmem:[#allocation2 + $0x38] sm:$0x3]  ;;  %v648_v61 = vrot.slane %v8173_v53, 1  ;;  %v651_v1 = vrot.slane %v8173_v53, 2  ;;  %7009 = vmatpush3.bf16.msra.mxu1 %v7486_v15  ;;  %500 = vst.msk [vmem:[#allocation3 + $0x40] sm:$0xff] %vm490_vm4, %v7913_v0 }
  0x4a   : > { %v8140_v16 = vld [vmem:[#allocation2 + $0x30] sm:$0xff]  ;;  %v8142_v17 = vld [vmem:[#allocation2 + $0x40] sm:$0xff]  ;;  %v647_v20 = vrot.slane %v8138_v13, 1  ;;  %v554_v23 = vld [vmem:[#allocation2 + $0x18] sm:$0x3]  ;;  %v623_v35 = vrot.slane %v558_v32, 2 }
  0x4b   : > { %v553_v18 = vld [vmem:[#allocation2 + $0x10] sm:$0xff]  ;;  %v7145_v21 = vpack.i.bf16 %v8142_v17, %v8140_v16  ;;  %v8148_v22 = vld [vmem:[#allocation2 + $0x20] sm:$0xff]  ;;  %v622_v26 = vrot.slane %v8140_v16, 2  ;;  %v617_v28 = vrot.slane %v554_v23, 2  ;;  %v592_v30 = vrot.slane %v554_v23, 1  ;;  %502 = vst.msk [vmem:[#allocation3 + $0x50] sm:$0xff] %vm490_vm4, %v7913_v0 }
  0x4c   : > { %v616_v24 = vrot.slane %v553_v18, 2  ;;  %v591_v25 = vrot.slane %v553_v18, 1  ;;  %v7140_v27 = vpack.i.bf16 %v8148_v22, %v553_v18  ;;  %v556_v31 = vld [vmem:[#allocation2 + $0x28] sm:$0x3]  ;;  %v619_v33 = vrot.slane %v8148_v22, 2  ;;  %v8171_v52 = vld [vmem:[#allocation2 + $0x50] sm:$0xff] }
  0x4d   : > { %7146 = vrot.lane.b32.xlu1 %v7145_v21, %s7914_s15  ;;  %v620_v34 = vrot.slane %v556_v31, 2  ;;  %v594_v36 = vrot.slane %v8148_v22, 1  ;;  %v595_v39 = vrot.slane %v556_v31, 1  ;;  %v597_v40 = vrot.slane %v8140_v16, 1  ;;  %v560_v41 = vld [vmem:[#allocation2 + $0x48] sm:$0x3] }
  0x4e   : > { %7141 = vrot.lane.b32.xlu0 %v7140_v27, %s7914_s15  ;;  %v8158_v37 = vsel %vm612_vm2, %v616_v24, %v617_v28  ;;  %v593_v38 = vsel %vm587_vm3, %v591_v25, %v592_v30  ;;  %v624_v45 = vsel %vm612_vm2, %v622_v26, %v623_v35  ;;  %v598_v47 = vrot.slane %v558_v32, 1  ;;  %v8181_v59 = vld [vmem:[#allocation2 + $0x58] sm:$0x3]  ;;  %v8183_v60 = vld [vmem:[#allocation2 + $0x60] sm:$0xff]  ;;  %v8188_v63 = vld [vmem:[#allocation2 + $0x68] sm:$0x3] }
  0x4f   : > { %v7160_v42 = vpack.i.bf16 %v8158_v37, %v615_v19  ;;  %v7150_v43 = vpack.i.bf16 %v593_v38, %v590_v29  ;;  %v621_v44 = vsel %vm612_vm2, %v619_v33, %v620_v34  ;;  %v596_v46 = vsel %vm587_vm3, %v594_v36, %v595_v39  ;;  %v8198_v6 = vld [vmem:[#allocation2 + $0x70] sm:$0xff]  ;;  %v8200_v7 = vld [vmem:[#allocation2 + $0x78] sm:$0x3]  ;;  %v8215_v23 = vld [vmem:[#allocation2 + $0x80] sm:$0xff]  ;;  %504 = vst.msk [vmem:[#allocation3 + $0x60] sm:$0xff] %vm490_vm4, %v7913_v0 }
  0x50   : > { %v600_v48 = vrot.slane %v8142_v17, 1  ;;  %v650_v49 = vrot.slane %v8138_v13, 2  ;;  %v8169_v50 = vpack.i.bf16 %v624_v45, %v621_v44  ;;  %v601_v51 = vrot.slane %v560_v41, 1  ;;  %v8217_v24 = vld [vmem:[#allocation2 + $0x88] sm:$0x3]  ;;  %506 = vst.msk [vmem:[#allocation3 + $0x70] sm:$0xff] %vm490_vm4, %v7913_v0 }
  0x51   : > { %7161 = vrot.lane.b32.xlu1 %v7160_v42, %s7915_s21  ;;  %v599_v54 = vsel %vm587_vm3, %v597_v40, %v598_v47  ;;  %v625_v55 = vrot.slane %v8142_v17, 2  ;;  %v626_v56 = vrot.slane %v560_v41, 2  ;;  %v7170_v3 = vpack.i.bf16 %v596_v46, %v593_v38  ;;  %v7487_v29 = vld [vmem:[%s9601_s2 + $0x10] ss:$0 sps:$4 sm:$0x33]   ;;  %508 = vst.msk [vmem:[#allocation3 + $0x80] sm:$0xff] %vm490_vm4, %v7913_v0 }
  0x52   : > { %7151 = vrot.lane.b32.xlu0 %v7150_v43, %s7916_s17  ;;  %v8178_v57 = vpack.i.bf16 %v599_v54, %v596_v46  ;;  %v602_v58 = vsel %vm587_vm3, %v600_v48, %v601_v51  ;;  %v603_v5 = vrot.slane %v8171_v52, 1  ;;  %v604_v8 = vrot.slane %v8181_v59, 1  ;;  %510 = vst.msk [vmem:[#allocation3 + $0x90] sm:$0xff] %vm490_vm4, %v7913_v0  ;;  %7074 = vmatprep.subr.msk.bf16.mxu1 %vm959_vm5, %v7487_v29  ;;  %v7808_v15 = vld [vmem:[#allocation2 + $0x10] sm:$0xff] }
  0x53   : > { %v7175_v62 = vpack.i.bf16 %v602_v58, %v599_v54  ;;  %v627_v4 = vsel %vm612_vm2, %v625_v55, %v626_v56  ;;  %v628_v9 = vrot.slane %v8171_v52, 2  ;;  %v629_v10 = vrot.slane %v8181_v59, 2  ;;  %499 = vst.msk [vmem:[#allocation3 + $0x38] sm:$0x3] %vm492_vm6, %v7913_v0  ;;  %493 = vst.msk [vmem:[#allocation3 + $0x8] sm:$0x3] %vm492_vm6, %v7913_v0 }
  0x54   : > { %v606_v11 = vrot.slane %v8183_v60, 1  ;;  %v7190_v12 = vpack.i.bf16 %v627_v4, %v624_v45  ;;  %v607_v14 = vrot.slane %v8188_v63, 1  ;;  %v7180_v18 = vpack.i.bf16 %v621_v44, %v8158_v37  ;;  %495 = vst.msk [vmem:[#allocation3 + $0x18] sm:$0x3] %vm492_vm6, %v7913_v0  ;;  %497 = vst.msk [vmem:[#allocation3 + $0x28] sm:$0x3] %vm492_vm6, %v7913_v0 }
  0x55   : > { %7166 = vrot.lane.b32.xlu1 %v8169_v50, %s7915_s21  ;;  %v609_v19 = vrot.slane %v8198_v6, 1  ;;  %v610_v21 = vrot.slane %v8200_v7, 1  ;;  %v631_v25 = vrot.slane %v8183_v60, 2  ;;  %v632_v26 = vrot.slane %v8188_v63, 2  ;;  %501 = vst.msk [vmem:[#allocation3 + $0x48] sm:$0x3] %vm492_vm6, %v7913_v0 }
  0x56   : > { %7156 = vrot.lane.b32.xlu0 %v8178_v57, %s7916_s17  ;;  %v7195_v27 = vpack.i.bf16 %v8171_v52, %v8142_v17  ;;  %v634_v28 = vrot.slane %v8198_v6, 2  ;;  %v7185_v30 = vpack.i.bf16 %v8140_v16, %v8148_v22  ;;  %v605_v31 = vsel %vm587_vm3, %v603_v5, %v604_v8  ;;  %503 = vst.msk [vmem:[#allocation3 + $0x58] sm:$0x3] %vm492_vm6, %v7913_v0 }
  0x57   : > { %v635_v32 = vrot.slane %v8200_v7, 2  ;;  %v639_v33 = vrot.slane %v8215_v23, 1  ;;  %v640_v34 = vrot.slane %v8217_v24, 1  ;;  %v642_v17 = vrot.slane %v8215_v23, 2  ;;  %505 = vst.msk [vmem:[#allocation3 + $0x68] sm:$0x3] %vm492_vm6, %v7913_v0 }
  0x58   : > { %v7205_v35 = vpack.i.bf16 %v605_v31, %v602_v58  ;;  %v643_v36 = vrot.slane %v8217_v24, 2  ;;  %v961_v16 = vsel %vm959_vm5, %v7487_v29, 0  ;;  %v630_v22 = vsel %vm612_vm2, %v628_v9, %v629_v10  ;;  %507 = vst.msk [vmem:[#allocation3 + $0x78] sm:$0x3] %vm492_vm6, %v7913_v0  ;;  %509 = vst.msk [vmem:[#allocation3 + $0x88] sm:$0x3] %vm492_vm6, %v7913_v0 }
  0x59   : > { %7176 = vrot.lane.b32.xlu1 %v7175_v62, %s7917_s16  ;;  %7011 = vmatpush3.bf16.msra.mxu1 %v961_v16  ;;  %v7215_v37 = vpack.i.bf16 %v630_v22, %v627_v4  ;;  %v608_v38 = vsel %vm587_vm3, %v606_v11, %v607_v14  ;;  %v611_v39 = vsel %vm587_vm3, %v609_v19, %v610_v21  ;;  %v7806_v9 = vld [vmem:[#allocation2 + $0x30] sm:$0xff]  ;;  %v7807_v11 = vld [vmem:[#allocation2 + $0x20] sm:$0xff] }
  0x5a   : > { %7171 = vrot.lane.b32.xlu0 %v7170_v3, %s7917_s16  ;;  %v7225_v40 = vpack.i.bf16 %v611_v39, %v608_v38  ;;  %v633_v41 = vsel %vm612_vm2, %v631_v25, %v632_v26  ;;  %v636_v42 = vsel %vm612_vm2, %v634_v28, %v635_v32  ;;  %v7245_v44 = vpack.i.bf16 %v8215_v23, %v8198_v6  ;;  %v7809_v19 = vld [vmem:[#allocation2] sm:$0xff] }
  0x5b   : > { %v7235_v43 = vpack.i.bf16 %v636_v42, %v633_v41  ;;  %v7240_v45 = vpack.i.bf16 %v8183_v60, %v8171_v52  ;;  %v641_v46 = vsel %vm587_vm3, %v639_v33, %v640_v34  ;;  %v7250_v48 = vpack.i.bf16 %v608_v38, %v605_v31  ;;  %511 = vst.msk [vmem:[#allocation3 + $0x98] sm:$0x3] %vm492_vm6, %v7913_v0 }
  0x5c   : > { %v7255_v47 = vpack.i.bf16 %v641_v46, %v611_v39  ;;  %v7260_v54 = vpack.i.bf16 %v633_v41, %v630_v22  ;;  %v7275_v52 = vpack.i.bf16 %v8138_v13, %v8215_v23  ;;  %v7270_v55 = vpack.i.bf16 %v8198_v6, %v8183_v60  ;;  %513 = vst.msk [vmem:[#allocation4] sm:$0xff] %vm512_vm14, %v7913_v0 }
  0x5d   : > { %7191 = vrot.lane.b32.xlu1 %v7190_v12, %s7918_s22  ;;  %v649_v56 = vsel %vm587_vm3, %v647_v20, %v648_v61  ;;  %v652_v58 = vsel %vm612_vm2, %v650_v49, %v651_v1  ;;  %516 = vst.msk [vmem:[#allocation4 + $0x10] sm:$0xff] %vm512_vm14, %v7913_v0  ;;  %518 = vst.msk [vmem:[#allocation4 + $0x20] sm:$0xff] %vm512_vm14, %v7913_v0 }
  0x5e   : > { %7181 = vrot.lane.b32.xlu0 %v7180_v18, %s7918_s22  ;;  %520 = vst.msk [vmem:[#allocation4 + $0x30] sm:$0xff] %vm512_vm14, %v7913_v0  ;;  %522 = vst.msk [vmem:[#allocation4 + $0x40] sm:$0xff] %vm512_vm14, %v7913_v0 }
  0x5f   : > { %524 = vst.msk [vmem:[#allocation4 + $0x50] sm:$0xff] %vm512_vm14, %v7913_v0  ;;  %526 = vst.msk [vmem:[#allocation4 + $0x60] sm:$0xff] %vm512_vm14, %v7913_v0 }
  0x60   : > { %528 = vst.msk [vmem:[#allocation4 + $0x70] sm:$0xff] %vm512_vm14, %v7913_v0  ;;  %530 = vst.msk [vmem:[#allocation4 + $0x80] sm:$0xff] %vm512_vm14, %v7913_v0 }
  0x61   : > { %7196 = vrot.lane.b32.xlu1 %v7195_v27, %s7919_s30  ;;  %532 = vst.msk [vmem:[#allocation4 + $0x90] sm:$0xff] %vm512_vm14, %v7913_v0 }
  0x62   : > { %7186 = vrot.lane.b32.xlu0 %v7185_v30, %s7919_s30 }
  0x65   : > { %7206 = vrot.lane.b32.xlu1 %v7205_v35, %s7920_s14 }
  0x66   : > { %7201 = vrot.lane.b32.xlu0 %v8178_v57, %s7920_s14  ;;  %v7285_v57 = vpack.i.bf16 %v649_v56, %v641_v46 }
  0x69   : > { %7216 = vrot.lane.b32.xlu1 %v7215_v37, %s9619_s20 }
  0x6a   : > { %7211 = vrot.lane.b32.xlu0 %v8169_v50, %s9619_s20  ;;  %v644_v50 = vsel %vm612_vm2, %v642_v17, %v643_v36 }
  0x6b   : > { %v7265_v51 = vpack.i.bf16 %v644_v50, %v636_v42  ;;  %v7295_v13 = vpack.i.bf16 %v652_v58, %v644_v50 }
  0x6d   : > { %7226 = vrot.lane.b32.xlu1 %v7225_v40, %s7916_s17 }
  0x6e   : > { %7221 = vrot.lane.b32.xlu0 %v7205_v35, %s7916_s17  ;;  %s7922_s17 = smov 96  }
  0x71   : > { %7236 = vrot.lane.b32.xlu1 %v7235_v43, %s7915_s21 }
  0x72   : > { %7231 = vrot.lane.b32.xlu0 %v7215_v37, %s7915_s21 }
  0x75   : > { %7246 = vrot.lane.b32.xlu1 %v7245_v44, %s7914_s15 }
  0x76   : > { %7241 = vrot.lane.b32.xlu0 %v7240_v45, %s7914_s15  ;;  %s9557_s15 = scalar_lea.hbm %s9612_s13, %s6498_s24 }
  0x79   : > { %7256 = vrot.lane.b32.xlu1 %v7255_v47, %s7917_s16 }
  0x7a   : > { %7251 = vrot.lane.b32.xlu0 %v7250_v48, %s7917_s16  ;;  %s9621_s16 = smov 64  }
  0x7d   : > { %7266 = vrot.lane.b32.xlu1 %v7265_v51, %s7918_s22 }
  0x7e   : > { %7261 = vrot.lane.b32.xlu0 %v7260_v54, %s7918_s22  ;;  %s457_s22 = sand.u32 1, %s7900_s26  }
  0x7f   : > { %s6065_s21 = scalar_lea.sflag [#allocation8], %s457_s22 }
  0x81   : > { %7276 = vrot.lane.b32.xlu1 %v7275_v52, %s7919_s30 }
  0x82   : > { %7271 = vrot.lane.b32.xlu0 %v7270_v55, %s7919_s30  ;;  %s9633_s30 = smov 32  }
  0x85   : > { %7286 = vrot.lane.b32.xlu1 %v7285_v57, %s7920_s14 }
  0x86   : > { %7281 = vrot.lane.b32.xlu0 %v7225_v40, %s7920_s14 }
  0x89   : > { %7296 = vrot.lane.b32.xlu1 %v7295_v13, %s9619_s20 }
  0x8a   : > { %7291 = vrot.lane.b32.xlu0 %v7235_v43, %s9619_s20 }
  0xbf   : > { %v7147_v20 = vpop.permute.xlu1 %7146 }
  0xc0   : > { %v7142_v49 = vpop.permute.xlu0 %7141  ;;  %v7149_v26 = vunpack.i.h.bf16 %v7147_v20  ;;  %v7148_v27 = vunpack.i.l.bf16 %v7147_v20 }
  0xc1   : > { %v7144_v31 = vunpack.i.h.bf16 %v7142_v49  ;;  %v7143_v32 = vunpack.i.l.bf16 %v7142_v49 }
  0xc3   : > { %v7162_v53 = vpop.permute.xlu1 %7161 }
  0xc4   : > { %v7152_v59 = vpop.permute.xlu0 %7151  ;;  %v7164_v7 = vunpack.i.h.bf16 %v7162_v53  ;;  %v7163_v8 = vunpack.i.l.bf16 %v7162_v53 }
  0xc5   : > { %v7154_v2 = vunpack.i.h.bf16 %v7152_v59  ;;  %v7153_v3 = vunpack.i.l.bf16 %v7152_v59 }
  0xc7   : > { %v7167_v60 = vpop.permute.xlu1 %7166  ;;  %v846_v18 = vsel %vm468_vm0, %v7808_v15, %v7154_v2  ;;  %v845_v21 = vsel %vm468_vm0, %v7809_v19, %v7153_v3 }
  0xc8   : > { %v7157_v61 = vpop.permute.xlu0 %7156  ;;  %v7169_v5 = vunpack.i.h.bf16 %v7167_v60  ;;  %v7168_v6 = vunpack.i.l.bf16 %v7167_v60  ;;  %v855_v28 = vsel %vm853_vm7, %v846_v18, %v7164_v7  ;;  %v854_v29 = vsel %vm853_vm7, %v845_v21, %v7163_v8 }
  0xc9   : > { %v7159_v62 = vunpack.i.h.bf16 %v7157_v61  ;;  %v7158_v63 = vunpack.i.l.bf16 %v7157_v61  ;;  %v863_v37 = vsel %vm862_vm8, %v854_v29, %v7143_v32  ;;  %v864_v38 = vsel %vm862_vm8, %v855_v28, %v7144_v31 }
  0xcb   : > { %v7177_v1 = vpop.permute.xlu1 %7176  ;;  %v848_v10 = vsel %vm468_vm0, %v7806_v9, %v7159_v62  ;;  %v847_v12 = vsel %vm468_vm0, %v7807_v11, %v7158_v63 }
  0xcc   : > { %v7172_v4 = vpop.permute.xlu0 %7171  ;;  %v857_v24 = vsel %vm853_vm7, %v848_v10, %v7169_v5  ;;  %v856_v25 = vsel %vm853_vm7, %v847_v12, %v7168_v6  ;;  %v7179_v33 = vunpack.i.h.bf16 %v7177_v1  ;;  %v7178_v34 = vunpack.i.l.bf16 %v7177_v1 }
  0xcd   : > { %v865_v35 = vsel %vm862_vm8, %v856_v25, %v7148_v27  ;;  %v866_v36 = vsel %vm862_vm8, %v857_v24, %v7149_v26  ;;  %v7174_v16 = vunpack.i.h.bf16 %v7172_v4  ;;  %v7173_v22 = vunpack.i.l.bf16 %v7172_v4 }
  0xce   : > { %v874_v46 = vsel %vm871_vm9, %v865_v35, %v7178_v34  ;;  %v875_v47 = vsel %vm871_vm9, %v866_v36, %v7179_v33 }
  0xcf   : > { %v7192_v14 = vpop.permute.xlu1 %7191  ;;  %v872_v54 = vsel %vm871_vm9, %v863_v37, %v7173_v22  ;;  %v873_v52 = vsel %vm871_vm9, %v864_v38, %v7174_v16  ;;  %v7810_v38 = vld [vmem:[#allocation2 + $0x70] sm:$0xff] }
  0xd0   : > { %v7182_v23 = vpop.permute.xlu0 %7181  ;;  %v7194_v39 = vunpack.i.h.bf16 %v7192_v14  ;;  %v7193_v40 = vunpack.i.l.bf16 %v7192_v14 }
  0xd1   : > { %v7184_v41 = vunpack.i.h.bf16 %v7182_v23  ;;  %v7183_v42 = vunpack.i.l.bf16 %v7182_v23 }
  0xd2   : > { %v883_v57 = vsel %vm880_vm10, %v874_v46, %v7193_v40  ;;  %v884_v58 = vsel %vm880_vm10, %v875_v47, %v7194_v39  ;;  %v7811_v40 = vld [vmem:[#allocation2 + $0x60] sm:$0xff] }
  0xd3   : > { %v7197_v30 = vpop.permute.xlu1 %7196  ;;  %v881_v49 = vsel %vm880_vm10, %v872_v54, %v7183_v42  ;;  %v882_v53 = vsel %vm880_vm10, %v873_v52, %v7184_v41  ;;  %v7813_v46 = vld [vmem:[#allocation2 + $0x40] sm:$0xff] }
  0xd4   : > { %v7187_v17 = vpop.permute.xlu0 %7186  ;;  %v7199_v43 = vunpack.i.h.bf16 %v7197_v30  ;;  %v7198_v44 = vunpack.i.l.bf16 %v7197_v30 }
  0xd5   : > { %v7189_v48 = vunpack.i.h.bf16 %v7187_v17  ;;  %v7188_v50 = vunpack.i.l.bf16 %v7187_v17 }
  0xd6   : > { %v892_v59 = vsel %vm889_vm11, %v883_v57, %v7198_v44  ;;  %v893_v60 = vsel %vm889_vm11, %v884_v58, %v7199_v43  ;;  %v7812_v44 = vld [vmem:[#allocation2 + $0x50] sm:$0xff] }
  0xd7   : > { %v7207_v45 = vpop.permute.xlu1 %7206  ;;  %v890_v62 = vsel %vm889_vm11, %v881_v49, %v7188_v50  ;;  %v891_v63 = vsel %vm889_vm11, %v882_v53, %v7189_v48 }
  0xd8   : > { %v7202_v51 = vpop.permute.xlu0 %7201  ;;  %v7209_v55 = vunpack.i.h.bf16 %v7207_v45  ;;  %v7208_v56 = vunpack.i.l.bf16 %v7207_v45 }
  0xd9   : > { %v7204_v13 = vunpack.i.h.bf16 %v7202_v51  ;;  %v7203_v20 = vunpack.i.l.bf16 %v7202_v51 }
  0xda   : > { %v901_v4 = vsel %vm898_vm12, %v892_v59, %v7208_v56  ;;  %v902_v5 = vsel %vm898_vm12, %v893_v60, %v7209_v55 }
  0xdb   : > { %v7217_v61 = vpop.permute.xlu1 %7216  ;;  %v899_v10 = vsel %vm898_vm12, %v890_v62, %v7203_v20  ;;  %v900_v11 = vsel %vm898_vm12, %v891_v63, %v7204_v13 }
  0xdc   : > { %v7219_v1 = vunpack.i.h.bf16 %v7217_v61  ;;  %v7218_v2 = vunpack.i.l.bf16 %v7217_v61  ;;  %v7212_v3 = vpop.permute.xlu0 %7211 }
  0xdd   : > { %v7214_v6 = vunpack.i.h.bf16 %v7212_v3  ;;  %v7213_v7 = vunpack.i.l.bf16 %v7212_v3 }
  0xde   : > { %v909_v8 = vsel %vm490_vm4, %v901_v4, %v7218_v2  ;;  %v910_v9 = vsel %vm490_vm4, %v902_v5, %v7219_v1 }
  0xdf   : > { %v916_v12 = vpack.c.bf16 %v910_v9, %v909_v8  ;;  %v7227_v14 = vpop.permute.xlu1 %7226  ;;  %v907_v15 = vsel %vm490_vm4, %v899_v10, %v7213_v7  ;;  %v908_v18 = vsel %vm490_vm4, %v900_v11, %v7214_v6 }
  0xe0   : > { %v7222_v19 = vpop.permute.xlu0 %7221  ;;  %v915_v21 = vpack.c.bf16 %v908_v18, %v907_v15  ;;  %v7229_v29 = vunpack.i.h.bf16 %v7227_v14  ;;  %v7228_v30 = vunpack.i.l.bf16 %v7227_v14 }
  0xe1   : > { %v7224_v31 = vunpack.i.h.bf16 %v7222_v19  ;;  %v7223_v32 = vunpack.i.l.bf16 %v7222_v19 }
  0xe2   : > { %7012 = vmatprep.mubr.msk.bf16.mxu1 %vm946_vm13, %v915_v21  ;;  %v852_v39 = vsel %vm468_vm0, %v7810_v38, %v7229_v29  ;;  %v851_v41 = vsel %vm468_vm0, %v7811_v40, %v7228_v30 }
  0xe3   : > { %7013 = vmatmul.mubr.msk.bf16.vlgmr.msra.gmra.mrb[0].mxu1 %vm946_vm13, %v916_v12  ;;  %v7237_v23 = vpop.permute.xlu1 %7236  ;;  %v850_v45 = vsel %vm468_vm0, %v7812_v44, %v7224_v31  ;;  %v849_v47 = vsel %vm468_vm0, %v7813_v46, %v7223_v32  ;;  %v7491_v44 = vld [vmem:[%s9603_s4] sm:$0xff]   ;;  %v7493_v46 = vld [vmem:[%s9603_s4 + $0x8] sm:$0xff]   ;;  %vm514_vm0 = vcmask 517120  }
  0xe4   : > { %v7232_v24 = vpop.permute.xlu0 %7231  ;;  %v7239_v33 = vunpack.i.h.bf16 %v7237_v23  ;;  %v7238_v34 = vunpack.i.l.bf16 %v7237_v23  ;;  %517 = vst.msk [vmem:[#allocation4 + $0x18] sm:$0x3] %vm514_vm0, %v7913_v0  ;;  %515 = vst.msk [vmem:[#allocation4 + $0x8] sm:$0x3] %vm514_vm0, %v7913_v0 }
  0xe5   : > { %v7234_v35 = vunpack.i.h.bf16 %v7232_v24  ;;  %v7233_v36 = vunpack.i.l.bf16 %v7232_v24  ;;  %519 = vst.msk [vmem:[#allocation4 + $0x28] sm:$0x3] %vm514_vm0, %v7913_v0  ;;  %521 = vst.msk [vmem:[#allocation4 + $0x38] sm:$0x3] %vm514_vm0, %v7913_v0 }
  0xe6   : > { %v860_v48 = vsel %vm853_vm7, %v851_v41, %v7238_v34  ;;  %v861_v50 = vsel %vm853_vm7, %v852_v39, %v7239_v33  ;;  %v7488_v41 = vld [vmem:[%s9603_s4 + $0x80] sm:$0xff]   ;;  %523 = vst.msk [vmem:[#allocation4 + $0x48] sm:$0x3] %vm514_vm0, %v7913_v0  ;;  %525 = vst.msk [vmem:[#allocation4 + $0x58] sm:$0x3] %vm514_vm0, %v7913_v0 }
  0xe7   : > { %v7247_v25 = vpop.permute.xlu1 %7246  ;;  %v858_v54 = vsel %vm853_vm7, %v849_v47, %v7233_v36  ;;  %v859_v52 = vsel %vm853_vm7, %v850_v45, %v7234_v35  ;;  %7020 = vmatprep.subr.bf16.mxu0 %v7488_v41  ;;  %v7492_v45 = vld [vmem:[%s9603_s4 + $0x48] sm:$0xff]   ;;  %v7494_v47 = vld [vmem:[%s9603_s4 + $0x50] sm:$0xff]   ;;  %527 = vst.msk [vmem:[#allocation4 + $0x68] sm:$0x3] %vm514_vm0, %v7913_v0  ;;  %529 = vst.msk [vmem:[#allocation4 + $0x78] sm:$0x3] %vm514_vm0, %v7913_v0 }
  0xe8   : > { %v7242_v26 = vpop.permute.xlu0 %7241  ;;  %v7249_v22 = vunpack.i.h.bf16 %v7247_v25  ;;  %v7248_v37 = vunpack.i.l.bf16 %v7247_v25  ;;  %7021 = vmatpush3.bf16.msra.mxu0 %v7488_v41  ;;  %v7504_v41 = vld [vmem:[%s9603_s4 + $0x78] sm:$0xff]   ;;  %531 = vst.msk [vmem:[#allocation4 + $0x88] sm:$0x3] %vm514_vm0, %v7913_v0  ;;  %533 = vst.msk [vmem:[#allocation4 + $0x98] sm:$0x3] %vm514_vm0, %v7913_v0 }
  0xe9   : > { %v7244_v42 = vunpack.i.h.bf16 %v7242_v26  ;;  %v7243_v43 = vunpack.i.l.bf16 %v7242_v26 }
  0xea   : > { %v869_v58 = vsel %vm862_vm8, %v860_v48, %v7248_v37  ;;  %v870_v13 = vsel %vm862_vm8, %v861_v50, %v7249_v22  ;;  %v7495_v48 = vld [vmem:[%s9603_s4 + $0x10] sm:$0xff]   ;;  %v7496_v50 = vld [vmem:[%s9603_s4 + $0x58] sm:$0xff]  }
  0xeb   : > { %v7257_v27 = vpop.permute.xlu1 %7256  ;;  %v867_v53 = vsel %vm862_vm8, %v858_v54, %v7243_v43  ;;  %v868_v59 = vsel %vm862_vm8, %v859_v52, %v7244_v42  ;;  %v7489_v42 = vld [vmem:[%s9603_s4 + $0x88] sm:$0xff]   ;;  %v7490_v43 = vld [vmem:[%s9603_s4 + $0x40] sm:$0xff]  }
  0xec   : > { %v7252_v28 = vpop.permute.xlu0 %7251  ;;  %v7259_v55 = vunpack.i.h.bf16 %v7257_v27  ;;  %v7258_v56 = vunpack.i.l.bf16 %v7257_v27  ;;  %7022 = vmatprep.subr.bf16.mxu0 %v7489_v42  ;;  %6509 = vmatprep.subr.bf16.mxu1 %v7490_v43 }
  0xed   : > { %v7254_v20 = vunpack.i.h.bf16 %v7252_v28  ;;  %v7253_v49 = vunpack.i.l.bf16 %v7252_v28  ;;  %7023 = vmatpush3.bf16.msra.mxu0 %v7489_v42  ;;  %6510 = vmatpush3.bf16.msra.mxu1 %v7491_v44  ;;  %v7505_v44 = vld [vmem:[%s9603_s4 + $0x38] sm:$0xff]  }
  0xee   : > { %v878_v4 = vsel %vm871_vm9, %v869_v58, %v7258_v56  ;;  %v879_v5 = vsel %vm871_vm9, %v870_v13, %v7259_v55  ;;  %6511 = vmatprep.subr.bf16.mxu1 %v7492_v45 }
  0xef   : > { %v7267_v17 = vpop.permute.xlu1 %7266  ;;  %v876_v9 = vsel %vm871_vm9, %v867_v53, %v7253_v49  ;;  %v877_v10 = vsel %vm871_vm9, %v868_v59, %v7254_v20  ;;  %v7497_v59 = vld [vmem:[%s9603_s4 + $0x18] sm:$0xff]  }
  0xf0   : > { %v7262_v16 = vpop.permute.xlu0 %7261  ;;  %v7269_v60 = vunpack.i.h.bf16 %v7267_v17  ;;  %v7268_v61 = vunpack.i.l.bf16 %v7267_v17 }
  0xf1   : > { %v7264_v62 = vunpack.i.h.bf16 %v7262_v16  ;;  %v7263_v63 = vunpack.i.l.bf16 %v7262_v16  ;;  %6512 = vmatpush3.bf16.msra.mxu1 %v7493_v46 }
  0xf2   : > { %v887_v14 = vsel %vm880_vm10, %v878_v4, %v7268_v61  ;;  %v888_v15 = vsel %vm880_vm10, %v879_v5, %v7269_v60  ;;  %6513 = vmatprep.subr.bf16.mxu1 %v7494_v47  ;;  %v7498_v61 = vld [vmem:[%s9603_s4 + $0x60] sm:$0xff]  }
  0xf3   : > { %v7277_v51 = vpop.permute.xlu1 %7276  ;;  %v885_v21 = vsel %vm880_vm10, %v876_v9, %v7263_v63  ;;  %v886_v23 = vsel %vm880_vm10, %v877_v10, %v7264_v62  ;;  %v7499_v63 = vld [vmem:[%s9603_s4 + $0x20] sm:$0xff]  }
  0xf4   : > { %v7272_v57 = vpop.permute.xlu0 %7271  ;;  %v7279_v1 = vunpack.i.h.bf16 %v7277_v51  ;;  %v7278_v2 = vunpack.i.l.bf16 %v7277_v51  ;;  %v8416_v51 = vld [vmem:[%s9602_s3] ss:$0 sm:$0xff] }
  0xf5   : > { %v7274_v6 = vunpack.i.h.bf16 %v7272_v57  ;;  %v7273_v7 = vunpack.i.l.bf16 %v7272_v57  ;;  %6514 = vmatpush3.bf16.msra.mxu1 %v7495_v48 }
  0xf6   : > { %v896_v24 = vsel %vm889_vm11, %v887_v14, %v7278_v2  ;;  %v897_v25 = vsel %vm889_vm11, %v888_v15, %v7279_v1  ;;  %6515 = vmatprep.subr.bf16.mxu1 %v7496_v50  ;;  %v8435_v1 = vld [vmem:[#allocation3] sm:$0xff]  ;;  %v8437_v2 = vld [vmem:[#allocation3 + $0x8] sm:$0x3] }
  0xf7   : > { %v7287_v3 = vpop.permute.xlu1 %7286  ;;  %v894_v27 = vsel %vm889_vm11, %v885_v21, %v7273_v7  ;;  %v895_v28 = vsel %vm889_vm11, %v886_v23, %v7274_v6  ;;  %v1082_v9 = vrot.slane %v8437_v2, 1 }
  0xf8   : > { %v7282_v8 = vpop.permute.xlu0 %7281  ;;  %v7289_v11 = vunpack.i.h.bf16 %v7287_v3  ;;  %v7288_v12 = vunpack.i.l.bf16 %v7287_v3  ;;  %v7500_v3 = vld [vmem:[%s9603_s4 + $0x68] sm:$0xff]  }
  0xf9   : > { %v7284_v18 = vunpack.i.h.bf16 %v7282_v8  ;;  %v7283_v19 = vunpack.i.l.bf16 %v7282_v8  ;;  %6516 = vmatpush3.bf16.msra.mxu1 %v7497_v59  ;;  %v1081_v8 = vrot.slane %v8435_v1, 1 }
  0xfa   : > { %v905_v32 = vsel %vm898_vm12, %v896_v24, %v7288_v12  ;;  %v906_v33 = vsel %vm898_vm12, %v897_v25, %v7289_v11  ;;  %6517 = vmatprep.subr.bf16.mxu1 %v7498_v61  ;;  %v7501_v25 = vld [vmem:[%s9603_s4 + $0x28] sm:$0xff]  }
  0xfb   : > { %v7297_v26 = vpop.permute.xlu1 %7296  ;;  %v903_v35 = vsel %vm898_vm12, %v894_v27, %v7283_v19  ;;  %v904_v36 = vsel %vm898_vm12, %v895_v28, %v7284_v18 }
  0xfc   : > { %v7299_v29 = vunpack.i.h.bf16 %v7297_v26  ;;  %v7298_v30 = vunpack.i.l.bf16 %v7297_v26  ;;  %v7292_v31 = vpop.permute.xlu0 %7291 }
  0xfd   : > { %v7294_v34 = vunpack.i.h.bf16 %v7292_v31  ;;  %v7293_v17 = vunpack.i.l.bf16 %v7292_v31  ;;  %6518 = vmatpush3.bf16.msra.mxu1 %v7499_v63 }
  0xfe   : > { %v913_v16 = vsel %vm490_vm4, %v905_v32, %v7298_v30  ;;  %v914_v22 = vsel %vm490_vm4, %v906_v33, %v7299_v29  ;;  %6519 = vmatprep.subr.bf16.mxu1 %v7500_v3  ;;  %v7502_v30 = vld [vmem:[%s9603_s4 + $0x70] sm:$0xff]  }
  0xff   : > { %v918_v37 = vpack.c.bf16 %v914_v22, %v913_v16  ;;  %v911_v38 = vsel %vm490_vm4, %v903_v35, %v7293_v17  ;;  %v912_v39 = vsel %vm490_vm4, %v904_v36, %v7294_v34  ;;  %v1083_v34 = vsel %vm587_vm3, %v1081_v8, %v1082_v9 }
 0x100   : > { %v917_v40 = vpack.c.bf16 %v912_v39, %v911_v38  ;;  %v1105_v38 = vrot.slane %v8435_v1, 2  ;;  %v1106_v39 = vrot.slane %v8437_v2, 2 }
 0x101   : > { %6520 = vmatpush3.bf16.msra.mxu1 %v7501_v25 }
 0x102   : > { %7016 = vmatprep.mubr.msk.bf16.mxu1 %vm946_vm13, %v917_v40  ;;  %6521 = vmatprep.subr.bf16.mxu1 %v7502_v30  ;;  %v7503_v40 = vld [vmem:[%s9603_s4 + $0x30] sm:$0xff]  }
 0x103   : > { %7017 = vmatmul.mubr.msk.bf16.gmra.mrb[4].mxu1 %vm946_vm13, %v918_v37 }
 0x105   : > { %6522 = vmatpush3.bf16.msra.mxu1 %v7503_v40 }
 0x106   : > { %6523 = vmatprep.subr.bf16.mxu1 %v7504_v41 }
 0x109   : > { %6524 = vmatpush3.bf16.msra.mxu1 %v7505_v44 }
 0x1b6   : > { %v7014_v54 = vpop.f32.mrb[0].mxu1 }
 0x1b7   : > { %v1006_v52 = vadd.f32 %v7014_v54, %v8416_v51  ;;  %v997_v55 = vpop.f32.mrb[1].mxu1  ;;  %v1107_v54 = vsel %vm612_vm2, %v1105_v38, %v1106_v39 }
 0x1b8   : > { %v998_v56 = vadd.f32 %v8416_v51, %v997_v55  ;;  %v7015_v57 = vpop.f32.mrb[2].mxu1 }
 0x1b9   : > { %v1030_v58 = vmax.f32 %v1006_v52, 0.0  ;;  %v1009_v13 = vadd.f32 %v7015_v57, %v8416_v51  ;;  %v1000_v20 = vpop.f32.mrb[3].mxu1 }
 0x1ba   : > { %v1028_v49 = vmax.f32 %v998_v56, 0.0  ;;  %v1001_v53 = vadd.f32 %v8416_v51, %v1000_v20 }
 0x1bb   : > { %1039 = vst.msk [vmem:[#allocation3 + $0x31] sm:$0xff] %vm490_vm4, %v1030_v58  ;;  %v1031_v60 = vmax.f32 %v1009_v13, 0.0 }
 0x1bc   : > { %1037 = vst.msk [vmem:[#allocation3 + $0x11] sm:$0xff] %vm490_vm4, %v1028_v49  ;;  %v1029_v62 = vmax.f32 %v1001_v53, 0.0 }
 0x1bd   : > { %1040 = vst.msk [vmem:[#allocation3 + $0x41] sm:$0xff] %vm490_vm4, %v1031_v60 }
 0x1be   : > { %1038 = vst.msk [vmem:[#allocation3 + $0x21] sm:$0xff] %vm490_vm4, %v1029_v62 }
 0x1c2   : > { %v8442_v4 = vld [vmem:[#allocation3 + $0x30] sm:$0xff]  ;;  %v8444_v5 = vld [vmem:[#allocation3 + $0x38] sm:$0x3] }
 0x1c3   : > { %v8446_v6 = vld [vmem:[#allocation3 + $0x10] sm:$0xff]  ;;  %v1048_v7 = vld [vmem:[#allocation3 + $0x18] sm:$0x3]  ;;  %v1114_v11 = vrot.slane %v8442_v4, 2  ;;  %v1115_v12 = vrot.slane %v8444_v5, 2  ;;  %v1091_v45 = vrot.slane %v8444_v5, 1 }
 0x1c4   : > { %v8450_v10 = vld [vmem:[#allocation3 + $0x40] sm:$0xff]  ;;  %v8454_v14 = vld [vmem:[#allocation3 + $0x48] sm:$0x3]  ;;  %v1084_v15 = vrot.slane %v8446_v6, 1  ;;  %v1085_v29 = vrot.slane %v1048_v7, 1  ;;  %v1108_v36 = vrot.slane %v8446_v6, 2 }
 0x1c5   : > { %v7300_v18 = vpack.i.bf16 %v8450_v10, %v8442_v4  ;;  %v8459_v19 = vld [vmem:[#allocation3 + $0x20] sm:$0xff]  ;;  %v1050_v21 = vld [vmem:[#allocation3 + $0x28] sm:$0x3]  ;;  %v1117_v23 = vrot.slane %v8450_v10, 2  ;;  %v1118_v24 = vrot.slane %v8454_v14, 2  ;;  %v1116_v33 = vsel %vm612_vm2, %v1114_v11, %v1115_v12  ;;  %v8552_v11 = vld [vmem:[#allocation3 + $0x90] sm:$0xff] }
 0x1c6   : > { %v7305_v26 = vpack.i.bf16 %v8442_v4, %v8459_v19  ;;  %v1111_v27 = vrot.slane %v8459_v19, 2  ;;  %v1112_v28 = vrot.slane %v1050_v21, 2  ;;  %v7310_v35 = vpack.i.bf16 %v8459_v19, %v8446_v6 }
 0x1c7   : > { %7301 = vrot.lane.b32.xlu1 %v7300_v18, %s7922_s17  ;;  %v8474_v31 = vsel %vm612_vm2, %v1117_v23, %v1118_v24  ;;  %v1109_v16 = vrot.slane %v1048_v7, 2  ;;  %v8485_v37 = vsel %vm587_vm3, %v1084_v15, %v1085_v29  ;;  %v1088_v42 = vrot.slane %v1050_v21, 1 }
 0x1c8   : > { %7306 = vrot.lane.b32.xlu0 %v7305_v26, %s9621_s16  ;;  %v1113_v32 = vsel %vm612_vm2, %v1111_v27, %v1112_v28  ;;  %v7325_v22 = vpack.i.bf16 %v8474_v31, %v1116_v33  ;;  %v1087_v43 = vrot.slane %v8459_v19, 1  ;;  %v7315_v46 = vpack.i.bf16 %v8485_v37, %v1083_v34  ;;  %v1064_v28 = vld [vmem:[#allocation3 + $0x98] sm:$0x3] }
 0x1c9   : > { %v1356_v17 = vpack.c.bf16 %v1116_v33, %v1113_v32  ;;  %v1110_v47 = vsel %vm612_vm2, %v1108_v36, %v1109_v16  ;;  %v1090_v48 = vrot.slane %v8442_v4, 1  ;;  %v7345_v62 = vpack.i.bf16 %v1116_v33, %v1113_v32 }
 0x1ca   : > { %v7330_v50 = vpack.i.bf16 %v1113_v32, %v1110_v47  ;;  %v8529_v52 = vsel %vm587_vm3, %v1087_v43, %v1088_v42  ;;  %v7320_v55 = vpack.i.bf16 %v1110_v47, %v1107_v54  ;;  %v1093_v9 = vrot.slane %v8450_v10, 1 }
 0x1cb   : > { %7024 = vmatprep.mubr.msk.bf16.mxu0 %vm490_vm4, %v1356_v17  ;;  %7311 = vrot.lane.b32.xlu1 %v7310_v35, %s7922_s17  ;;  %v8533_v56 = vsel %vm587_vm3, %v1090_v48, %v1091_v45  ;;  %v1094_v21 = vrot.slane %v8454_v14, 1  ;;  %v1151_v41 = vrot.slane %v1064_v28, 2 }
 0x1cc   : > { %7326 = vrot.lane.b32.xlu0 %v7325_v22, %s9633_s30  ;;  %v7335_v57 = vpack.i.bf16 %v8533_v56, %v8529_v52  ;;  %v1150_v22 = vrot.slane %v8552_v11, 2 }
 0x1cd   : > { %v8581_v44 = vsel %vm587_vm3, %v1093_v9, %v1094_v21 }
 0x1ce   : > { %v1152_v54 = vsel %vm612_vm2, %v1150_v22, %v1151_v41 }
 0x1cf   : > { %7316 = vrot.lane.b32.xlu1 %v7315_v46, %s9633_s30 }
 0x1d0   : > { %7331 = vrot.lane.b32.xlu0 %v7330_v50, %s9633_s30 }
 0x1d3   : > { %7321 = vrot.lane.b32.xlu1 %v7320_v55, %s9621_s16 }
 0x1d4   : > { %7336 = vrot.lane.b32.xlu0 %v7335_v57, %s7922_s17 }
 0x1d6   : > { %v7018_v58 = vpop.f32.mrb[4].mxu1 }
 0x1d7   : > { %v1022_v13 = vadd.f32 %v7018_v58, %v8416_v51  ;;  %v1013_v20 = vpop.f32.mrb[5].mxu1  ;;  %7341 = vrot.lane.b32.xlu1 %v7335_v57, %s9633_s30 }
 0x1d8   : > { %v1014_v49 = vadd.f32 %v8416_v51, %v1013_v20  ;;  %v7019_v53 = vpop.f32.mrb[6].mxu1 }
 0x1d9   : > { %v1034_v59 = vmax.f32 %v1022_v13, 0.0  ;;  %v1025_v60 = vadd.f32 %v7019_v53, %v8416_v51  ;;  %v1016_v61 = vpop.f32.mrb[7].mxu1 }
 0x1da   : > { %v1032_v63 = vmax.f32 %v1014_v49, 0.0  ;;  %v1017_v2 = vadd.f32 %v8416_v51, %v1016_v61 }
 0x1db   : > { %1043 = vst.msk [vmem:[#allocation3 + $0x71] sm:$0xff] %vm490_vm4, %v1034_v59  ;;  %v1035_v3 = vmax.f32 %v1025_v60, 0.0  ;;  %7346 = vrot.lane.b32.xlu1 %v7345_v62, %s9621_s16 }
 0x1dc   : > { %1041 = vst.msk [vmem:[#allocation3 + $0x51] sm:$0xff] %vm490_vm4, %v1032_v63  ;;  %v1033_v5 = vmax.f32 %v1017_v2, 0.0  ;;  %v1147_v63 = vrot.slane %v8552_v11, 1  ;;  %v1148_v2 = vrot.slane %v1064_v28, 1 }
 0x1dd   : > { %1044 = vst.msk [vmem:[#allocation3 + $0x81] sm:$0xff] %vm490_vm4, %v1035_v3 }
 0x1de   : > { %1042 = vst.msk [vmem:[#allocation3 + $0x61] sm:$0xff] %vm490_vm4, %v1033_v5  ;;  %v1149_v9 = vsel %vm587_vm3, %v1147_v63, %v1148_v2 }
 0x1e2   : > { %v8549_v7 = vld [vmem:[#allocation3 + $0x70] sm:$0xff]  ;;  %v1060_v8 = vld [vmem:[#allocation3 + $0x78] sm:$0x3] }
 0x1e3   : > { %v8554_v51 = vld [vmem:[#allocation3 + $0x50] sm:$0xff]  ;;  %v1056_v12 = vld [vmem:[#allocation3 + $0x58] sm:$0x3]  ;;  %v1126_v15 = vrot.slane %v8549_v7, 2  ;;  %v1127_v18 = vrot.slane %v1060_v8, 2  ;;  %v1102_v55 = vrot.slane %v8549_v7, 1 }
 0x1e4   : > { %v7350_v23 = vpack.i.bf16 %v8554_v51, %v8450_v10  ;;  %v1120_v24 = vrot.slane %v8554_v51, 2  ;;  %v1121_v25 = vrot.slane %v1056_v12, 2  ;;  %v1096_v26 = vrot.slane %v8554_v51, 1  ;;  %v1061_v27 = vld [vmem:[#allocation3 + $0x80] sm:$0xff]  ;;  %v1062_v33 = vld [vmem:[#allocation3 + $0x88] sm:$0x3] }
 0x1e5   : > { %v8562_v29 = vld [vmem:[#allocation3 + $0x60] sm:$0xff]  ;;  %v1058_v30 = vld [vmem:[#allocation3 + $0x68] sm:$0x3]  ;;  %v1097_v32 = vrot.slane %v1056_v12, 1  ;;  %v1142_v39 = vrot.slane %v1061_v27, 2  ;;  %v1143_v40 = vrot.slane %v1062_v33, 2  ;;  %v1128_v43 = vsel %vm612_vm2, %v1126_v15, %v1127_v18 }
 0x1e6   : > { %7351 = vrot.lane.b32.xlu0 %v7350_v23, %s9621_s16  ;;  %v7360_v14 = vpack.i.bf16 %v8562_v29, %v8554_v51  ;;  %v1122_v34 = vsel %vm612_vm2, %v1120_v24, %v1121_v25  ;;  %v1123_v17 = vrot.slane %v8562_v29, 2  ;;  %v1124_v36 = vrot.slane %v1058_v30, 2 }
 0x1e7   : > { %v1359_v35 = vpack.c.bf16 %v1122_v34, %v8474_v31  ;;  %v8571_v16 = vsel %vm587_vm3, %v1096_v26, %v1097_v32  ;;  %v7355_v38 = vpack.i.bf16 %v8549_v7, %v8562_v29  ;;  %v1099_v47 = vrot.slane %v8562_v29, 1 }
 0x1e8   : > { %7361 = vrot.lane.b32.xlu1 %v7360_v14, %s7922_s17  ;;  %v1125_v42 = vsel %vm612_vm2, %v1123_v17, %v1124_v36  ;;  %v7370_v46 = vpack.i.bf16 %v8571_v16, %v8581_v44  ;;  %v1100_v48 = vrot.slane %v1058_v30, 1  ;;  %v1144_v50 = vsel %vm612_vm2, %v1142_v39, %v1143_v40 }
 0x1e9   : > { %7025 = vmatmul.mubr.msk.bf16.vlgmr.msra.gmra.mrb[0].mxu0 %vm490_vm4, %v1359_v35  ;;  %v1362_v45 = vpack.c.bf16 %v1128_v43, %v1125_v42  ;;  %v1103_v57 = vrot.slane %v1060_v8, 1  ;;  %v7375_v58 = vpack.i.bf16 %v1122_v34, %v8474_v31  ;;  %v1365_v13 = vpack.c.bf16 %v1152_v54, %v1144_v50 }
 0x1ea   : > { %7356 = vrot.lane.b32.xlu0 %v7355_v38, %s9621_s16  ;;  %v8595_v20 = vsel %vm587_vm3, %v1099_v47, %v1100_v48  ;;  %v7380_v49 = vpack.i.bf16 %v1144_v50, %v1128_v43  ;;  %v7385_v31 = vpack.i.bf16 %v1125_v42, %v1122_v34  ;;  %v7410_v60 = vpack.i.bf16 %v1128_v43, %v1125_v42 }
 0x1eb   : > { %7028 = vmatprep.mubr.msk.bf16.mxu0 %vm490_vm4, %v1362_v45  ;;  %v8600_v53 = vsel %vm587_vm3, %v1102_v55, %v1103_v57  ;;  %v1131_v61 = vrot.slane %v1061_v27, 1  ;;  %v1132_v62 = vrot.slane %v1062_v33, 1  ;;  %v7415_v3 = vpack.i.bf16 %v1061_v27, %v8549_v7 }
 0x1ec   : > { %7371 = vrot.lane.b32.xlu1 %v7370_v46, %s9633_s30  ;;  %v7405_v59 = vpack.i.bf16 %v8600_v53, %v8595_v20  ;;  %v7395_v5 = vpack.i.bf16 %v8552_v11, %v1061_v27 }
 0x1ed   : > { %v8614_v8 = vsel %vm587_vm3, %v1131_v61, %v1132_v62 }
 0x1ee   : > { %7366 = vrot.lane.b32.xlu0 %v7370_v46, %s7922_s17  ;;  %v7400_v12 = vpack.i.bf16 %v1149_v9, %v8614_v8 }
 0x1f0   : > { %7376 = vrot.lane.b32.xlu1 %v7375_v58, %s9621_s16 }
 0x1f1   : > { %7029 = vmatmul.mubr.msk.bf16.gmra.mrb[4].mxu0 %vm490_vm4, %v1365_v13 }
 0x1f2   : > { %7381 = vrot.lane.b32.xlu0 %v7380_v49, %s9633_s30 }
 0x1f4   : > { %7406 = vrot.lane.b32.xlu1 %v7405_v59, %s9633_s30 }
 0x1f6   : > { %7386 = vrot.lane.b32.xlu0 %v7385_v31, %s9633_s30 }
 0x1f8   : > { %7411 = vrot.lane.b32.xlu1 %v7410_v60, %s9621_s16 }
 0x1fa   : > { %7391 = vrot.lane.b32.xlu0 %v7405_v59, %s7922_s17 }
 0x1fc   : > { %7416 = vrot.lane.b32.xlu1 %v7415_v3, %s7922_s17 }
 0x1fe   : > { %7396 = vrot.lane.b32.xlu0 %v7395_v5, %s9621_s16  ;;  %s9634_s16 = smov 64  }
 0x202   : > { %7401 = vrot.lane.b32.xlu0 %v7400_v12, %s7922_s17  ;;  %s7926_s17 = smov [#allocation9]  }
 0x239   : > { %v8620_v15 = vpop.permute.xlu1 %7301 }
 0x23a   : > { %v7307_v18 = vpop.permute.xlu0 %7306 }
 0x23b   : > { %v7309_v30 = vunpack.i.h.bf16 %v7307_v18  ;;  %v7308_v32 = vunpack.i.l.bf16 %v7307_v18 }
 0x23d   : > { %v7312_v21 = vpop.permute.xlu1 %7311 }
 0x23e   : > { %v7327_v23 = vpop.permute.xlu0 %7326  ;;  %v7314_v17 = vunpack.i.h.bf16 %v7312_v21  ;;  %v7313_v35 = vunpack.i.l.bf16 %v7312_v21  ;;  %v7304_v21 = vunpack.i.h.bf16 %v8620_v15 }
 0x23f   : > { %v7329_v61 = vunpack.i.h.bf16 %v7327_v23  ;;  %v7328_v62 = vunpack.i.l.bf16 %v7327_v23 }
 0x241   : > { %v7317_v24 = vpop.permute.xlu1 %7316  ;;  %v1333_v23 = vsel %vm490_vm4, %v8581_v44, %v7329_v61 }
 0x242   : > { %v7332_v25 = vpop.permute.xlu0 %7331  ;;  %v7319_v26 = vunpack.i.h.bf16 %v7317_v24  ;;  %v7318_v11 = vunpack.i.l.bf16 %v7317_v24  ;;  %v7303_v24 = vunpack.i.l.bf16 %v8620_v15 }
 0x243   : > { %v7334_v27 = vunpack.i.h.bf16 %v7332_v25  ;;  %v7333_v28 = vunpack.i.l.bf16 %v7332_v25 }
 0x244   : > { %v1306_v39 = vsel %vm490_vm4, %v8446_v6, %v7319_v26  ;;  %v1305_v40 = vsel %vm490_vm4, %v8435_v1, %v7318_v11 }
 0x245   : > { %v1331_v33 = vsel %vm490_vm4, %v8529_v52, %v7334_v27  ;;  %v1330_v14 = vsel %vm490_vm4, %v8485_v37, %v7333_v28  ;;  %v7322_v34 = vpop.permute.xlu1 %7321 }
 0x246   : > { %v7324_v36 = vunpack.i.h.bf16 %v7322_v34  ;;  %v7323_v22 = vunpack.i.l.bf16 %v7322_v34  ;;  %v7337_v38 = vpop.permute.xlu0 %7336  ;;  %v1338_v37 = vsel %vm512_vm14, %v1330_v14, %v7308_v32  ;;  %v1339_v45 = vsel %vm512_vm14, %v1331_v33, %v7309_v30 }
 0x247   : > { %v7339_v41 = vunpack.i.h.bf16 %v7337_v38  ;;  %v7338_v42 = vunpack.i.l.bf16 %v7337_v38 }
 0x248   : > { %v1313_v43 = vsel %vm512_vm14, %v1305_v40, %v7323_v22  ;;  %v1314_v52 = vsel %vm512_vm14, %v1306_v39, %v7324_v36 }
 0x249   : > { %v1322_v46 = vsel %vm1321_vm15, %v1313_v43, %v7313_v35  ;;  %v1323_v47 = vsel %vm1321_vm15, %v1314_v52, %v7314_v17  ;;  %v1346_v48 = vsel %vm1321_vm15, %v1338_v37, %v7338_v42  ;;  %v1347_v6 = vsel %vm1321_vm15, %v1339_v45, %v7339_v41  ;;  %v7342_v54 = vpop.permute.xlu1 %7341 }
 0x24a   : > { %v1354_v50 = vpack.c.bf16 %v1323_v47, %v1322_v46  ;;  %v1355_v1 = vpack.c.bf16 %v1347_v6, %v1346_v48  ;;  %v7344_v58 = vunpack.i.h.bf16 %v7342_v54  ;;  %v7343_v13 = vunpack.i.l.bf16 %v7342_v54 }
 0x24c   : > { %1561 = vmatprep.mubr.bf16.mxu1 %v1355_v1  ;;  %v1308_v63 = vsel %vm490_vm4, %v8442_v4, %v7344_v58  ;;  %v1307_v2 = vsel %vm490_vm4, %v8459_v19, %v7343_v13  ;;  %v1332_v4 = vsel %vm490_vm4, %v8533_v56, %v7328_v62 }
 0x24d   : > { %1562 = vmatmul.mubr.bf16.vlgmr.msra.gmra.mrb[8].mxu1 %v1354_v50  ;;  %v7347_v55 = vpop.permute.xlu1 %7346 }
 0x24e   : > { %v7349_v59 = vunpack.i.h.bf16 %v7347_v55  ;;  %v7348_v31 = vunpack.i.l.bf16 %v7347_v55 }
 0x250   : > { %v1315_v12 = vsel %vm512_vm14, %v1307_v2, %v7348_v31  ;;  %v1316_v18 = vsel %vm512_vm14, %v1308_v63, %v7349_v59 }
 0x251   : > { %v1324_v30 = vsel %vm1321_vm15, %v1315_v12, %v7303_v24  ;;  %v1325_v32 = vsel %vm1321_vm15, %v1316_v18, %v7304_v21 }
 0x252   : > { %v1357_v34 = vpack.c.bf16 %v1325_v32, %v1324_v30 }
 0x258   : > { %v7352_v57 = vpop.permute.xlu0 %7351 }
 0x259   : > { %v7354_v3 = vunpack.i.h.bf16 %v7352_v57  ;;  %v7353_v5 = vunpack.i.l.bf16 %v7352_v57 }
 0x25a   : > { %v7362_v49 = vpop.permute.xlu1 %7361 }
 0x25b   : > { %v1341_v11 = vsel %vm512_vm14, %v1333_v23, %v7354_v3  ;;  %v1340_v27 = vsel %vm512_vm14, %v1332_v4, %v7353_v5  ;;  %v7364_v47 = vunpack.i.h.bf16 %v7362_v49  ;;  %v7363_v48 = vunpack.i.l.bf16 %v7362_v49 }
 0x25c   : > { %v7357_v60 = vpop.permute.xlu0 %7356 }
 0x25d   : > { %v7359_v6 = vunpack.i.h.bf16 %v7357_v60  ;;  %v7358_v50 = vunpack.i.l.bf16 %v7357_v60 }
 0x25e   : > { %v7372_v9 = vpop.permute.xlu1 %7371 }
 0x25f   : > { %v7374_v17 = vunpack.i.h.bf16 %v7372_v9  ;;  %v7373_v56 = vunpack.i.l.bf16 %v7372_v9 }
 0x260   : > { %v7367_v25 = vpop.permute.xlu0 %7366 }
 0x261   : > { %v7369_v26 = vunpack.i.h.bf16 %v7367_v25  ;;  %v7368_v19 = vunpack.i.l.bf16 %v7367_v25  ;;  %v1310_v41 = vsel %vm490_vm4, %v8554_v51, %v7374_v17  ;;  %v1309_v42 = vsel %vm490_vm4, %v8450_v10, %v7373_v56 }
 0x262   : > { %v7377_v28 = vpop.permute.xlu1 %7376 }
 0x263   : > { %v1348_v15 = vsel %vm1321_vm15, %v1340_v27, %v7368_v19  ;;  %v1349_v33 = vsel %vm1321_vm15, %v1341_v11, %v7369_v26  ;;  %v7379_v36 = vunpack.i.h.bf16 %v7377_v28  ;;  %v7378_v22 = vunpack.i.l.bf16 %v7377_v28 }
 0x264   : > { %v7382_v14 = vpop.permute.xlu0 %7381  ;;  %v1358_v44 = vpack.c.bf16 %v1349_v33, %v1348_v15 }
 0x265   : > { %v1317_v52 = vsel %vm512_vm14, %v1309_v42, %v7378_v22  ;;  %v1318_v37 = vsel %vm512_vm14, %v1310_v41, %v7379_v36  ;;  %v7384_v13 = vunpack.i.h.bf16 %v7382_v14  ;;  %v7383_v49 = vunpack.i.l.bf16 %v7382_v14  ;;  %v7506_v22 = vld [vmem:[%s9605_s6 + $0x40] sm:$0xff]   ;;  %v7510_v41 = vld [vmem:[%s9605_s6 + $0x50] sm:$0xff]  }
 0x266   : > { %v7407_v35 = vpop.permute.xlu1 %7406  ;;  %1569 = vmatprep.mubr.bf16.mxu1 %v1358_v44  ;;  %v1326_v57 = vsel %vm1321_vm15, %v1317_v52, %v7363_v48  ;;  %v1327_v58 = vsel %vm1321_vm15, %v1318_v37, %v7364_v47  ;;  %6555 = vmatprep.subr.bf16.mxu0 %v7506_v22  ;;  %v7511_v42 = vld [vmem:[%s9605_s6 + $0x10] sm:$0xff]   ;;  %v7513_v52 = vld [vmem:[%s9605_s6 + $0x18] sm:$0xff]   ;;  %v7514_v37 = vld [vmem:[%s9605_s6 + $0x60] sm:$0xff]  }
 0x267   : > { %1570 = vmatmul.mubr.bf16.gmra.mrb[12].mxu1 %v1357_v34  ;;  %v7409_v31 = vunpack.i.h.bf16 %v7407_v35  ;;  %v7408_v60 = vunpack.i.l.bf16 %v7407_v35  ;;  %v1360_v3 = vpack.c.bf16 %v1327_v58, %v1326_v57  ;;  %v1337_v21 = vsel %vm490_vm4, %v8614_v8, %v7384_v13  ;;  %v7517_v47 = vld [vmem:[%s9605_s6 + $0x28] sm:$0xff]   ;;  %v7518_v48 = vld [vmem:[%s9605_s6 + $0x70] sm:$0xff]   ;;  %v8807_v22 = vld [vmem:[%s9605_s6 + $0x100] sm:$0xff]  }
 0x268   : > { %v7387_v38 = vpop.permute.xlu0 %7386  ;;  %v1336_v24 = vsel %vm490_vm4, %v8600_v53, %v7383_v49 }
 0x269   : > { %v7389_v39 = vunpack.i.h.bf16 %v7387_v38  ;;  %v7388_v40 = vunpack.i.l.bf16 %v7387_v38  ;;  %v1312_v25 = vsel %vm490_vm4, %v8549_v7, %v7409_v31  ;;  %v1311_v23 = vsel %vm490_vm4, %v8562_v29, %v7408_v60  ;;  %v7507_v38 = vld [vmem:[%s9605_s6] sm:$0xff]   ;;  %v8762_v60 = vld [vmem:[#allocation4 + $0x8] sm:$0x3] }
 0x26a   : > { %v7412_v43 = vpop.permute.xlu1 %7411  ;;  %6556 = vmatpush3.bf16.msra.mxu0 %v7507_v38  ;;  %v8760_v31 = vld [vmem:[#allocation4] sm:$0xff] }
 0x26b   : > { %v1335_v45 = vsel %vm490_vm4, %v8595_v20, %v7389_v39  ;;  %v1334_v46 = vsel %vm490_vm4, %v8571_v16, %v7388_v40  ;;  %v7414_v63 = vunpack.i.h.bf16 %v7412_v43  ;;  %v7413_v2 = vunpack.i.l.bf16 %v7412_v43  ;;  %v7508_v39 = vld [vmem:[%s9605_s6 + $0x48] sm:$0xff]   ;;  %v7512_v43 = vld [vmem:[%s9605_s6 + $0x58] sm:$0xff]  }
 0x26c   : > { %v7392_v1 = vpop.permute.xlu0 %7391  ;;  %v1342_v10 = vsel %vm512_vm14, %v1334_v46, %v7358_v50  ;;  %v1343_v55 = vsel %vm512_vm14, %v1335_v45, %v7359_v6  ;;  %v7509_v40 = vld [vmem:[%s9605_s6 + $0x8] sm:$0xff]   ;;  %6557 = vmatprep.subr.bf16.mxu0 %v7508_v39  ;;  %v7515_v45 = vld [vmem:[%s9605_s6 + $0x20] sm:$0xff]   ;;  %v7519_v6 = vld [vmem:[%s9605_s6 + $0x30] sm:$0xff]  }
 0x26d   : > { %v7394_v51 = vunpack.i.h.bf16 %v7392_v1  ;;  %v7393_v54 = vunpack.i.l.bf16 %v7392_v1  ;;  %v1319_v26 = vsel %vm512_vm14, %v1311_v23, %v7413_v2  ;;  %v1320_v19 = vsel %vm512_vm14, %v1312_v25, %v7414_v63  ;;  %v7516_v46 = vld [vmem:[%s9605_s6 + $0x68] sm:$0xff]   ;;  %v8755_v1 = vld [vmem:[%s9604_s5] ss:$0 sm:$0xff] }
 0x26e   : > { %v7417_v20 = vpop.permute.xlu1 %7416  ;;  %6558 = vmatpush3.bf16.msra.mxu0 %v7509_v40  ;;  %v1712_v63 = vrot.slane %v8760_v31, 1  ;;  %v1713_v2 = vrot.slane %v8762_v60, 1 }
 0x26f   : > { %v1350_v59 = vsel %vm1321_vm15, %v1342_v10, %v7393_v54  ;;  %v1351_v16 = vsel %vm1321_vm15, %v1343_v55, %v7394_v51  ;;  %v7419_v5 = vunpack.i.h.bf16 %v7417_v20  ;;  %v7418_v9 = vunpack.i.l.bf16 %v7417_v20  ;;  %6559 = vmatprep.subr.bf16.mxu0 %v7510_v41 }
 0x270   : > { %v7397_v61 = vpop.permute.xlu0 %7396  ;;  %v1361_v62 = vpack.c.bf16 %v1351_v16, %v1350_v59 }
 0x271   : > { %v7399_v12 = vunpack.i.h.bf16 %v7397_v61  ;;  %v7398_v18 = vunpack.i.l.bf16 %v7397_v61  ;;  %v1328_v30 = vsel %vm1321_vm15, %v1319_v26, %v7418_v9  ;;  %v1329_v53 = vsel %vm1321_vm15, %v1320_v19, %v7419_v5  ;;  %v7520_v61 = vld [vmem:[%s9605_s6 + $0x78] sm:$0xff]   ;;  %v7523_v5 = vld [vmem:[%s9605_s6 + $0x80] sm:$0xff]  }
 0x272   : > { %1577 = vmatprep.mubr.bf16.mxu1 %v1361_v62  ;;  %v1363_v15 = vpack.c.bf16 %v1329_v53, %v1328_v30  ;;  %6560 = vmatpush3.bf16.msra.mxu0 %v7511_v42  ;;  %v7521_v62 = vld [vmem:[%s9605_s6 + $0x38] sm:$0xff]   ;;  %v7527_v42 = vld [vmem:[%s9605_s6 + $0xd0] sm:$0xff]  }
 0x273   : > { %1578 = vmatmul.mubr.bf16.gmra.mrb[16].mxu1 %v1360_v3  ;;  %v1344_v28 = vsel %vm512_vm14, %v1336_v24, %v7398_v18  ;;  %v1345_v8 = vsel %vm512_vm14, %v1337_v21, %v7399_v12  ;;  %6561 = vmatprep.subr.bf16.mxu0 %v7512_v43  ;;  %v7522_v3 = vld [vmem:[%s9605_s6 + $0xc0] sm:$0xff]   ;;  %v1714_v18 = vsel %vm587_vm3, %v1712_v63, %v1713_v2 }
 0x274   : > { %v7402_v4 = vpop.permute.xlu0 %7401  ;;  %6595 = vmatprep.subr.bf16.mxu1 %v7522_v3 }
 0x275   : > { %v7404_v11 = vunpack.i.h.bf16 %v7402_v4  ;;  %v7403_v27 = vunpack.i.l.bf16 %v7402_v4  ;;  %6596 = vmatpush3.bf16.msra.mxu1 %v7523_v5  ;;  %v7533_v5 = vld [vmem:[%s9605_s6 + $0xa0] sm:$0xff]  }
 0x276   : > { %6562 = vmatpush3.bf16.msra.mxu0 %v7513_v52 }
 0x277   : > { %v1352_v7 = vsel %vm1321_vm15, %v1344_v28, %v7403_v27  ;;  %v1353_v32 = vsel %vm1321_vm15, %v1345_v8, %v7404_v11  ;;  %6563 = vmatprep.subr.bf16.mxu0 %v7514_v37 }
 0x278   : > { %v1364_v29 = vpack.c.bf16 %v1353_v32, %v1352_v7 }
 0x27a   : > { %1585 = vmatprep.mubr.bf16.mxu1 %v1364_v29  ;;  %6564 = vmatpush3.bf16.msra.mxu0 %v7515_v45  ;;  %v7528_v45 = vld [vmem:[%s9605_s6 + $0x90] sm:$0xff]  }
 0x27b   : > { %1586 = vmatmul.mubr.bf16.gmra.mrb[20].mxu1 %v1363_v15  ;;  %6565 = vmatprep.subr.bf16.mxu0 %v7516_v46  ;;  %v7529_v46 = vld [vmem:[%s9605_s6 + $0xd8] sm:$0xff]  }
 0x27e   : > { %6566 = vmatpush3.bf16.msra.mxu0 %v7517_v47 }
 0x27f   : > { %6567 = vmatprep.subr.bf16.mxu0 %v7518_v48 }
 0x282   : > { %6568 = vmatpush3.bf16.msra.mxu0 %v7519_v6 }
 0x283   : > { %6569 = vmatprep.subr.bf16.mxu0 %v7520_v61 }
 0x286   : > { %6570 = vmatpush3.bf16.msra.mxu0 %v7521_v62 }
 0x287   : > { %7032 = vmatprep.subr.bf16.mxu0 %v8807_v22 }
 0x2bc   : > { %v8698_v33 = vpop.f32.mrb[0].mxu0 }
 0x2bd   : > { %v1628_v14 = vpop.f32.mrb[1].mxu0 }
 0x2be   : > { %v8700_v44 = vpop.f32.mrb[2].mxu0 }
 0x2bf   : > { %v1631_v34 = vpop.f32.mrb[3].mxu0 }
 0x2c4   : > { %v8702_v17 = vpop.f32.mrb[4].mxu0 }
 0x2c5   : > { %v8704_v56 = vpop.f32.mrb[5].mxu0 }
 0x2c6   : > { %v8706_v35 = vpop.f32.mrb[6].mxu0 }
 0x2c7   : > { %v8708_v36 = vpop.f32.mrb[7].mxu0 }
 0x320   : > { %v6525_v50 = vpop.f32.mrb[8].mxu1 }
 0x321   : > { %v6526_v51 = vpop.f32.mrb[9].mxu1 }
 0x322   : > { %v6527_v54 = vadd.f32 %v6526_v51, %v6525_v50  ;;  %v6528_v10 = vpop.f32.mrb[10].mxu1  ;;  %v7531_v51 = vld [vmem:[%s9605_s6 + $0x98] sm:$0xff]  }
 0x323   : > { %v6529_v55 = vpop.f32.mrb[11].mxu1 }
 0x324   : > { %v1564_v57 = vadd.f32 %v6527_v54, %v8755_v1  ;;  %v6530_v58 = vadd.f32 %v6529_v55, %v6528_v10 }
 0x326   : > { %v1629_v13 = vadd.f32 %v1628_v14, %v1564_v57  ;;  %v1567_v20 = vadd.f32 %v6530_v58, %v8755_v1 }
 0x328   : > { %v1659_v59 = vmax.f32 %v1629_v13, 0.0  ;;  %v1632_v16 = vadd.f32 %v1631_v34, %v1567_v20  ;;  %v7524_v34 = vld [vmem:[%s9605_s6 + $0xc8] sm:$0xff]  }
 0x329   : > { %6597 = vmatprep.subr.bf16.mxu1 %v7524_v34  ;;  %v7538_v34 = vld [vmem:[%s9605_s6 + $0xb0] sm:$0xff]  }
 0x32a   : > { %1668 = vst.msk [vmem:[#allocation4 + $0x11] sm:$0xff] %vm512_vm14, %v1659_v59  ;;  %v1660_v49 = vmax.f32 %v1632_v16, 0.0 }
 0x32c   : > { %1669 = vst.msk [vmem:[#allocation4 + $0x21] sm:$0xff] %vm512_vm14, %v1660_v49 }
 0x331   : > { %v8779_v9 = vld [vmem:[#allocation4 + $0x10] sm:$0xff]  ;;  %v8781_v12 = vld [vmem:[#allocation4 + $0x18] sm:$0x3] }
 0x332   : > { %v1715_v21 = vrot.slane %v8779_v9, 1  ;;  %v1716_v24 = vrot.slane %v8781_v12, 1 }
 0x333   : > { %v8786_v25 = vld [vmem:[#allocation4 + $0x20] sm:$0xff] }
 0x334   : > { %v7420_v23 = vpack.i.bf16 %v8786_v25, %v8779_v9  ;;  %v8791_v4 = vsel %vm587_vm3, %v1715_v21, %v1716_v24  ;;  %v1718_v52 = vrot.slane %v8786_v25, 1 }
 0x335   : > { %v7425_v26 = vpack.i.bf16 %v8791_v4, %v1714_v18 }
 0x336   : > { %7421 = vrot.lane.b32.xlu0 %v7420_v23, %s9634_s16 }
 0x337   : > { %7426 = vrot.lane.b32.xlu1 %v7425_v26, %s9634_s16 }
 0x33a   : > { %v6531_v19 = vpop.f32.mrb[12].mxu1 }
 0x33b   : > { %v6532_v11 = vpop.f32.mrb[13].mxu1 }
 0x33c   : > { %v6533_v27 = vadd.f32 %v6532_v11, %v6531_v19  ;;  %v6534_v28 = vpop.f32.mrb[14].mxu1  ;;  %v7534_v11 = vld [vmem:[%s9605_s6 + $0xe8] sm:$0xff]  }
 0x33d   : > { %v6535_v8 = vpop.f32.mrb[15].mxu1 }
 0x33e   : > { %v1572_v30 = vadd.f32 %v6533_v27, %v8755_v1  ;;  %v6536_v53 = vadd.f32 %v6535_v8, %v6534_v28  ;;  %v7536_v27 = vld [vmem:[%s9605_s6 + $0xa8] sm:$0xff]  }
 0x340   : > { %v1637_v7 = vadd.f32 %v8698_v33, %v1572_v30  ;;  %v1575_v32 = vadd.f32 %v6536_v53, %v8755_v1  ;;  %v7526_v33 = vld [vmem:[%s9605_s6 + $0x88] sm:$0xff]  }
 0x341   : > { %6598 = vmatpush3.bf16.msra.mxu1 %v7526_v33 }
 0x342   : > { %v1661_v29 = vmax.f32 %v1637_v7, 0.0  ;;  %v1640_v15 = vadd.f32 %v8700_v44, %v1575_v32  ;;  %v8813_v44 = vld [vmem:[#allocation4 + $0x28] sm:$0x3]  ;;  %6599 = vmatprep.subr.bf16.mxu1 %v7527_v42 }
 0x343   : > { %v1719_v37 = vrot.slane %v8813_v44, 1 }
 0x344   : > { %1670 = vst.msk [vmem:[#allocation4 + $0x31] sm:$0xff] %vm512_vm14, %v1661_v29  ;;  %v1662_v14 = vmax.f32 %v1640_v15, 0.0 }
 0x345   : > { %6600 = vmatpush3.bf16.msra.mxu1 %v7528_v45  ;;  %v8842_v13 = vsel %vm587_vm3, %v1718_v52, %v1719_v37  ;;  %v1742_v37 = vrot.slane %v8786_v25, 2  ;;  %v1743_v45 = vrot.slane %v8813_v44, 2 }
 0x346   : > { %1671 = vst.msk [vmem:[#allocation4 + $0x41] sm:$0xff] %vm512_vm14, %v1662_v14  ;;  %v6537_v38 = vpop.f32.mrb[16].mxu1  ;;  %6601 = vmatprep.subr.bf16.mxu1 %v7529_v46  ;;  %v7537_v14 = vld [vmem:[%s9605_s6 + $0xf0] sm:$0xff]  }
 0x347   : > { %v6538_v39 = vpop.f32.mrb[17].mxu1 }
 0x348   : > { %v6539_v40 = vadd.f32 %v6538_v39, %v6537_v38  ;;  %v6540_v41 = vpop.f32.mrb[18].mxu1 }
 0x349   : > { %v6541_v43 = vpop.f32.mrb[19].mxu1  ;;  %6602 = vmatpush3.bf16.msra.mxu1 %v7531_v51  ;;  %v7541_v51 = vld [vmem:[%s9605_s6 + $0xb8] sm:$0xff]  }
 0x34a   : > { %v1580_v47 = vadd.f32 %v6539_v40, %v8755_v1  ;;  %v6542_v48 = vadd.f32 %v6541_v43, %v6540_v41 }
 0x34b   : > { %v8828_v6 = vld [vmem:[#allocation4 + $0x30] sm:$0xff]  ;;  %v8830_v50 = vld [vmem:[#allocation4 + $0x38] sm:$0x3] }
 0x34c   : > { %v1645_v54 = vadd.f32 %v8704_v56, %v1580_v47  ;;  %v1583_v10 = vadd.f32 %v6542_v48, %v8755_v1  ;;  %v1721_v55 = vrot.slane %v8828_v6, 1  ;;  %v1722_v57 = vrot.slane %v8830_v50, 1  ;;  %v7539_v48 = vld [vmem:[%s9605_s6 + $0xf8] sm:$0xff]  }
 0x34d   : > { %v8839_v58 = vld [vmem:[#allocation4 + $0x40] sm:$0xff]  ;;  %v8863_v23 = vld [vmem:[#allocation4 + $0x48] sm:$0x3] }
 0x34e   : > { %v1663_v20 = vmax.f32 %v1645_v54, 0.0  ;;  %v1648_v59 = vadd.f32 %v8708_v36, %v1583_v10  ;;  %v6543_v16 = vpop.f32.mrb[20].mxu1  ;;  %v7430_v49 = vpack.i.bf16 %v8839_v58, %v8828_v6  ;;  %v8848_v56 = vsel %vm587_vm3, %v1721_v55, %v1722_v57  ;;  %v7532_v36 = vld [vmem:[%s9605_s6 + $0xe0] sm:$0xff]  }
 0x34f   : > { %v6544_v61 = vpop.f32.mrb[21].mxu1  ;;  %v7435_v62 = vpack.i.bf16 %v8848_v56, %v8842_v13  ;;  %6603 = vmatprep.subr.bf16.mxu1 %v7532_v36  ;;  %v1724_v30 = vrot.slane %v8839_v58, 1  ;;  %v1725_v53 = vrot.slane %v8863_v23, 1  ;;  %v1739_v55 = vrot.slane %v8779_v9, 2 }
 0x350   : > { %1672 = vst.msk [vmem:[#allocation4 + $0x51] sm:$0xff] %vm512_vm14, %v1663_v20  ;;  %v1664_v63 = vmax.f32 %v1648_v59, 0.0  ;;  %v6545_v2 = vadd.f32 %v6544_v61, %v6543_v16  ;;  %v6546_v3 = vpop.f32.mrb[22].mxu1  ;;  %7431 = vrot.lane.b32.xlu0 %v7430_v49, %s9634_s16  ;;  %6604 = vmatpush3.bf16.msra.mxu1 %v7533_v5  ;;  %v1748_v16 = vrot.slane %v8839_v58, 2  ;;  %v1749_v49 = vrot.slane %v8863_v23, 2 }
 0x351   : > { %v6547_v18 = vpop.f32.mrb[23].mxu1  ;;  %7436 = vrot.lane.b32.xlu1 %v7435_v62, %s9634_s16  ;;  %6605 = vmatprep.subr.bf16.mxu1 %v7534_v11  ;;  %v8899_v39 = vsel %vm587_vm3, %v1724_v30, %v1725_v53  ;;  %v1740_v62 = vrot.slane %v8781_v12, 2 }
 0x352   : > { %1673 = vst.msk [vmem:[#allocation4 + $0x61] sm:$0xff] %vm512_vm14, %v1664_v63  ;;  %v1588_v21 = vadd.f32 %v6545_v2, %v8755_v1  ;;  %v6548_v24 = vadd.f32 %v6547_v18, %v6546_v3  ;;  %v8933_v63 = vsel %vm612_vm2, %v1742_v37, %v1743_v45  ;;  %v1745_v2 = vrot.slane %v8828_v6, 2 }
 0x353   : > { %v1746_v3 = vrot.slane %v8830_v50, 2 }
 0x354   : > { %v1653_v26 = vadd.f32 %v8702_v17, %v1588_v21  ;;  %v1591_v19 = vadd.f32 %v6548_v24, %v8755_v1  ;;  %v8880_v1 = vld [vmem:[#allocation4 + $0x98] sm:$0x3]  ;;  %6606 = vmatpush3.bf16.msra.mxu1 %v7536_v27 }
 0x355   : > { %6607 = vmatprep.subr.bf16.mxu1 %v7537_v14  ;;  %v1790_v52 = vrot.slane %v8880_v1, 2 }
 0x356   : > { %v1665_v28 = vmax.f32 %v1653_v26, 0.0  ;;  %v1656_v8 = vadd.f32 %v8706_v35, %v1591_v19  ;;  %v8885_v35 = vld [vmem:[#allocation4 + $0x90] sm:$0xff]  ;;  %v8952_v19 = vsel %vm612_vm2, %v1748_v16, %v1749_v49 }
 0x357   : > { %v8876_v7 = vld [vmem:[#allocation4 + $0x50] sm:$0xff]  ;;  %v8878_v17 = vld [vmem:[#allocation4 + $0x58] sm:$0x3]  ;;  %v1789_v43 = vrot.slane %v8885_v35, 2  ;;  %v1786_v57 = vrot.slane %v8885_v35, 1 }
 0x358   : > { %1674 = vst.msk [vmem:[#allocation4 + $0x71] sm:$0xff] %vm512_vm14, %v1665_v28  ;;  %v1666_v32 = vmax.f32 %v1656_v8, 0.0  ;;  %v1727_v29 = vrot.slane %v8876_v7, 1  ;;  %v1728_v15 = vrot.slane %v8878_v17, 1  ;;  %6608 = vmatpush3.bf16.msra.mxu1 %v7538_v34  ;;  %v1787_v28 = vrot.slane %v8880_v1, 1 }
 0x359   : > { %v8893_v33 = vld [vmem:[#allocation4 + $0x60] sm:$0xff]  ;;  %v1689_v42 = vld [vmem:[#allocation4 + $0x68] sm:$0x3]  ;;  %v8924_v44 = vsel %vm612_vm2, %v1789_v43, %v1790_v52  ;;  %6609 = vmatprep.subr.bf16.mxu1 %v7539_v48  ;;  %v1741_v8 = vsel %vm612_vm2, %v1739_v55, %v1740_v62  ;;  %v1751_v30 = vrot.slane %v8876_v7, 2  ;;  %v1752_v53 = vrot.slane %v8878_v17, 2 }
 0x35a   : > { %1675 = vst.msk [vmem:[#allocation4 + $0x81] sm:$0xff] %vm512_vm14, %v1666_v32  ;;  %v7440_v38 = vpack.i.bf16 %v8893_v33, %v8876_v7  ;;  %v8902_v40 = vsel %vm587_vm3, %v1727_v29, %v1728_v15  ;;  %v1730_v46 = vrot.slane %v8893_v33, 1  ;;  %v1731_v47 = vrot.slane %v1689_v42, 1 }
 0x35b   : > { %v7445_v41 = vpack.i.bf16 %v8902_v40, %v8899_v39  ;;  %v1754_v12 = vrot.slane %v8893_v33, 2  ;;  %v1755_v23 = vrot.slane %v1689_v42, 2  ;;  %v7460_v29 = vpack.i.bf16 %v8933_v63, %v1741_v8 }
 0x35c   : > { %7441 = vrot.lane.b32.xlu0 %v7440_v38, %s9634_s16  ;;  %6610 = vmatpush3.bf16.msra.mxu1 %v7541_v51  ;;  %v8940_v18 = vsel %vm587_vm3, %v1730_v46, %v1731_v47  ;;  %v8965_v15 = vsel %vm612_vm2, %v1745_v2, %v1746_v3  ;;  %v1788_v38 = vsel %vm587_vm3, %v1786_v57, %v1787_v28  ;;  %v1737_v47 = vrot.slane %v8762_v60, 2 }
 0x35d   : > { %7446 = vrot.lane.b32.xlu1 %v7445_v41, %s9634_s16  ;;  %7048 = vmatprep.subr.bf16.mxu1 %v7913_v0  ;;  %v7465_v1 = vpack.i.bf16 %v8952_v19, %v8965_v15  ;;  %v8972_v34 = vsel %vm612_vm2, %v1754_v12, %v1755_v23  ;;  %v8981_v41 = vsel %vm612_vm2, %v1751_v30, %v1752_v53  ;;  %v1736_v48 = vrot.slane %v8760_v31, 2  ;;  %v7535_v12 = vld [vmem:[%s9605_s6 + $0x110] sm:$0xff]  }
 0x35e   : > { %v7470_v52 = vpack.i.bf16 %v8972_v34, %v8981_v41 }
 0x35f   : > { %v8919_v54 = vld [vmem:[#allocation4 + $0x70] sm:$0xff]  ;;  %v1691_v10 = vld [vmem:[#allocation4 + $0x78] sm:$0x3] }
 0x360   : > { %v1733_v20 = vrot.slane %v8919_v54, 1  ;;  %v1734_v59 = vrot.slane %v1691_v10, 1  ;;  %v1757_v42 = vrot.slane %v8919_v54, 2  ;;  %v1758_v43 = vrot.slane %v1691_v10, 2 }
 0x361   : > { %v8929_v61 = vld [vmem:[#allocation4 + $0x80] sm:$0xff]  ;;  %v1693_v36 = vld [vmem:[#allocation4 + $0x88] sm:$0x3]  ;;  %v1738_v10 = vsel %vm612_vm2, %v1736_v48, %v1737_v47 }
 0x362   : > { %v7450_v5 = vpack.i.bf16 %v8929_v61, %v8919_v54  ;;  %v8943_v21 = vsel %vm587_vm3, %v1733_v20, %v1734_v59  ;;  %v1781_v50 = vrot.slane %v8929_v61, 2  ;;  %v1782_v26 = vrot.slane %v1693_v36, 2 }
 0x363   : > { %v7455_v24 = vpack.i.bf16 %v8943_v21, %v8940_v18  ;;  %v1770_v11 = vrot.slane %v8929_v61, 1  ;;  %v1771_v27 = vrot.slane %v1693_v36, 1  ;;  %v8990_v45 = vsel %vm612_vm2, %v1757_v42, %v1758_v43 }
 0x364   : > { %7451 = vrot.lane.b32.xlu0 %v7450_v5, %s9634_s16  ;;  %v8961_v32 = vsel %vm612_vm2, %v1781_v50, %v1782_v26  ;;  %v7530_v5 = vld [vmem:[%s9605_s6 + $0x108] sm:$0xff]   ;;  %vm7924_vm2 = vmmov 0  }
 0x365   : > { %7456 = vrot.lane.b32.xlu1 %v7455_v24, %s9634_s16  ;;  %v1914_v14 = vpack.c.bf16 %v8924_v44, %v8961_v32  ;;  %v8976_v17 = vsel %vm587_vm3, %v1770_v11, %v1771_v27  ;;  %v7480_v46 = vpack.i.bf16 %v8961_v32, %v8990_v45  ;;  %v3730_v44 = vld [vmem:[%s9608_s9] sm:$0xf] }
 0x366   : > { %v7475_v37 = vpack.i.bf16 %v1788_v38, %v8976_v17  ;;  %v7542_v32 = vld [vmem:[#allocation6 + $0x40] sm:$0xff]  }
 0x368   : > { %7461 = vrot.lane.b32.xlu0 %v7460_v29, %s9634_s16 }
 0x369   : > { %7466 = vrot.lane.b32.xlu1 %v7465_v1, %s9634_s16 }
 0x36c   : > { %7471 = vrot.lane.b32.xlu0 %v7470_v52, %s9634_s16 }
 0x36d   : > { %7476 = vrot.lane.b32.xlu1 %v7475_v37, %s9634_s16 }
 0x370   : > { %7481 = vrot.lane.b32.xlu0 %v7480_v46, %s9634_s16 }
 0x3a8   : > { %v7422_v51 = vpop.permute.xlu0 %7421 }
 0x3a9   : > { %v7424_v55 = vunpack.i.h.bf16 %v7422_v51  ;;  %v7423_v57 = vunpack.i.l.bf16 %v7422_v51  ;;  %v7427_v20 = vpop.permute.xlu1 %7426 }
 0x3aa   : > { %v7429_v59 = vunpack.i.h.bf16 %v7427_v20  ;;  %v7428_v16 = vunpack.i.l.bf16 %v7427_v20 }
 0x3ab   : > { %v1880_v49 = vsel %vm512_vm14, %v1738_v10, %v7423_v57  ;;  %v1881_v62 = vsel %vm512_vm14, %v1741_v8, %v7424_v55 }
 0x3ac   : > { %v1873_v2 = vsel %vm512_vm14, %v8779_v9, %v7429_v59  ;;  %v1872_v60 = vsel %vm512_vm14, %v8760_v31, %v7428_v16  ;;  %v1899_v3 = vpack.c.bf16 %v1881_v62, %v1880_v49  ;;  %v7540_v31 = vld [vmem:[%s9605_s6 + $0x118] sm:$0xff]  }
 0x3ad   : > { %v1898_v36 = vpack.c.bf16 %v1873_v2, %v1872_v60 }
 0x3ae   : > { %2254 = vmatprep.mubr.bf16.mxu0 %v1899_v3 }
 0x3af   : > { %2255 = vmatmul.mubr.bf16.vlgmr.msra.gmra.mrb[8].mxu0 %v1898_v36 }
 0x3b0   : > { %7033 = vmatpush3.bf16.msra.mxu0 %v8807_v22 }
 0x3b1   : > { %7034 = vmatprep.subr.bf16.mxu0 %v7530_v5 }
 0x3b4   : > { %7035 = vmatpush3.bf16.msra.mxu0 %v7530_v5 }
 0x3b5   : > { %7036 = vmatprep.subr.bf16.mxu0 %v7535_v12 }
 0x3b8   : > { %7037 = vmatpush3.bf16.msra.mxu0 %v7535_v12  ;;  %v1902_v12 = vpack.c.bf16 %v8965_v15, %v8933_v63 }
 0x3b9   : > { %7038 = vmatprep.subr.bf16.mxu0 %v7540_v31 }
 0x3bc   : > { %7039 = vmatpush3.bf16.msra.mxu0 %v7540_v31 }
 0x3bd   : > { %6645 = vmatprep.subr.bf16.mxu0 %v7542_v32 }
 0x3c2   : > { %v7432_v9 = vpop.permute.xlu0 %7431 }
 0x3c3   : > { %v7434_v24 = vunpack.i.h.bf16 %v7432_v9  ;;  %v7433_v23 = vunpack.i.l.bf16 %v7432_v9  ;;  %v7437_v50 = vpop.permute.xlu1 %7436 }
 0x3c4   : > { %v7439_v26 = vunpack.i.h.bf16 %v7437_v50  ;;  %v7438_v22 = vunpack.i.l.bf16 %v7437_v50 }
 0x3c5   : > { %v1882_v11 = vsel %vm512_vm14, %v8933_v63, %v7433_v23  ;;  %v1883_v27 = vsel %vm512_vm14, %v8965_v15, %v7434_v24  ;;  %v1906_v23 = vpack.c.bf16 %v8981_v41, %v8952_v19 }
 0x3c6   : > { %v1903_v28 = vpack.c.bf16 %v1883_v27, %v1882_v11  ;;  %v1874_v8 = vsel %vm512_vm14, %v8786_v25, %v7438_v22  ;;  %v1875_v30 = vsel %vm512_vm14, %v8828_v6, %v7439_v26 }
 0x3c7   : > { %v1901_v53 = vpack.c.bf16 %v1875_v30, %v1874_v8 }
 0x3c8   : > { %2262 = vmatprep.mubr.bf16.mxu0 %v1903_v28 }
 0x3c9   : > { %2263 = vmatmul.mubr.bf16.gmra.mrb[12].mxu0 %v1901_v53  ;;  %2319 = vmatprep.mubr.bf16.mxu1 %v1901_v53 }
 0x3ce   : > { %v7442_v29 = vpop.permute.xlu0 %7441 }
 0x3cf   : > { %v7444_v1 = vunpack.i.h.bf16 %v7442_v29  ;;  %v7443_v38 = vunpack.i.l.bf16 %v7442_v29  ;;  %v7447_v42 = vpop.permute.xlu1 %7446 }
 0x3d0   : > { %v7449_v43 = vunpack.i.h.bf16 %v7447_v42  ;;  %v7448_v52 = vunpack.i.l.bf16 %v7447_v42  ;;  %v7544_v42 = vld [vmem:[#allocation6] sm:$0xff]  }
 0x3d1   : > { %v1884_v37 = vsel %vm512_vm14, %v8952_v19, %v7443_v38  ;;  %v1885_v46 = vsel %vm512_vm14, %v8981_v41, %v7444_v1  ;;  %v7543_v38 = vld [vmem:[#allocation6 + $0xc0] sm:$0xff]  }
 0x3d2   : > { %v1907_v25 = vpack.c.bf16 %v1885_v46, %v1884_v37  ;;  %v1876_v6 = vsel %vm512_vm14, %v8839_v58, %v7448_v52  ;;  %v1877_v47 = vsel %vm512_vm14, %v8876_v7, %v7449_v43  ;;  %v7545_v37 = vld [vmem:[#allocation6 + $0x80] sm:$0xff]   ;;  %v7546_v46 = vld [vmem:[#allocation6 + $0x48] sm:$0xff]  }
 0x3d3   : > { %v1905_v48 = vpack.c.bf16 %v1877_v47, %v1876_v6  ;;  %v7547_v6 = vld [vmem:[#allocation6 + $0xc8] sm:$0xff]  }
 0x3d4   : > { %2270 = vmatprep.mubr.bf16.mxu0 %v1907_v25  ;;  %v7548_v47 = vld [vmem:[#allocation6 + $0x8] sm:$0xff]  }
 0x3d5   : > { %2271 = vmatmul.mubr.bf16.gmra.mrb[16].mxu0 %v1905_v48 }
 0x3d6   : > { %v7452_v51 = vpop.permute.xlu0 %7451 }
 0x3d7   : > { %v7454_v10 = vunpack.i.h.bf16 %v7452_v51  ;;  %v7453_v55 = vunpack.i.l.bf16 %v7452_v51  ;;  %v7457_v57 = vpop.permute.xlu1 %7456 }
 0x3d8   : > { %v7459_v20 = vunpack.i.h.bf16 %v7457_v57  ;;  %v7458_v59 = vunpack.i.l.bf16 %v7457_v57 }
 0x3d9   : > { %v1886_v16 = vsel %vm512_vm14, %v8972_v34, %v7453_v55  ;;  %v1887_v49 = vsel %vm512_vm14, %v8990_v45, %v7454_v10 }
 0x3da   : > { %v7462_v62 = vpop.permute.xlu0 %7461  ;;  %v1911_v58 = vpack.c.bf16 %v1887_v49, %v1886_v16  ;;  %v1878_v7 = vsel %vm512_vm14, %v8893_v33, %v7458_v59  ;;  %v1879_v2 = vsel %vm512_vm14, %v8919_v54, %v7459_v20 }
 0x3db   : > { %v7464_v60 = vunpack.i.h.bf16 %v7462_v62  ;;  %v7463_v3 = vunpack.i.l.bf16 %v7462_v62  ;;  %v1909_v36 = vpack.c.bf16 %v1879_v2, %v1878_v7  ;;  %v7467_v5 = vpop.permute.xlu1 %7466 }
 0x3dc   : > { %2278 = vmatprep.mubr.bf16.mxu0 %v1911_v58  ;;  %v7469_v33 = vunpack.i.h.bf16 %v7467_v5  ;;  %v7468_v54 = vunpack.i.l.bf16 %v7467_v5 }
 0x3dd   : > { %v1889_v31 = vsel %vm512_vm14, %v8842_v13, %v7464_v60  ;;  %v1888_v9 = vsel %vm512_vm14, %v8791_v4, %v7463_v3  ;;  %2279 = vmatmul.mubr.bf16.gmra.mrb[20].mxu0 %v1909_v36  ;;  %v1910_v4 = vpack.c.bf16 %v8990_v45, %v8972_v34 }
 0x3de   : > { %v1900_v24 = vpack.c.bf16 %v1889_v31, %v1888_v9  ;;  %7040 = vmatprep.mubr.msk.bf16.mxu0 %vm512_vm14, %v1902_v12  ;;  %v1890_v63 = vsel %vm512_vm14, %v8848_v56, %v7468_v54  ;;  %v1891_v13 = vsel %vm512_vm14, %v8899_v39, %v7469_v33  ;;  %v7472_v15 = vpop.permute.xlu0 %7471  ;;  %v2425_v31 = vlaneseq }
 0x3df   : > { %v7477_v50 = vpop.permute.xlu1 %7476  ;;  %v1904_v26 = vpack.c.bf16 %v1891_v13, %v1890_v63  ;;  %v7474_v22 = vunpack.i.h.bf16 %v7472_v15  ;;  %v7473_v11 = vunpack.i.l.bf16 %v7472_v15  ;;  %v7925_v9 = vmov 1966171168  }
 0x3e0   : > { %2320 = vmatmul.mubr.bf16.vlgmr.msra.gmra.mrb[24].mxu1 %v1900_v24  ;;  %v7479_v27 = vunpack.i.h.bf16 %v7477_v50  ;;  %v7478_v19 = vunpack.i.l.bf16 %v7477_v50  ;;  %v2432_v24 = vunpack.c.l.s4 %v7925_v9  ;;  %vm9101_vm3 = vcmp.lt.s32.totalorder %v2425_v31, 64 }
 0x3e1   : > { %2327 = vmatprep.mubr.bf16.mxu1 %v1905_v48  ;;  %v1892_v56 = vsel %vm512_vm14, %v8902_v40, %v7473_v11  ;;  %v1893_v39 = vsel %vm512_vm14, %v8940_v18, %v7474_v22  ;;  %v7549_v48 = vld [vmem:[#allocation6 + $0x88] sm:$0xff]   ;;  %v9094_v22 = vshrl.u32 %v2425_v31, 7  ;;  %vm2456_vm4 = vcmp.ge.s32.totalorder %v2425_v31, 64 }
 0x3e2   : > { %v7482_v41 = vpop.permute.xlu0 %7481  ;;  %v1896_v34 = vsel %vm512_vm14, %v8929_v61, %v7478_v19  ;;  %v1897_v45 = vsel %vm512_vm14, %v8885_v35, %v7479_v27  ;;  %v1908_v28 = vpack.c.bf16 %v1893_v39, %v1892_v56  ;;  %vm2457_vm5 = vcmp.lt.s32.totalorder %v2425_v31, 128 }
 0x3e3   : > { %v7484_v8 = vunpack.i.h.bf16 %v7482_v41  ;;  %v7483_v30 = vunpack.i.l.bf16 %v7482_v41  ;;  %v1913_v40 = vpack.c.bf16 %v1897_v45, %v1896_v34  ;;  %vm9341_vm6 = vmand %vm2456_vm4, %vm2457_vm5 }
 0x3e5   : > { %7041 = vmatmul.mubr.msk.bf16.vlgmr.msra.gmra.mrb[24].mxu0 %vm512_vm14, %v1906_v23  ;;  %v1894_v18 = vsel %vm512_vm14, %v8943_v21, %v7483_v30  ;;  %v1895_v61 = vsel %vm512_vm14, %v8976_v17, %v7484_v8  ;;  %v3736_v21 = vsel %vm3734_vm1, %v3730_v44, 0  ;;  %v3728_v17 = vld [vmem:[%s466_s23] sm:$0x1]  ;;  %v7550_v8 = vld [vmem:[#allocation6 + $0x50] sm:$0xff]   ;;  %s7846_s23 = sshll.u32 %s7926_s17, 4  ;;  %s7847_s23 = int_to_ptr.vmem [resolvable:$false] %s7846_s23 }
 0x3e6   : > { %7044 = vmatprep.mubr.msk.bf16.mxu0 %vm512_vm14, %v1910_v4  ;;  %v1912_v53 = vpack.c.bf16 %v1895_v61, %v1894_v18  ;;  %7049 = vmatpush3.bf16.msra.mxu1 %v3736_v21  ;;  %v3729_v52 = vpack.c.bf16 %v3728_v17, %v3728_v17  ;;  %v7551_v30 = vld [vmem:[#allocation6 + $0xd0] sm:$0xff]   ;;  %s7848_s27 = scalar_lea.vmem %s7847_s23, 32 }
 0x3e7   : > { %6667 = vmatprep.subr.bf16.mxu1 %v7543_v38  ;;  %6646 = vmatpush3.bf16.msra.mxu0 %v7544_v42 }
 0x3e8   : > { %2328 = vmatmul.mubr.bf16.gmra.mrb[28].mxu1 %v1904_v26  ;;  %6647 = vmatprep.subr.bf16.mxu0 %v7546_v46  ;;  %v2433_v26 = vunpack.c.0.s8 %v2432_v24  ;;  %v7556_v46 = vld [vmem:[#allocation6 + $0x18] sm:$0xff]   ;;  %v7558_v24 = vld [vmem:[#allocation6 + $0x60] sm:$0xff]  }
 0x3e9   : > { %2335 = vmatprep.mubr.bf16.mxu1 %v1909_v36  ;;  %v9086_v36 = vld [vmem:[%s9606_s7] ss:$0 sm:$0xff] }
 0x3ea   : > { %v9098_v45 = vsub.s32 %v2433_v26, %v9094_v22 }
 0x3eb   : > { %6648 = vmatpush3.bf16.msra.mxu0 %v7548_v47 }
 0x3ec   : > { %6649 = vmatprep.subr.bf16.mxu0 %v7550_v8 }
 0x3ed   : > { %7045 = vmatmul.mubr.msk.bf16.gmra.mrb[28].mxu0 %vm512_vm14, %v1914_v14 }
 0x3f0   : > { %2336 = vmatmul.mubr.bf16.gmra.mrb[32].mxu1 %v1908_v28 }
 0x3f1   : > { %2343 = vmatprep.mubr.bf16.mxu1 %v1913_v40  ;;  %v7552_v40 = vld [vmem:[#allocation6 + $0x10] sm:$0xff]  }
 0x3f2   : > { %6650 = vmatpush3.bf16.msra.mxu0 %v7552_v40 }
 0x3f8   : > { %2344 = vmatmul.mubr.bf16.gmra.mrb[36].mxu1 %v1912_v53 }
 0x3f9   : > { %7050 = vmatprep.mubr.msk.bf16.mxu1 %vm7924_vm2, %v7913_v0 }
 0x400   : > { %7051 = vmatmul.mubr.msk.bf16.vlgmr.msra.gmra.mrb[40].mxu1 %vm853_vm7, %v3729_v52  ;;  %v7554_v52 = vld [vmem:[#allocation6 + $0x58] sm:$0xff]  }
 0x401   : > { %6668 = vmatpush3.bf16.msra.mxu1 %v7545_v37  ;;  %v7555_v37 = vld [vmem:[#allocation6 + $0xd8] sm:$0xff]   ;;  %6651 = vmatprep.subr.bf16.mxu0 %v7554_v52 }
 0x402   : > { %6669 = vmatprep.subr.bf16.mxu1 %v7547_v6  ;;  %6652 = vmatpush3.bf16.msra.mxu0 %v7556_v46 }
 0x403   : > { %6653 = vmatprep.subr.bf16.mxu0 %v7558_v24 }
 0x405   : > { %6670 = vmatpush3.bf16.msra.mxu1 %v7549_v48 }
 0x406   : > { %6671 = vmatprep.subr.bf16.mxu1 %v7551_v30 }
 0x482   : > { %v6571_v35 = vpop.f32.mrb[8].mxu0 }
 0x483   : > { %v6572_v29 = vpop.f32.mrb[9].mxu0 }
 0x484   : > { %v6573_v14 = vadd.f32 %v6572_v29, %v6571_v35  ;;  %v6574_v1 = vpop.f32.mrb[10].mxu0  ;;  %v7553_v35 = vld [vmem:[#allocation6 + $0x90] sm:$0xff]  }
 0x485   : > { %v6575_v43 = vpop.f32.mrb[11].mxu0  ;;  %6672 = vmatpush3.bf16.msra.mxu1 %v7553_v35 }
 0x486   : > { %v6576_v25 = vadd.f32 %v6575_v43, %v6574_v1  ;;  %v2257_v13 = vadd.f32 %v6573_v14, %v9086_v36  ;;  %6673 = vmatprep.subr.bf16.mxu1 %v7555_v37 }
 0x488   : > { %v2260_v11 = vadd.f32 %v6576_v25, %v9086_v36 }
 0x49c   : > { %v6577_v51 = vpop.f32.mrb[12].mxu0 }
 0x49d   : > { %v6578_v10 = vpop.f32.mrb[13].mxu0 }
 0x49e   : > { %v6579_v55 = vadd.f32 %v6578_v10, %v6577_v51  ;;  %v6580_v57 = vpop.f32.mrb[14].mxu0  ;;  %v7557_v51 = vld [vmem:[#allocation6 + $0x98] sm:$0xff]  }
 0x49f   : > { %v6581_v20 = vpop.f32.mrb[15].mxu0  ;;  %6674 = vmatpush3.bf16.msra.mxu1 %v7557_v51  ;;  %v7566_v51 = vld [vmem:[#allocation6 + $0x70] sm:$0xff]  }
 0x4a0   : > { %v6582_v59 = vadd.f32 %v6581_v20, %v6580_v57  ;;  %v2265_v14 = vadd.f32 %v6579_v55, %v9086_v36 }
 0x4a2   : > { %v2268_v25 = vadd.f32 %v6582_v59, %v9086_v36 }
 0x4a8   : > { %v6583_v16 = vpop.f32.mrb[16].mxu0 }
 0x4a9   : > { %v6584_v49 = vpop.f32.mrb[17].mxu0 }
 0x4aa   : > { %v6585_v62 = vadd.f32 %v6584_v49, %v6583_v16  ;;  %v6586_v58 = vpop.f32.mrb[18].mxu0 }
 0x4ab   : > { %v6587_v7 = vpop.f32.mrb[19].mxu0 }
 0x4ac   : > { %v9081_v2 = vadd.f32 %v6587_v7, %v6586_v58  ;;  %v2273_v6 = vadd.f32 %v6585_v62, %v9086_v36 }
 0x4b0   : > { %v6589_v60 = vpop.f32.mrb[20].mxu0 }
 0x4b1   : > { %v6590_v3 = vpop.f32.mrb[21].mxu0 }
 0x4b2   : > { %v9088_v5 = vadd.f32 %v6590_v3, %v6589_v60  ;;  %v6592_v12 = vpop.f32.mrb[22].mxu0 }
 0x4b3   : > { %v6593_v33 = vpop.f32.mrb[23].mxu0  ;;  %v6611_v54 = vpop.f32.mrb[24].mxu1 }
 0x4b4   : > { %v9090_v23 = vadd.f32 %v6593_v33, %v6592_v12  ;;  %v6612_v63 = vpop.f32.mrb[25].mxu1  ;;  %v7559_v33 = vld [vmem:[#allocation6 + $0xe0] sm:$0xff]  }
 0x4b5   : > { %v6613_v15 = vadd.f32 %v6612_v63, %v6611_v54  ;;  %v6614_v4 = vpop.f32.mrb[26].mxu1  ;;  %v7560_v54 = vld [vmem:[#allocation6 + $0x20] sm:$0xff]   ;;  %6675 = vmatprep.subr.bf16.mxu1 %v7559_v33 }
 0x4b6   : > { %v6615_v50 = vpop.f32.mrb[27].mxu1  ;;  %6654 = vmatpush3.bf16.msra.mxu0 %v7560_v54 }
 0x4b7   : > { %v6616_v27 = vadd.f32 %v6615_v50, %v6614_v4  ;;  %v2322_v19 = vadd.f32 %v6613_v15, %v2257_v13 }
 0x4b8   : > { %v7042_v56 = vpop.f32.mrb[24].mxu0 }
 0x4b9   : > { %v2386_v39 = vpop.f32.mrb[25].mxu0  ;;  %v2325_v41 = vadd.f32 %v6616_v27, %v2260_v11 }
 0x4ba   : > { %v2387_v34 = vadd.f32 %v2386_v39, %v2322_v19  ;;  %v7043_v28 = vpop.f32.mrb[26].mxu0 }
 0x4bb   : > { %v6617_v61 = vpop.f32.mrb[28].mxu1  ;;  %v2389_v53 = vpop.f32.mrb[27].mxu0 }
 0x4bc   : > { %v2417_v29 = vmax.f32 %v2387_v34, 0.0  ;;  %v2390_v44 = vadd.f32 %v2389_v53, %v2325_v41  ;;  %v6618_v32 = vpop.f32.mrb[29].mxu1  ;;  %v7561_v41 = vld [vmem:[#allocation6 + $0xa0] sm:$0xff]  }
 0x4bd   : > { %v6619_v1 = vadd.f32 %v6618_v32, %v6617_v61  ;;  %v6620_v21 = vpop.f32.mrb[30].mxu1  ;;  %v2276_v61 = vadd.f32 %v9081_v2, %v9086_v36  ;;  %6676 = vmatpush3.bf16.msra.mxu1 %v7561_v41 }
 0x4be   : > { %2429 = vst.msk [vmem:[#allocation5] sm:$0x1] %vm9101_vm3, %v2417_v29  ;;  %v2437_v17 = vrot.slane %v2417_v29, %v9098_v45  ;;  %v2468_v38 = vcombine.high %v2417_v29, %v2417_v29  ;;  %v2418_v42 = vmax.f32 %v2390_v44, 0.0  ;;  %v6621_v43 = vpop.f32.mrb[31].mxu1  ;;  %v7562_v44 = vld [vmem:[#allocation6 + $0x68] sm:$0xff]  }
 0x4bf   : > { %v2330_v47 = vadd.f32 %v6619_v1, %v2265_v14  ;;  %v6622_v48 = vadd.f32 %v6621_v43, %v6620_v21  ;;  %v7563_v21 = vld [vmem:[#allocation6 + $0xe8] sm:$0xff]   ;;  %6655 = vmatprep.subr.bf16.mxu0 %v7562_v44 }
 0x4c0   : > { %v2445_v10 = vrot.slane %v2437_v17, %v9098_v45  ;;  %v2475_v55 = vrot.slane %v2468_v38, %v9098_v45  ;;  %2505 = vst.msk [vmem:[#allocation5 + $0x4] sm:$0x1] %vm9101_vm3, %v2418_v42  ;;  %v2513_v57 = vrot.slane %v2418_v42, %v9098_v45  ;;  %v2541_v20 = vcombine.high %v2418_v42, %v2418_v42  ;;  %v9116_v16 = vpop.f32.mrb[28].mxu0  ;;  %v7564_v43 = vld [vmem:[#allocation6 + $0x28] sm:$0xff]  }
 0x4c1   : > { %v2395_v49 = vadd.f32 %v7042_v56, %v2330_v47  ;;  %v2333_v59 = vadd.f32 %v6622_v48, %v2268_v25  ;;  %v2402_v58 = vpop.f32.mrb[29].mxu0  ;;  %v2438_v62 = vcombine.high %v2437_v17, %v2437_v17  ;;  %6677 = vmatprep.subr.bf16.mxu1 %v7563_v21  ;;  %6656 = vmatpush3.bf16.msra.mxu0 %v7564_v43  ;;  %v7573_v21 = vld [vmem:[#allocation6 + $0xb8] sm:$0xff]  }
 0x4c2   : > { %v2460_v7 = vcombine.high %v2445_v10, %v2445_v10  ;;  %v2482_v60 = vrot.slane %v2475_v55, %v9098_v45  ;;  %v2521_v3 = vrot.slane %v2513_v57, %v9098_v45  ;;  %v9121_v12 = vrot.slane %v2541_v20, %v9098_v45  ;;  %v9123_v9 = vpop.f32.mrb[30].mxu0  ;;  %6657 = vmatprep.subr.bf16.mxu0 %v7566_v51 }
 0x4c3   : > { %v2419_v63 = vmax.f32 %v2395_v49, 0.0  ;;  %v2398_v13 = vadd.f32 %v7043_v28, %v2333_v59  ;;  %v6623_v15 = vpop.f32.mrb[32].mxu1  ;;  %v2405_v4 = vpop.f32.mrb[31].mxu0  ;;  %v2452_v50 = vrot.slane %v2438_v62, %v9098_v45  ;;  %v2485_v26 = vcombine.high %v2475_v55, %v2475_v55 }
 0x4c4   : > { %v2497_v11 = vcombine.high %v2482_v60, %v2482_v60  ;;  %2462 = vst.msk [vmem:[#allocation5 + $0x1] sm:$0x1] %vm9101_vm3, %v2460_v7  ;;  %2484 = vst.msk [vmem:[#allocation5 + $0x2] sm:$0x1] %vm9101_vm3, %v2482_v60  ;;  %v2533_v27 = vcombine.high %v2521_v3, %v2521_v3  ;;  %v2555_v19 = vrot.slane %v9121_v12, %v9098_v45  ;;  %v6624_v56 = vpop.f32.mrb[33].mxu1  ;;  %v7567_v3 = vld [vmem:[#allocation6 + $0xf0] sm:$0xff]  }
 0x4c5   : > { %v2514_v39 = vcombine.high %v2513_v57, %v2513_v57  ;;  %v2614_v34 = vcombine.high %v2419_v63, %v2419_v63  ;;  %2578 = vst.msk [vmem:[#allocation5 + $0x8] sm:$0x1] %vm9101_vm3, %v2419_v63  ;;  %v2420_v28 = vmax.f32 %v2398_v13, 0.0  ;;  %v6625_v8 = vadd.f32 %v6624_v56, %v6623_v15  ;;  %2453 = vrot.lane.b32.xlu1 %v2452_v50, %s9634_s16  ;;  %v6626_v30 = vpop.f32.mrb[34].mxu1  ;;  %v7569_v56 = vld [vmem:[#allocation6 + $0xb0] sm:$0xff]  }
 0x4c6   : > { %v2463_v40 = vcombine.high %v2452_v50, %v2452_v50  ;;  %2499 = vst.msk [vmem:[#allocation5 + $0x3] sm:$0x1] %vm9101_vm3, %v2497_v11  ;;  %v2570_v53 = vcombine.high %v2555_v19, %v2555_v19  ;;  %2535 = vst.msk [vmem:[#allocation5 + $0x5] sm:$0x1] %vm9101_vm3, %v2533_v27  ;;  %v6627_v35 = vpop.f32.mrb[35].mxu1  ;;  %v2492_v29 = vrot.slane %v2485_v26, %v9098_v45  ;;  %v7568_v50 = vld [vmem:[#allocation6 + $0x30] sm:$0xff]  }
 0x4c7   : > { %2557 = vst.msk [vmem:[#allocation5 + $0x6] sm:$0x1] %vm9101_vm3, %v2555_v19  ;;  %2651 = vst.msk [vmem:[#allocation5 + $0xc] sm:$0x1] %vm9101_vm3, %v2420_v28  ;;  %v2338_v32 = vadd.f32 %v6625_v8, %v2273_v6  ;;  %v6628_v2 = vadd.f32 %v6627_v35, %v6626_v30  ;;  %v2558_v14 = vcombine.high %v9121_v12, %v9121_v12  ;;  %v7565_v6 = vld [vmem:[#allocation6 + $0xa8] sm:$0xff]   ;;  %6658 = vmatpush3.bf16.msra.mxu0 %v7568_v50 }
 0x4c8   : > { %2464 = vrot.lane.b32.xlu0 %v2463_v40, %s9634_s16  ;;  %v9150_v1 = vrot.slane %v2419_v63, %v9098_v45  ;;  %2572 = vst.msk [vmem:[#allocation5 + $0x7] sm:$0x1] %vm9101_vm3, %v2570_v53  ;;  %v2687_v17 = vcombine.high %v2420_v28, %v2420_v28  ;;  %v2528_v38 = vrot.slane %v2514_v39, %v9098_v45 }
 0x4c9   : > { %v9156_v42 = vrot.slane %v2614_v34, %v9098_v45  ;;  %v2403_v52 = vadd.f32 %v2402_v58, %v2338_v32  ;;  %v2341_v37 = vadd.f32 %v6628_v2, %v2276_v61  ;;  %2493 = vrot.lane.b32.xlu1 %v2492_v29, %s9634_s16  ;;  %v2500_v46 = vcombine.high %v2492_v29, %v2492_v29  ;;  %v7570_v34 = vld [vmem:[#allocation6 + $0x78] sm:$0xff]  }
 0x4ca   : > { %v2594_v25 = vrot.slane %v9150_v1, %v9098_v45  ;;  %v9166_v48 = vrot.slane %v2420_v28, %v9098_v45  ;;  %v2565_v20 = vrot.slane %v2558_v14, %v9098_v45  ;;  %v2281_v59 = vadd.f32 %v9088_v5, %v9086_v36  ;;  %6678 = vmatpush3.bf16.msra.mxu1 %v7565_v6  ;;  %v7571_v61 = vld [vmem:[#allocation6 + $0xf8] sm:$0xff]  }
 0x4cb   : > { %v9163_v47 = vrot.slane %v9156_v42, %v9098_v45  ;;  %v2421_v10 = vmax.f32 %v2403_v52, 0.0  ;;  %v2406_v55 = vadd.f32 %v2405_v4, %v2341_v37  ;;  %v6629_v57 = vpop.f32.mrb[36].mxu1  ;;  %v2536_v62 = vcombine.high %v2528_v38, %v2528_v38  ;;  %6679 = vmatprep.subr.bf16.mxu1 %v7567_v3  ;;  %v7572_v29 = vld [vmem:[#allocation6 + $0x38] sm:$0xff]   ;;  %6659 = vmatprep.subr.bf16.mxu0 %v7570_v34  ;;  %v7575_v37 = vld [vmem:[#allocation6 + $0x1c0] sm:$0xff]  }
 0x4cc   : > { %2501 = vrot.lane.b32.xlu0 %v2500_v46, %s9634_s16  ;;  %v2606_v49 = vcombine.high %v2594_v25, %v2594_v25  ;;  %v6630_v58 = vpop.f32.mrb[37].mxu1  ;;  %v2667_v7 = vrot.slane %v9166_v48, %v9098_v45  ;;  %v9178_v60 = vrot.slane %v2687_v17, %v9098_v45  ;;  %v2587_v54 = vcombine.high %v9150_v1, %v9150_v1  ;;  %v7574_v17 = vld [vmem:[#allocation6 + $0x140] sm:$0xff]  }
 0x4cd   : > { %2630 = vst.msk [vmem:[#allocation5 + $0xa] sm:$0x1] %vm9101_vm3, %v9163_v47  ;;  %v2760_v12 = vcombine.high %v2421_v10, %v2421_v10  ;;  %2724 = vst.msk [vmem:[#allocation5 + $0x10] sm:$0x1] %vm9101_vm3, %v2421_v10  ;;  %v2422_v24 = vmax.f32 %v2406_v55, 0.0  ;;  %v6631_v5 = vadd.f32 %v6630_v58, %v6629_v57  ;;  %2529 = vrot.lane.b32.xlu1 %v2528_v38, %s9634_s16  ;;  %v6632_v33 = vpop.f32.mrb[38].mxu1  ;;  %6660 = vmatpush3.bf16.msra.mxu0 %v7572_v29 }
 0x4ce   : > { %2608 = vst.msk [vmem:[#allocation5 + $0x9] sm:$0x1] %vm9101_vm3, %v2606_v49  ;;  %v2284_v63 = vadd.f32 %v9090_v23, %v9086_v36  ;;  %v6633_v13 = vpop.f32.mrb[39].mxu1  ;;  %v2679_v15 = vcombine.high %v2667_v7, %v2667_v7  ;;  %v9191_v4 = vrot.slane %v9178_v60, %v9098_v45  ;;  %v2573_v19 = vcombine.high %v2565_v20, %v2565_v20 }
 0x4cf   : > { %v2833_v26 = vcombine.high %v2422_v24, %v2422_v24  ;;  %2797 = vst.msk [vmem:[#allocation5 + $0x14] sm:$0x1] %vm9101_vm3, %v2422_v24  ;;  %v2346_v11 = vadd.f32 %v6631_v5, %v2281_v59  ;;  %v6634_v27 = vadd.f32 %v6633_v13, %v6632_v33  ;;  %v2631_v36 = vcombine.high %v9156_v42, %v9156_v42 }
 0x4d0   : > { %2537 = vrot.lane.b32.xlu0 %v2536_v62, %s9634_s16  ;;  %2681 = vst.msk [vmem:[#allocation5 + $0xd] sm:$0x1] %vm9101_vm3, %v2679_v15  ;;  %2703 = vst.msk [vmem:[#allocation5 + $0xe] sm:$0x1] %vm9101_vm3, %v9191_v4  ;;  %v9204_v23 = vrot.slane %v2421_v10, %v9098_v45  ;;  %v9207_v39 = vrot.slane %v2760_v12, %v9098_v45  ;;  %v9210_v41 = vrot.slane %v2422_v24, %v9098_v45 }
 0x4d1   : > { %v2411_v28 = vadd.f32 %v9116_v16, %v2346_v11  ;;  %v2349_v8 = vadd.f32 %v6634_v27, %v2284_v63  ;;  %2566 = vrot.lane.b32.xlu1 %v2565_v20, %s9634_s16  ;;  %v2601_v30 = vrot.slane %v2587_v54, %v9098_v45  ;;  %v9216_v40 = vrot.slane %v2833_v26, %v9098_v45 }
 0x4d2   : > { %v2740_v53 = vrot.slane %v9204_v23, %v9098_v45  ;;  %v9222_v35 = vrot.slane %v9207_v39, %v9098_v45  ;;  %6680 = vmatpush3.bf16.msra.mxu1 %v7569_v56  ;;  %v2638_v32 = vrot.slane %v2631_v36, %v9098_v45  ;;  %v2660_v2 = vcombine.high %v9166_v48, %v9166_v48 }
 0x4d3   : > { %v2423_v44 = vmax.f32 %v2411_v28, 0.0  ;;  %v2414_v16 = vadd.f32 %v9123_v9, %v2349_v8  ;;  %v2813_v1 = vrot.slane %v9210_v41, %v9098_v45  ;;  %v2609_v42 = vcombine.high %v2601_v30, %v2601_v30  ;;  %6681 = vmatprep.subr.bf16.mxu1 %v7571_v61  ;;  %6689 = vmatprep.subr.bf16.mxu0 %v7574_v17 }
 0x4d4   : > { %2574 = vrot.lane.b32.xlu0 %v2573_v19, %s9634_s16  ;;  %v2752_v14 = vcombine.high %v2740_v53, %v2740_v53  ;;  %2776 = vst.msk [vmem:[#allocation5 + $0x12] sm:$0x1] %vm9101_vm3, %v9222_v35  ;;  %v2847_v43 = vrot.slane %v9216_v40, %v9098_v45  ;;  %v2646_v48 = vcombine.high %v2638_v32, %v2638_v32 }
 0x4d5   : > { %v2906_v9 = vcombine.high %v2423_v44, %v2423_v44  ;;  %2870 = vst.msk [vmem:[#allocation5 + $0x18] sm:$0x1] %vm9101_vm3, %v2423_v44  ;;  %v2424_v38 = vmax.f32 %v2414_v16, 0.0  ;;  %2602 = vrot.lane.b32.xlu1 %v2601_v30, %s9634_s16  ;;  %v2825_v52 = vcombine.high %v2813_v1, %v2813_v1  ;;  %v9247_v25 = vrot.slane %v2423_v44, %v9098_v45  ;;  %v7623_v16 = vld [vmem:[#allocation6 + $0x2e0] sm:$0xff]  }
 0x4d6   : > { %2754 = vst.msk [vmem:[#allocation5 + $0x11] sm:$0x1] %vm9101_vm3, %v2752_v14  ;;  %2849 = vst.msk [vmem:[#allocation5 + $0x16] sm:$0x1] %vm9101_vm3, %v2847_v43  ;;  %v2643_v10 = vcombine.high %v9163_v47, %v9163_v47  ;;  %6682 = vmatpush3.bf16.msra.mxu1 %v7573_v21  ;;  %v2674_v55 = vrot.slane %v2660_v2, %v9098_v45  ;;  %v2704_v57 = vcombine.high %v9178_v60, %v9178_v60 }
 0x4d7   : > { %v2979_v46 = vcombine.high %v2424_v38, %v2424_v38  ;;  %2943 = vst.msk [vmem:[#allocation5 + $0x1c] sm:$0x1] %vm9101_vm3, %v2424_v38  ;;  %v9250_v6 = vrot.slane %v2906_v9, %v9098_v45  ;;  %2827 = vst.msk [vmem:[#allocation5 + $0x15] sm:$0x1] %vm9101_vm3, %v2825_v52  ;;  %v9255_v51 = vrot.slane %v2424_v38, %v9098_v45  ;;  %6711 = vmatprep.subr.bf16.mxu1 %v7575_v37 }
 0x4d8   : > { %2610 = vrot.lane.b32.xlu0 %v2609_v42, %s9634_s16  ;;  %v2886_v20 = vrot.slane %v9247_v25, %v9098_v45  ;;  %2645 = vst.msk [vmem:[#allocation5 + $0xb] sm:$0x1] %vm9101_vm3, %v2643_v10  ;;  %v2682_v60 = vcombine.high %v2674_v55, %v2674_v55  ;;  %v2711_v3 = vrot.slane %v2704_v57, %v9098_v45  ;;  %v9366_v42 = vsub.s32 1, %v9094_v22 }
 0x4d9   : > { %2639 = vrot.lane.b32.xlu1 %v2638_v32, %s9634_s16  ;;  %v2920_v49 = vrot.slane %v9250_v6, %v9098_v45  ;;  %v2959_v59 = vrot.slane %v9255_v51, %v9098_v45  ;;  %v2986_v47 = vrot.slane %v2979_v46, %v9098_v45  ;;  %v2733_v12 = vcombine.high %v9204_v23, %v9204_v23 }
 0x4da   : > { %v2898_v58 = vcombine.high %v2886_v20, %v2886_v20  ;;  %v2716_v5 = vcombine.high %v9191_v4, %v9191_v4  ;;  %v2789_v33 = vcombine.high %v9222_v35, %v9222_v35  ;;  %v2862_v54 = vcombine.high %v2847_v43, %v2847_v43 }
 0x4db   : > { %2922 = vst.msk [vmem:[#allocation5 + $0x1a] sm:$0x1] %vm9101_vm3, %v2920_v49  ;;  %v2971_v62 = vcombine.high %v2959_v59, %v2959_v59  ;;  %v2996_v7 = vcombine.high %v2986_v47, %v2986_v47  ;;  %v2935_v63 = vcombine.high %v2920_v49, %v2920_v49  ;;  %v2993_v13 = vrot.slane %v2986_v47, %v9098_v45 }
 0x4dc   : > { %2647 = vrot.lane.b32.xlu0 %v2646_v48, %s9634_s16  ;;  %2900 = vst.msk [vmem:[#allocation5 + $0x19] sm:$0x1] %vm9101_vm3, %v2898_v58  ;;  %2718 = vst.msk [vmem:[#allocation5 + $0xf] sm:$0x1] %vm9101_vm3, %v2716_v5  ;;  %v2719_v15 = vcombine.high %v2711_v3, %v2711_v3  ;;  %v2747_v50 = vrot.slane %v2733_v12, %v9098_v45  ;;  %v2777_v4 = vcombine.high %v9207_v39, %v9207_v39  ;;  %v7577_v12 = vld [vmem:[#allocation6 + $0x180] sm:$0xff]   ;;  %v7578_v5 = vld [vmem:[#allocation6 + $0x148] sm:$0xff]  }
 0x4dd   : > { %2675 = vrot.lane.b32.xlu1 %v2674_v55, %s9634_s16  ;;  %2973 = vst.msk [vmem:[#allocation5 + $0x1d] sm:$0x1] %vm9101_vm3, %v2971_v62  ;;  %v3003_v24 = vrot.slane %v2996_v7, %v9098_v45  ;;  %2791 = vst.msk [vmem:[#allocation5 + $0x13] sm:$0x1] %vm9101_vm3, %v2789_v33  ;;  %v3008_v26 = vcombine.high %v2993_v13, %v2993_v13  ;;  %v2806_v19 = vcombine.high %v9210_v41, %v9210_v41  ;;  %v7579_v33 = vld [vmem:[#allocation6 + $0x1c8] sm:$0xff]  }
 0x4de   : > { %2864 = vst.msk [vmem:[#allocation5 + $0x17] sm:$0x1] %vm9101_vm3, %v2862_v54  ;;  %2937 = vst.msk [vmem:[#allocation5 + $0x1b] sm:$0x1] %vm9101_vm3, %v2935_v63  ;;  %v2755_v11 = vcombine.high %v2747_v50, %v2747_v50  ;;  %v2784_v27 = vrot.slane %v2777_v4, %v9098_v45  ;;  %v2850_v23 = vcombine.high %v9216_v40, %v9216_v40  ;;  %v9369_v43 = vsub.s32 3, %v9094_v22 }
 0x4df   : > { %2995 = vst.msk [vmem:[#allocation5 + $0x1e] sm:$0x1] %vm9101_vm3, %v2993_v13  ;;  %3010 = vst.msk [vmem:[#allocation5 + $0x1f] sm:$0x1] %vm9101_vm3, %v3008_v26  ;;  %v2820_v36 = vrot.slane %v2806_v19, %v9098_v45  ;;  %v2879_v41 = vcombine.high %v9247_v25, %v9247_v25  ;;  %v2923_v8 = vcombine.high %v9250_v6, %v9250_v6  ;;  %v9372_v52 = vsub.s32 0, %v9094_v22  ;;  %v7582_v26 = vld [vmem:[#allocation6 + $0x150] sm:$0xff]  }
 0x4e0   : > { %2683 = vrot.lane.b32.xlu0 %v2682_v60, %s9634_s16  ;;  %v2792_v56 = vcombine.high %v2784_v27, %v2784_v27  ;;  %v2857_v39 = vrot.slane %v2850_v23, %v9098_v45  ;;  %v2952_v61 = vcombine.high %v9255_v51, %v9255_v51  ;;  %v3011_v44 = vcombine.high %v3003_v24, %v3003_v24  ;;  %v7584_v19 = vld [vmem:[#allocation6 + $0x110] sm:$0xff]   ;;  %v7586_v23 = vld [vmem:[#allocation6 + $0x158] sm:$0xff]  }
 0x4e1   : > { %2712 = vrot.lane.b32.xlu1 %v2711_v3, %s9634_s16  ;;  %v2828_v18 = vcombine.high %v2820_v36, %v2820_v36  ;;  %v2893_v28 = vrot.slane %v2879_v41, %v9098_v45  ;;  %v2930_v40 = vrot.slane %v2923_v8, %v9098_v45  ;;  %v9375_v37 = vsub.s32 2, %v9094_v22  ;;  %v7576_v3 = vld [vmem:[#allocation6 + $0x100] sm:$0xff]   ;;  %v7588_v41 = vld [vmem:[#allocation6 + $0x118] sm:$0xff]  }
 0x4e2   : > { %v2865_v34 = vcombine.high %v2857_v39, %v2857_v39  ;;  %v2966_v35 = vrot.slane %v2952_v61, %v9098_v45  ;;  %v9378_v25 = vsub.s32 5, %v9094_v22  ;;  %v9381_v6 = vsub.s32 7, %v9094_v22  ;;  %v7590_v8 = vld [vmem:[#allocation6 + $0x160] sm:$0xff]  }
 0x4e3   : > { %v2901_v30 = vcombine.high %v2893_v28, %v2893_v28  ;;  %v2938_v53 = vcombine.high %v2930_v40, %v2930_v40 }
 0x4e4   : > { %2720 = vrot.lane.b32.xlu0 %v2719_v15, %s9634_s16  ;;  %v2974_v29 = vcombine.high %v2966_v35, %v2966_v35  ;;  %v7580_v15 = vld [vmem:[#allocation6 + $0x108] sm:$0xff]  }
 0x4e5   : > { %2748 = vrot.lane.b32.xlu1 %v2747_v50, %s9634_s16  ;;  %v7581_v50 = vld [vmem:[#allocation6 + $0x188] sm:$0xff]  }
 0x4e8   : > { %2756 = vrot.lane.b32.xlu0 %v2755_v11, %s9634_s16  ;;  %v7583_v11 = vld [vmem:[#allocation6 + $0x1d0] sm:$0xff]  }
 0x4e9   : > { %2785 = vrot.lane.b32.xlu1 %v2784_v27, %s9634_s16 }
 0x4ec   : > { %2793 = vrot.lane.b32.xlu0 %v2792_v56, %s9634_s16  ;;  %v7585_v56 = vld [vmem:[#allocation6 + $0x190] sm:$0xff]  }
 0x4ed   : > { %2821 = vrot.lane.b32.xlu1 %v2820_v36, %s9634_s16 }
 0x4f0   : > { %2829 = vrot.lane.b32.xlu0 %v2828_v18, %s9634_s16  ;;  %v7587_v18 = vld [vmem:[#allocation6 + $0x1d8] sm:$0xff]  }
 0x4f1   : > { %2858 = vrot.lane.b32.xlu1 %v2857_v39, %s9634_s16 }
 0x4f4   : > { %2866 = vrot.lane.b32.xlu0 %v2865_v34, %s9634_s16  ;;  %v7589_v34 = vld [vmem:[#allocation6 + $0x198] sm:$0xff]  }
 0x4f5   : > { %2894 = vrot.lane.b32.xlu1 %v2893_v28, %s9634_s16 }
 0x4f8   : > { %2902 = vrot.lane.b32.xlu0 %v2901_v30, %s9634_s16  ;;  %v7591_v30 = vld [vmem:[#allocation6 + $0x1e0] sm:$0xff]  }
 0x4f9   : > { %2931 = vrot.lane.b32.xlu1 %v2930_v40, %s9634_s16  ;;  %v9416_v40 = vsub.s32 6, %v9094_v22 }
 0x4fc   : > { %2939 = vrot.lane.b32.xlu0 %v2938_v53, %s9634_s16 }
 0x4fd   : > { %2967 = vrot.lane.b32.xlu1 %v2966_v35, %s9634_s16 }
 0x500   : > { %2975 = vrot.lane.b32.xlu0 %v2974_v29, %s9634_s16  ;;  %v7592_v29 = vld [vmem:[#allocation6 + $0x120] sm:$0xff]  }
 0x501   : > { %3004 = vrot.lane.b32.xlu1 %v3003_v24, %s9634_s16 }
 0x504   : > { %3012 = vrot.lane.b32.xlu0 %v3011_v44, %s9634_s16  ;;  %v7593_v44 = vld [vmem:[#allocation6 + $0x1a0] sm:$0xff]   ;;  %s458_s16 = scalar_lea.vmem [#allocation9], %s457_s22 }
 0x505   : > { %s6077_s20 = sshll.u32 %s458_s16, 4  ;;  %s9559_s20 = int_to_ptr.vmem [resolvable:$true] %s6077_s20 }
 0x506   : > { %s7842_s29 = scalar_lea.vmem %s9559_s20, 16  ;;  %p7849_p2 = scmp.lt.s32.totalorder %s9559_s20, %s7847_s23 }
 0x507   : > { %p7843_p6 = scmp.ne.s32.totalorder %s9559_s20, %s7842_s29  ;;  %p7850_p3 = scmp.lt.s32.totalorder %s7848_s27, %s7842_s29 }
 0x509   : > { %p7844_p10 = pnand %p7843_p6, %p9639_p9  ;;  %p7851_p4 = por %p7850_p3, %p7849_p2 }
 0x50b   : > { %p7845_p12 = pneg %p7844_p10 }
 0x50d   : > { %p7852_p7 = pnand %p7851_p4, %p7845_p12 }
 0x537   : > { %v2454_v45 = vpop.permute.xlu1 %2453 }
 0x538   : > { %2459 = vst.msk [vmem:[#allocation5] sm:$0x1] %vm9341_vm6, %v2454_v45 }
 0x53a   : > { %v2465_v32 = vpop.permute.xlu0 %2464 }
 0x53b   : > { %2467 = vst.msk [vmem:[#allocation5 + $0x1] sm:$0x1] %vm9341_vm6, %v2465_v32  ;;  %v2494_v2 = vpop.permute.xlu1 %2493  ;;  %v7594_v32 = vld [vmem:[#allocation6 + $0x168] sm:$0xff]  }
 0x53c   : > { %2496 = vst.msk [vmem:[#allocation5 + $0x2] sm:$0x1] %vm9341_vm6, %v2494_v2  ;;  %v7595_v2 = vld [vmem:[#allocation6 + $0x1e8] sm:$0xff]  }
 0x53e   : > { %v2502_v14 = vpop.permute.xlu0 %2501 }
 0x53f   : > { %2504 = vst.msk [vmem:[#allocation5 + $0x3] sm:$0x1] %vm9341_vm6, %v2502_v14  ;;  %v2530_v31 = vpop.permute.xlu1 %2529 }
 0x540   : > { %2532 = vst.msk [vmem:[#allocation5 + $0x4] sm:$0x1] %vm9341_vm6, %v2530_v31  ;;  %v7596_v31 = vld [vmem:[#allocation6 + $0x128] sm:$0xff]  }
 0x542   : > { %v2538_v1 = vpop.permute.xlu0 %2537 }
 0x543   : > { %2540 = vst.msk [vmem:[#allocation5 + $0x5] sm:$0x1] %vm9341_vm6, %v2538_v1  ;;  %v2567_v21 = vpop.permute.xlu1 %2566  ;;  %v7597_v1 = vld [vmem:[#allocation6 + $0x1a8] sm:$0xff]  }
 0x544   : > { %2569 = vst.msk [vmem:[#allocation5 + $0x6] sm:$0x1] %vm9341_vm6, %v2567_v21 }
 0x546   : > { %v2575_v17 = vpop.permute.xlu0 %2574 }
 0x547   : > { %2577 = vst.msk [vmem:[#allocation5 + $0x7] sm:$0x1] %vm9341_vm6, %v2575_v17  ;;  %v2603_v9 = vpop.permute.xlu1 %2602  ;;  %v7598_v17 = vld [vmem:[#allocation6 + $0x170] sm:$0xff]  }
 0x548   : > { %2605 = vst.msk [vmem:[#allocation5 + $0x8] sm:$0x1] %vm9341_vm6, %v2603_v9  ;;  %v7599_v9 = vld [vmem:[#allocation6 + $0x1f0] sm:$0xff]  }
 0x54a   : > { %v2611_v38 = vpop.permute.xlu0 %2610 }
 0x54b   : > { %2613 = vst.msk [vmem:[#allocation5 + $0x9] sm:$0x1] %vm9341_vm6, %v2611_v38  ;;  %v2640_v46 = vpop.permute.xlu1 %2639 }
 0x54c   : > { %2642 = vst.msk [vmem:[#allocation5 + $0xa] sm:$0x1] %vm9341_vm6, %v2640_v46  ;;  %v7600_v46 = vld [vmem:[#allocation6 + $0x130] sm:$0xff]  }
 0x54e   : > { %v2648_v48 = vpop.permute.xlu0 %2647  ;;  %v9385_v51 = vld [vmem:[#allocation5] sm:$0xff] }
 0x54f   : > { %2650 = vst.msk [vmem:[#allocation5 + $0xb] sm:$0x1] %vm9341_vm6, %v2648_v48  ;;  %v3031_v10 = vrot.slane %v9385_v51, %v9366_v42  ;;  %v3039_v55 = vrot.slane %v9385_v51, %v9369_v43  ;;  %v3027_v57 = vrot.slane %v9385_v51, %v9372_v52  ;;  %v3035_v20 = vrot.slane %v9385_v51, %v9375_v37  ;;  %v2676_v49 = vpop.permute.xlu1 %2675  ;;  %v7601_v48 = vld [vmem:[#allocation6 + $0x1b0] sm:$0xff]  }
 0x550   : > { %v3047_v59 = vrot.slane %v9385_v51, %v9378_v25  ;;  %v3055_v47 = vrot.slane %v9385_v51, %v9381_v6  ;;  %2678 = vst.msk [vmem:[#allocation5 + $0xc] sm:$0x1] %vm9341_vm6, %v2676_v49 }
 0x551   : > { %v3185_v58 = vpack.c.bf16 %v3031_v10, %v3031_v10  ;;  %v3187_v62 = vpack.c.bf16 %v3039_v55, %v3039_v55  ;;  %v3184_v7 = vpack.c.bf16 %v3027_v57, %v3027_v57  ;;  %v3186_v60 = vpack.c.bf16 %v3035_v20, %v3035_v20  ;;  %v7602_v55 = vld [vmem:[#allocation6 + $0x178] sm:$0xff]  }
 0x552   : > { %v2684_v24 = vpop.permute.xlu0 %2683  ;;  %v3189_v63 = vpack.c.bf16 %v3047_v59, %v3047_v59  ;;  %v3191_v13 = vpack.c.bf16 %v3055_v47, %v3055_v47  ;;  %v7603_v57 = vld [vmem:[#allocation6 + $0x1f8] sm:$0xff]   ;;  %v9437_v20 = vsub.s32 4, %v9094_v22  ;;  %v3051_v22 = vrot.slane %v9385_v51, %v9416_v40 }
 0x553   : > { %2686 = vst.msk [vmem:[#allocation5 + $0xd] sm:$0x1] %vm9341_vm6, %v2684_v24  ;;  %5346 = vmatprep.mubr.bf16.mxu0 %v3185_v58  ;;  %5386 = vmatprep.mubr.bf16.mxu1 %v3187_v62  ;;  %v2713_v54 = vpop.permute.xlu1 %2712  ;;  %v7604_v59 = vld [vmem:[#allocation6 + $0x138] sm:$0xff]  }
 0x554   : > { %5347 = vmatmul.mubr.bf16.vlgmr.msra.gmra.mrb[32].mxu0 %v3184_v7  ;;  %5387 = vmatmul.mubr.bf16.vlgmr.msra.gmra.mrb[44].mxu1 %v3186_v60  ;;  %2715 = vst.msk [vmem:[#allocation5 + $0xe] sm:$0x1] %vm9341_vm6, %v2713_v54  ;;  %v7605_v47 = vld [vmem:[#allocation6 + $0x1b8] sm:$0xff]   ;;  %v3043_v62 = vrot.slane %v9385_v51, %v9437_v20  ;;  %v7606_v7 = vld [vmem:[#allocation6 + $0x240] sm:$0xff]   ;;  %v3190_v54 = vpack.c.bf16 %v3051_v22, %v3051_v22 }
 0x555   : > { %6690 = vmatpush3.bf16.msra.mxu0 %v7576_v3  ;;  %6712 = vmatpush3.bf16.msra.mxu1 %v7577_v12  ;;  %v7607_v60 = vld [vmem:[#allocation6 + $0x2c0] sm:$0xff]  }
 0x556   : > { %5426 = vmatprep.mubr.bf16.mxu0 %v3189_v63  ;;  %5466 = vmatprep.mubr.bf16.mxu1 %v3191_v13  ;;  %v2721_v4 = vpop.permute.xlu0 %2720  ;;  %v3188_v51 = vpack.c.bf16 %v3043_v62, %v3043_v62  ;;  %v7609_v63 = vld [vmem:[#allocation6 + $0x280] sm:$0xff]  }
 0x557   : > { %2723 = vst.msk [vmem:[#allocation5 + $0xf] sm:$0x1] %vm9341_vm6, %v2721_v4  ;;  %6691 = vmatprep.subr.bf16.mxu0 %v7578_v5  ;;  %6713 = vmatprep.subr.bf16.mxu1 %v7579_v33  ;;  %v2749_v27 = vpop.permute.xlu1 %2748  ;;  %v7608_v5 = vld [vmem:[#allocation6 + $0x200] sm:$0xff]  }
 0x558   : > { %2751 = vst.msk [vmem:[#allocation5 + $0x10] sm:$0x1] %vm9341_vm6, %v2749_v27  ;;  %v7640_v62 = vld [vmem:[#allocation6 + $0x300] sm:$0xff]  }
 0x559   : > { %6692 = vmatpush3.bf16.msra.mxu0 %v7580_v15  ;;  %6714 = vmatpush3.bf16.msra.mxu1 %v7581_v50  ;;  %v7610_v15 = vld [vmem:[#allocation6 + $0x248] sm:$0xff]  }
 0x55a   : > { %v2757_v36 = vpop.permute.xlu0 %2756  ;;  %6693 = vmatprep.subr.bf16.mxu0 %v7582_v26  ;;  %6715 = vmatprep.subr.bf16.mxu1 %v7583_v11  ;;  %v7611_v50 = vld [vmem:[#allocation6 + $0x2c8] sm:$0xff]  }
 0x55b   : > { %2759 = vst.msk [vmem:[#allocation5 + $0x11] sm:$0x1] %vm9341_vm6, %v2757_v36  ;;  %v2786_v39 = vpop.permute.xlu1 %2785  ;;  %v7612_v11 = vld [vmem:[#allocation6 + $0x208] sm:$0xff]   ;;  %v7615_v36 = vld [vmem:[#allocation6 + $0x2d0] sm:$0xff]  }
 0x55c   : > { %2788 = vst.msk [vmem:[#allocation5 + $0x12] sm:$0x1] %vm9341_vm6, %v2786_v39  ;;  %v7618_v39 = vld [vmem:[#allocation6 + $0x258] sm:$0xff]  }
 0x55d   : > { %6694 = vmatpush3.bf16.msra.mxu0 %v7584_v19  ;;  %6716 = vmatpush3.bf16.msra.mxu1 %v7585_v56  ;;  %v7613_v19 = vld [vmem:[#allocation6 + $0x288] sm:$0xff]   ;;  %v7614_v56 = vld [vmem:[#allocation6 + $0x250] sm:$0xff]  }
 0x55e   : > { %v2794_v28 = vpop.permute.xlu0 %2793  ;;  %6695 = vmatprep.subr.bf16.mxu0 %v7586_v23  ;;  %6717 = vmatprep.subr.bf16.mxu1 %v7587_v18  ;;  %v9418_v61 = vld [vmem:[#allocation5 + $0x8] sm:$0xff]  ;;  %v7616_v23 = vld [vmem:[#allocation6 + $0x210] sm:$0xff]  }
 0x55f   : > { %2796 = vst.msk [vmem:[#allocation5 + $0x13] sm:$0x1] %vm9341_vm6, %v2794_v28  ;;  %v2822_v53 = vpop.permute.xlu1 %2821  ;;  %v9424_v35 = vrot.slane %v9418_v61, %v9416_v40  ;;  %v3063_v3 = vrot.slane %v9418_v61, %v9366_v42  ;;  %v3071_v24 = vrot.slane %v9418_v61, %v9369_v43  ;;  %v7617_v18 = vld [vmem:[#allocation6 + $0x290] sm:$0xff]   ;;  %v7621_v28 = vld [vmem:[#allocation6 + $0x298] sm:$0xff]   ;;  %v3087_v22 = vrot.slane %v9418_v61, %v9381_v6 }
 0x560   : > { %2824 = vst.msk [vmem:[#allocation5 + $0x14] sm:$0x1] %vm9341_vm6, %v2822_v53  ;;  %v7625_v53 = vld [vmem:[#allocation6 + $0x2a0] sm:$0xff]  }
 0x561   : > { %6696 = vmatpush3.bf16.msra.mxu0 %v7588_v41  ;;  %6718 = vmatpush3.bf16.msra.mxu1 %v7589_v34  ;;  %v3193_v13 = vpack.c.bf16 %v3063_v3, %v3063_v3  ;;  %v3195_v26 = vpack.c.bf16 %v3071_v24, %v3071_v24  ;;  %v7619_v41 = vld [vmem:[#allocation6 + $0x2d8] sm:$0xff]  }
 0x562   : > { %v2830_v45 = vpop.permute.xlu0 %2829  ;;  %6697 = vmatprep.subr.bf16.mxu0 %v7590_v8  ;;  %6719 = vmatprep.subr.bf16.mxu1 %v7591_v30  ;;  %v7620_v34 = vld [vmem:[#allocation6 + $0x218] sm:$0xff]   ;;  %v7622_v8 = vld [vmem:[#allocation6 + $0x260] sm:$0xff]  }
 0x563   : > { %2832 = vst.msk [vmem:[#allocation5 + $0x15] sm:$0x1] %vm9341_vm6, %v2830_v45  ;;  %v2859_v14 = vpop.permute.xlu1 %2858  ;;  %v7624_v30 = vld [vmem:[#allocation6 + $0x220] sm:$0xff]   ;;  %v7628_v45 = vld [vmem:[#allocation6 + $0x228] sm:$0xff]  }
 0x564   : > { %2861 = vst.msk [vmem:[#allocation5 + $0x16] sm:$0x1] %vm9341_vm6, %v2859_v14  ;;  %v9461_v14 = vpop.f32.mrb[40].mxu1 }
 0x565   : > { %6698 = vmatpush3.bf16.msra.mxu0 %v7592_v29  ;;  %6720 = vmatpush3.bf16.msra.mxu1 %v7593_v44  ;;  %v7626_v29 = vld [vmem:[#allocation6 + $0x268] sm:$0xff]  }
 0x566   : > { %v2867_v21 = vpop.permute.xlu0 %2866  ;;  %6699 = vmatprep.subr.bf16.mxu0 %v7594_v32  ;;  %6721 = vmatprep.subr.bf16.mxu1 %v7595_v2  ;;  %v7627_v44 = vld [vmem:[#allocation6 + $0x2e8] sm:$0xff]   ;;  %v7630_v2 = vld [vmem:[#allocation6 + $0x270] sm:$0xff]  }
 0x567   : > { %2869 = vst.msk [vmem:[#allocation5 + $0x17] sm:$0x1] %vm9341_vm6, %v2867_v21  ;;  %v2895_v38 = vpop.permute.xlu1 %2894  ;;  %v7629_v32 = vld [vmem:[#allocation6 + $0x2a8] sm:$0xff]  }
 0x568   : > { %2897 = vst.msk [vmem:[#allocation5 + $0x18] sm:$0x1] %vm9341_vm6, %v2895_v38  ;;  %v7633_v38 = vld [vmem:[#allocation6 + $0x2b0] sm:$0xff]  }
 0x569   : > { %6700 = vmatpush3.bf16.msra.mxu0 %v7596_v31  ;;  %6722 = vmatpush3.bf16.msra.mxu1 %v7597_v1  ;;  %v7631_v31 = vld [vmem:[#allocation6 + $0x2f0] sm:$0xff]   ;;  %v7052_v1 = vpop.f32.mrb[41].mxu1 }
 0x56a   : > { %v2903_v10 = vpop.permute.xlu0 %2902  ;;  %6701 = vmatprep.subr.bf16.mxu0 %v7598_v17  ;;  %6723 = vmatprep.subr.bf16.mxu1 %v7599_v9  ;;  %v3775_v21 = vpop.f32.mrb[42].mxu1  ;;  %v7632_v17 = vld [vmem:[#allocation6 + $0x230] sm:$0xff]   ;;  %v7671_v1 = vld [vmem:[#allocation6 + $0x4c0] sm:$0xff]  }
 0x56b   : > { %2905 = vst.msk [vmem:[#allocation5 + $0x19] sm:$0x1] %vm9341_vm6, %v2903_v10  ;;  %v2932_v49 = vpop.permute.xlu1 %2931  ;;  %v7053_v9 = vpop.f32.mrb[43].mxu1  ;;  %v7636_v10 = vld [vmem:[#allocation6 + $0x238] sm:$0xff]  }
 0x56c   : > { %2934 = vst.msk [vmem:[#allocation5 + $0x1a] sm:$0x1] %vm9341_vm6, %v2932_v49  ;;  %v7638_v49 = vld [vmem:[#allocation6 + $0x340] sm:$0xff]  }
 0x56d   : > { %6702 = vmatpush3.bf16.msra.mxu0 %v7600_v46  ;;  %6724 = vmatpush3.bf16.msra.mxu1 %v7601_v48  ;;  %v7634_v46 = vld [vmem:[#allocation6 + $0x278] sm:$0xff]  }
 0x56e   : > { %v2940_v58 = vpop.permute.xlu0 %2939  ;;  %6703 = vmatprep.subr.bf16.mxu0 %v7602_v55  ;;  %6725 = vmatprep.subr.bf16.mxu1 %v7603_v57  ;;  %v7635_v48 = vld [vmem:[#allocation6 + $0x2f8] sm:$0xff]   ;;  %v3059_v57 = vrot.slane %v9418_v61, %v9372_v52 }
 0x56f   : > { %2942 = vst.msk [vmem:[#allocation5 + $0x1b] sm:$0x1] %vm9341_vm6, %v2940_v58  ;;  %v2968_v12 = vpop.permute.xlu1 %2967  ;;  %v7637_v55 = vld [vmem:[#allocation6 + $0x2b8] sm:$0xff]   ;;  %v3079_v58 = vrot.slane %v9418_v61, %v9378_v25 }
 0x570   : > { %2970 = vst.msk [vmem:[#allocation5 + $0x1c] sm:$0x1] %vm9341_vm6, %v2968_v12  ;;  %v7642_v12 = vld [vmem:[#allocation6 + $0x348] sm:$0xff]  }
 0x571   : > { %6704 = vmatpush3.bf16.msra.mxu0 %v7604_v59  ;;  %6726 = vmatpush3.bf16.msra.mxu1 %v7605_v47  ;;  %v3067_v59 = vrot.slane %v9418_v61, %v9375_v37  ;;  %v7639_v47 = vld [vmem:[#allocation6 + $0x3c0] sm:$0xff]   ;;  %v3197_v24 = vpack.c.bf16 %v3079_v58, %v3079_v58  ;;  %v7679_v58 = vld [vmem:[#allocation6 + $0x4d0] sm:$0xff]  }
 0x572   : > { %v2976_v33 = vpop.permute.xlu0 %2975  ;;  %6733 = vmatprep.subr.bf16.mxu0 %v7606_v7  ;;  %6755 = vmatprep.subr.bf16.mxu1 %v7607_v60  ;;  %v3192_v7 = vpack.c.bf16 %v3059_v57, %v3059_v57  ;;  %v7641_v60 = vld [vmem:[#allocation6 + $0x380] sm:$0xff]  }
 0x573   : > { %2978 = vst.msk [vmem:[#allocation5 + $0x1d] sm:$0x1] %vm9341_vm6, %v2976_v33  ;;  %v3005_v4 = vpop.permute.xlu1 %3004  ;;  %v3194_v3 = vpack.c.bf16 %v3067_v59, %v3067_v59  ;;  %v3199_v33 = vpack.c.bf16 %v3087_v22, %v3087_v22  ;;  %v7677_v59 = vld [vmem:[#allocation6 + $0x488] sm:$0xff]   ;;  %v7682_v22 = vld [vmem:[#allocation6 + $0x458] sm:$0xff]  }
 0x574   : > { %5427 = vmatmul.mubr.bf16.vlgmr.msra.gmra.mrb[36].mxu0 %v3188_v51  ;;  %5467 = vmatmul.mubr.bf16.vlgmr.msra.gmra.mrb[48].mxu1 %v3190_v54  ;;  %3007 = vst.msk [vmem:[#allocation5 + $0x1e] sm:$0x1] %vm9341_vm6, %v3005_v4  ;;  %v7644_v51 = vld [vmem:[#allocation6 + $0x308] sm:$0xff]   ;;  %v7650_v4 = vld [vmem:[#allocation6 + $0x358] sm:$0xff]  }
 0x575   : > { %6734 = vmatpush3.bf16.msra.mxu0 %v7608_v5  ;;  %5506 = vmatprep.mubr.bf16.mxu0 %v3193_v13  ;;  %v7643_v5 = vld [vmem:[#allocation6 + $0x3c8] sm:$0xff]   ;;  %v7647_v13 = vld [vmem:[#allocation6 + $0x3d0] sm:$0xff]  }
 0x576   : > { %6756 = vmatpush3.bf16.msra.mxu1 %v7609_v63  ;;  %5546 = vmatprep.mubr.bf16.mxu1 %v3195_v26  ;;  %v3013_v27 = vpop.permute.xlu0 %3012  ;;  %v7645_v54 = vld [vmem:[#allocation6 + $0x388] sm:$0xff]   ;;  %v7646_v63 = vld [vmem:[#allocation6 + $0x350] sm:$0xff]   ;;  %v7651_v26 = vld [vmem:[#allocation6 + $0x3d8] sm:$0xff]  }
 0x577   : > { %3015 = vst.msk [vmem:[#allocation5 + $0x1f] sm:$0x1] %vm9341_vm6, %v3013_v27  ;;  %6735 = vmatprep.subr.bf16.mxu0 %v7610_v15  ;;  %6757 = vmatprep.subr.bf16.mxu1 %v7611_v50  ;;  %v7648_v15 = vld [vmem:[#allocation6 + $0x310] sm:$0xff]   ;;  %v7653_v27 = vld [vmem:[#allocation6 + $0x398] sm:$0xff]  }
 0x578   : > { %v7649_v50 = vld [vmem:[#allocation6 + $0x390] sm:$0xff]  }
 0x579   : > { %6736 = vmatpush3.bf16.msra.mxu0 %v7612_v11  ;;  %v7652_v11 = vld [vmem:[#allocation6 + $0x318] sm:$0xff]  }
 0x57a   : > { %6758 = vmatpush3.bf16.msra.mxu1 %v7613_v19  ;;  %6737 = vmatprep.subr.bf16.mxu0 %v7614_v56  ;;  %v7654_v19 = vld [vmem:[#allocation6 + $0x360] sm:$0xff]  }
 0x57b   : > { %6759 = vmatprep.subr.bf16.mxu1 %v7615_v36  ;;  %v7655_v56 = vld [vmem:[#allocation6 + $0x3e0] sm:$0xff]  }
 0x57c   : > { %v7656_v36 = vld [vmem:[#allocation6 + $0x320] sm:$0xff]  }
 0x57d   : > { %6738 = vmatpush3.bf16.msra.mxu0 %v7616_v23  ;;  %v7657_v23 = vld [vmem:[#allocation6 + $0x3a0] sm:$0xff]  }
 0x57e   : > { %6760 = vmatpush3.bf16.msra.mxu1 %v7617_v18  ;;  %6739 = vmatprep.subr.bf16.mxu0 %v7618_v39  ;;  %v7658_v18 = vld [vmem:[#allocation6 + $0x368] sm:$0xff]  }
 0x57f   : > { %6761 = vmatprep.subr.bf16.mxu1 %v7619_v41  ;;  %v7659_v39 = vld [vmem:[#allocation6 + $0x3e8] sm:$0xff]  }
 0x580   : > { %v7660_v41 = vld [vmem:[#allocation6 + $0x328] sm:$0xff]  }
 0x581   : > { %6740 = vmatpush3.bf16.msra.mxu0 %v7620_v34  ;;  %v7661_v34 = vld [vmem:[#allocation6 + $0x3a8] sm:$0xff]  }
 0x582   : > { %6762 = vmatpush3.bf16.msra.mxu1 %v7621_v28  ;;  %6741 = vmatprep.subr.bf16.mxu0 %v7622_v8  ;;  %v7662_v28 = vld [vmem:[#allocation6 + $0x370] sm:$0xff]  }
 0x583   : > { %6763 = vmatprep.subr.bf16.mxu1 %v7623_v16  ;;  %v7663_v8 = vld [vmem:[#allocation6 + $0x3f0] sm:$0xff]  }
 0x584   : > { %v7664_v16 = vld [vmem:[#allocation6 + $0x330] sm:$0xff]  }
 0x585   : > { %6742 = vmatpush3.bf16.msra.mxu0 %v7624_v30  ;;  %v7665_v30 = vld [vmem:[#allocation6 + $0x3b0] sm:$0xff]  }
 0x586   : > { %6764 = vmatpush3.bf16.msra.mxu1 %v7625_v53  ;;  %6743 = vmatprep.subr.bf16.mxu0 %v7626_v29  ;;  %v7666_v53 = vld [vmem:[#allocation6 + $0x378] sm:$0xff]  }
 0x587   : > { %6765 = vmatprep.subr.bf16.mxu1 %v7627_v44  ;;  %v7667_v29 = vld [vmem:[#allocation6 + $0x3f8] sm:$0xff]  }
 0x588   : > { %v7668_v44 = vld [vmem:[#allocation6 + $0x338] sm:$0xff]  }
 0x589   : > { %6744 = vmatpush3.bf16.msra.mxu0 %v7628_v45  ;;  %v9471_v45 = vld [vmem:[#allocation5 + $0x10] sm:$0xff] }
 0x58a   : > { %6766 = vmatpush3.bf16.msra.mxu1 %v7629_v32  ;;  %6745 = vmatprep.subr.bf16.mxu0 %v7630_v2  ;;  %v7669_v32 = vld [vmem:[#allocation6 + $0x3b8] sm:$0xff]   ;;  %v3075_v2 = vrot.slane %v9418_v61, %v9437_v20  ;;  %v3095_v21 = vrot.slane %v9471_v45, %v9366_v42  ;;  %v3103_v9 = vrot.slane %v9471_v45, %v9369_v43  ;;  %v7674_v61 = vld [vmem:[#allocation6 + $0x448] sm:$0xff]  }
 0x58b   : > { %6767 = vmatprep.subr.bf16.mxu1 %v7631_v31  ;;  %v7670_v31 = vld [vmem:[#allocation6 + $0x440] sm:$0xff]  }
 0x58c   : > { %v3203_v57 = vpack.c.bf16 %v3103_v9, %v3103_v9  ;;  %v7713_v9 = vld [vmem:[#allocation6 + $0x590] sm:$0xff]  }
 0x58d   : > { %6746 = vmatpush3.bf16.msra.mxu0 %v7632_v17  ;;  %v7672_v17 = vld [vmem:[#allocation6 + $0x400] sm:$0xff]  }
 0x58e   : > { %6768 = vmatpush3.bf16.msra.mxu1 %v7633_v38  ;;  %6747 = vmatprep.subr.bf16.mxu0 %v7634_v46  ;;  %v3196_v38 = vpack.c.bf16 %v3075_v2, %v3075_v2  ;;  %v7673_v46 = vld [vmem:[#allocation6 + $0x480] sm:$0xff]   ;;  %v7708_v2 = vld [vmem:[#allocation6 + $0x508] sm:$0xff]  }
 0x58f   : > { %6769 = vmatprep.subr.bf16.mxu1 %v7635_v48  ;;  %v3198_v48 = vpack.c.bf16 %v9424_v35, %v9424_v35  ;;  %v7681_v35 = vld [vmem:[#allocation6 + $0x490] sm:$0xff]  }
 0x591   : > { %6748 = vmatpush3.bf16.msra.mxu0 %v7636_v10  ;;  %v3201_v10 = vpack.c.bf16 %v3095_v21, %v3095_v21  ;;  %v7711_v21 = vld [vmem:[#allocation6 + $0x5d0] sm:$0xff]  }
 0x592   : > { %6770 = vmatpush3.bf16.msra.mxu1 %v7637_v55  ;;  %6777 = vmatprep.subr.bf16.mxu0 %v7638_v49  ;;  %v7675_v55 = vld [vmem:[#allocation6 + $0x4c8] sm:$0xff]  }
 0x593   : > { %6799 = vmatprep.subr.bf16.mxu1 %v7639_v47  ;;  %v7676_v49 = vld [vmem:[#allocation6 + $0x408] sm:$0xff]   ;;  %v7678_v47 = vld [vmem:[#allocation6 + $0x450] sm:$0xff]  }
 0x594   : > { %5507 = vmatmul.mubr.bf16.vlgmr.msra.gmra.mrb[40].mxu0 %v3192_v7  ;;  %v7683_v7 = vld [vmem:[#allocation6 + $0x4d8] sm:$0xff]  }
 0x595   : > { %5547 = vmatmul.mubr.bf16.vlgmr.msra.gmra.mrb[52].mxu1 %v3194_v3  ;;  %6778 = vmatpush3.bf16.msra.mxu0 %v7640_v62  ;;  %v7680_v62 = vld [vmem:[#allocation6 + $0x410] sm:$0xff]   ;;  %v7685_v3 = vld [vmem:[#allocation6 + $0x498] sm:$0xff]  }
 0x596   : > { %5586 = vmatprep.mubr.bf16.mxu0 %v3197_v24  ;;  %6800 = vmatpush3.bf16.msra.mxu1 %v7641_v60  ;;  %v7684_v60 = vld [vmem:[#allocation6 + $0x418] sm:$0xff]   ;;  %v7687_v24 = vld [vmem:[#allocation6 + $0x4e0] sm:$0xff]  }
 0x597   : > { %5626 = vmatprep.mubr.bf16.mxu1 %v3199_v33  ;;  %6779 = vmatprep.subr.bf16.mxu0 %v7642_v12  ;;  %v7686_v12 = vld [vmem:[#allocation6 + $0x460] sm:$0xff]  }
 0x598   : > { %6801 = vmatprep.subr.bf16.mxu1 %v7643_v5  ;;  %v7688_v5 = vld [vmem:[#allocation6 + $0x420] sm:$0xff]  }
 0x599   : > { %6780 = vmatpush3.bf16.msra.mxu0 %v7644_v51  ;;  %v7689_v33 = vld [vmem:[#allocation6 + $0x4a0] sm:$0xff]   ;;  %v7690_v51 = vld [vmem:[#allocation6 + $0x468] sm:$0xff]  }
 0x59a   : > { %6802 = vmatpush3.bf16.msra.mxu1 %v7645_v54  ;;  %6781 = vmatprep.subr.bf16.mxu0 %v7646_v63  ;;  %v7691_v54 = vld [vmem:[#allocation6 + $0x4e8] sm:$0xff]  }
 0x59b   : > { %6803 = vmatprep.subr.bf16.mxu1 %v7647_v13  ;;  %v7692_v63 = vld [vmem:[#allocation6 + $0x428] sm:$0xff]  }
 0x59c   : > { %v7693_v13 = vld [vmem:[#allocation6 + $0x4a8] sm:$0xff]  }
 0x59d   : > { %6782 = vmatpush3.bf16.msra.mxu0 %v7648_v15  ;;  %v7694_v15 = vld [vmem:[#allocation6 + $0x470] sm:$0xff]  }
 0x59e   : > { %6804 = vmatpush3.bf16.msra.mxu1 %v7649_v50  ;;  %6783 = vmatprep.subr.bf16.mxu0 %v7650_v4  ;;  %v7695_v50 = vld [vmem:[#allocation6 + $0x4f0] sm:$0xff]  }
 0x59f   : > { %6805 = vmatprep.subr.bf16.mxu1 %v7651_v26  ;;  %v7696_v4 = vld [vmem:[#allocation6 + $0x430] sm:$0xff]  }
 0x5a0   : > { %v7697_v26 = vld [vmem:[#allocation6 + $0x4b0] sm:$0xff]  }
 0x5a1   : > { %6784 = vmatpush3.bf16.msra.mxu0 %v7652_v11  ;;  %v7698_v11 = vld [vmem:[#allocation6 + $0x478] sm:$0xff]  }
 0x5a2   : > { %6806 = vmatpush3.bf16.msra.mxu1 %v7653_v27  ;;  %6785 = vmatprep.subr.bf16.mxu0 %v7654_v19  ;;  %v7699_v27 = vld [vmem:[#allocation6 + $0x4f8] sm:$0xff]  }
 0x5a3   : > { %6807 = vmatprep.subr.bf16.mxu1 %v7655_v56  ;;  %v7700_v19 = vld [vmem:[#allocation6 + $0x438] sm:$0xff]  }
 0x5a4   : > { %v7701_v56 = vld [vmem:[#allocation6 + $0x4b8] sm:$0xff]  }
 0x5a5   : > { %6786 = vmatpush3.bf16.msra.mxu0 %v7656_v36  ;;  %v3091_v36 = vrot.slane %v9471_v45, %v9372_v52 }
 0x5a6   : > { %6808 = vmatpush3.bf16.msra.mxu1 %v7657_v23  ;;  %6787 = vmatprep.subr.bf16.mxu0 %v7658_v18  ;;  %v7702_v23 = vld [vmem:[#allocation6 + $0x540] sm:$0xff]   ;;  %v3099_v18 = vrot.slane %v9471_v45, %v9375_v37 }
 0x5a7   : > { %6809 = vmatprep.subr.bf16.mxu1 %v7659_v39  ;;  %v7703_v39 = vld [vmem:[#allocation6 + $0x5c0] sm:$0xff]  }
 0x5a9   : > { %6788 = vmatpush3.bf16.msra.mxu0 %v7660_v41  ;;  %v3111_v41 = vrot.slane %v9471_v45, %v9378_v25 }
 0x5aa   : > { %6810 = vmatpush3.bf16.msra.mxu1 %v7661_v34  ;;  %6789 = vmatprep.subr.bf16.mxu0 %v7662_v28  ;;  %v7704_v34 = vld [vmem:[#allocation6 + $0x500] sm:$0xff]   ;;  %v3119_v28 = vrot.slane %v9471_v45, %v9381_v6 }
 0x5ab   : > { %6811 = vmatprep.subr.bf16.mxu1 %v7663_v8  ;;  %v3200_v8 = vpack.c.bf16 %v3091_v36, %v3091_v36  ;;  %v7739_v36 = vld [vmem:[#allocation6 + $0x6c8] sm:$0xff]  }
 0x5ad   : > { %6790 = vmatpush3.bf16.msra.mxu0 %v7664_v16  ;;  %v7705_v16 = vld [vmem:[#allocation6 + $0x580] sm:$0xff]  }
 0x5ae   : > { %6812 = vmatpush3.bf16.msra.mxu1 %v7665_v30  ;;  %6791 = vmatprep.subr.bf16.mxu0 %v7666_v53  ;;  %v3202_v30 = vpack.c.bf16 %v3099_v18, %v3099_v18  ;;  %v7706_v53 = vld [vmem:[#allocation6 + $0x548] sm:$0xff]   ;;  %v7742_v18 = vld [vmem:[#allocation6 + $0x650] sm:$0xff]  }
 0x5af   : > { %6813 = vmatprep.subr.bf16.mxu1 %v7667_v29  ;;  %v3205_v29 = vpack.c.bf16 %v3111_v41, %v3111_v41  ;;  %v7745_v41 = vld [vmem:[#allocation6 + $0x690] sm:$0xff]  }
 0x5b1   : > { %6792 = vmatpush3.bf16.msra.mxu0 %v7668_v44  ;;  %v7707_v44 = vld [vmem:[#allocation6 + $0x5c8] sm:$0xff]  }
 0x5b2   : > { %6814 = vmatpush3.bf16.msra.mxu1 %v7669_v32  ;;  %6821 = vmatprep.subr.bf16.mxu0 %v7670_v31  ;;  %v3207_v32 = vpack.c.bf16 %v3119_v28, %v3119_v28  ;;  %v7709_v31 = vld [vmem:[#allocation6 + $0x588] sm:$0xff]   ;;  %v7747_v28 = vld [vmem:[#allocation6 + $0x6d8] sm:$0xff]  }
 0x5b3   : > { %6843 = vmatprep.subr.bf16.mxu1 %v7671_v1  ;;  %v7710_v1 = vld [vmem:[#allocation6 + $0x550] sm:$0xff]  }
 0x5b4   : > { %5587 = vmatmul.mubr.bf16.vlgmr.msra.gmra.mrb[44].mxu0 %v3196_v38  ;;  %v7714_v38 = vld [vmem:[#allocation6 + $0x558] sm:$0xff]  }
 0x5b5   : > { %5627 = vmatmul.mubr.bf16.vlgmr.msra.gmra.mrb[56].mxu1 %v3198_v48  ;;  %6822 = vmatpush3.bf16.msra.mxu0 %v7672_v17  ;;  %v7712_v17 = vld [vmem:[#allocation6 + $0x510] sm:$0xff]   ;;  %v7716_v48 = vld [vmem:[#allocation6 + $0x518] sm:$0xff]  }
 0x5b6   : > { %5666 = vmatprep.mubr.bf16.mxu0 %v3201_v10  ;;  %6844 = vmatpush3.bf16.msra.mxu1 %v7673_v46  ;;  %v7715_v46 = vld [vmem:[#allocation6 + $0x5d8] sm:$0xff]   ;;  %v7718_v10 = vld [vmem:[#allocation6 + $0x560] sm:$0xff]  }
 0x5b7   : > { %5706 = vmatprep.mubr.bf16.mxu1 %v3203_v57  ;;  %6823 = vmatprep.subr.bf16.mxu0 %v7674_v61  ;;  %v7717_v61 = vld [vmem:[#allocation6 + $0x598] sm:$0xff]   ;;  %v7720_v57 = vld [vmem:[#allocation6 + $0x520] sm:$0xff]  }
 0x5b8   : > { %6845 = vmatprep.subr.bf16.mxu1 %v7675_v55  ;;  %v7719_v55 = vld [vmem:[#allocation6 + $0x5e0] sm:$0xff]  }
 0x5b9   : > { %6824 = vmatpush3.bf16.msra.mxu0 %v7676_v49  ;;  %v7721_v49 = vld [vmem:[#allocation6 + $0x5a0] sm:$0xff]  }
 0x5ba   : > { %6846 = vmatpush3.bf16.msra.mxu1 %v7677_v59  ;;  %6825 = vmatprep.subr.bf16.mxu0 %v7678_v47  ;;  %v7722_v59 = vld [vmem:[#allocation6 + $0x568] sm:$0xff]  }
 0x5bb   : > { %6847 = vmatprep.subr.bf16.mxu1 %v7679_v58  ;;  %v7723_v47 = vld [vmem:[#allocation6 + $0x5e8] sm:$0xff]  }
 0x5bc   : > { %v7724_v58 = vld [vmem:[#allocation6 + $0x528] sm:$0xff]  }
 0x5bd   : > { %6826 = vmatpush3.bf16.msra.mxu0 %v7680_v62  ;;  %v7725_v62 = vld [vmem:[#allocation6 + $0x5a8] sm:$0xff]  }
 0x5be   : > { %6848 = vmatpush3.bf16.msra.mxu1 %v7681_v35  ;;  %6827 = vmatprep.subr.bf16.mxu0 %v7682_v22  ;;  %v7726_v35 = vld [vmem:[#allocation6 + $0x570] sm:$0xff]  }
 0x5bf   : > { %6849 = vmatprep.subr.bf16.mxu1 %v7683_v7  ;;  %v7727_v22 = vld [vmem:[#allocation6 + $0x5f0] sm:$0xff]  }
 0x5c0   : > { %v7728_v7 = vld [vmem:[#allocation6 + $0x530] sm:$0xff]  }
 0x5c1   : > { %6828 = vmatpush3.bf16.msra.mxu0 %v7684_v60  ;;  %v7729_v60 = vld [vmem:[#allocation6 + $0x5b0] sm:$0xff]  }
 0x5c2   : > { %6850 = vmatpush3.bf16.msra.mxu1 %v7685_v3  ;;  %6829 = vmatprep.subr.bf16.mxu0 %v7686_v12  ;;  %v7730_v3 = vld [vmem:[#allocation6 + $0x578] sm:$0xff]  }
 0x5c3   : > { %6851 = vmatprep.subr.bf16.mxu1 %v7687_v24  ;;  %v7731_v12 = vld [vmem:[#allocation6 + $0x5f8] sm:$0xff]  }
 0x5c4   : > { %v7732_v24 = vld [vmem:[#allocation6 + $0x538] sm:$0xff]  }
 0x5c5   : > { %6830 = vmatpush3.bf16.msra.mxu0 %v7688_v5  ;;  %v9489_v5 = vld [vmem:[#allocation5 + $0x18] sm:$0xff] }
 0x5c6   : > { %6852 = vmatpush3.bf16.msra.mxu1 %v7689_v33  ;;  %6831 = vmatprep.subr.bf16.mxu0 %v7690_v51  ;;  %v7733_v33 = vld [vmem:[#allocation6 + $0x5b8] sm:$0xff]   ;;  %v3107_v51 = vrot.slane %v9471_v45, %v9437_v20 }
 0x5c7   : > { %6853 = vmatprep.subr.bf16.mxu1 %v7691_v54  ;;  %v7734_v54 = vld [vmem:[#allocation6 + $0x640] sm:$0xff]  }
 0x5c9   : > { %6832 = vmatpush3.bf16.msra.mxu0 %v7692_v63  ;;  %v3115_v63 = vrot.slane %v9471_v45, %v9416_v40 }
 0x5ca   : > { %6854 = vmatpush3.bf16.msra.mxu1 %v7693_v13  ;;  %6833 = vmatprep.subr.bf16.mxu0 %v7694_v15  ;;  %v7735_v13 = vld [vmem:[#allocation6 + $0x6c0] sm:$0xff]   ;;  %v3127_v15 = vrot.slane %v9489_v5, %v9366_v42  ;;  %v7741_v42 = vld [vmem:[#allocation6 + $0x688] sm:$0xff]  }
 0x5cb   : > { %6855 = vmatprep.subr.bf16.mxu1 %v7695_v50  ;;  %v7736_v50 = vld [vmem:[#allocation6 + $0x600] sm:$0xff]  }
 0x5cd   : > { %6834 = vmatpush3.bf16.msra.mxu0 %v7696_v4  ;;  %v3135_v4 = vrot.slane %v9489_v5, %v9369_v43  ;;  %v7743_v43 = vld [vmem:[#allocation6 + $0x6d0] sm:$0xff]  }
 0x5ce   : > { %6856 = vmatpush3.bf16.msra.mxu1 %v7697_v26  ;;  %6835 = vmatprep.subr.bf16.mxu0 %v7698_v11  ;;  %v3204_v26 = vpack.c.bf16 %v3107_v51, %v3107_v51  ;;  %v7737_v11 = vld [vmem:[#allocation6 + $0x680] sm:$0xff]   ;;  %v7777_v51 = vld [vmem:[#allocation6 + $0x790] sm:$0xff]  }
 0x5cf   : > { %6857 = vmatprep.subr.bf16.mxu1 %v7699_v27  ;;  %v3206_v27 = vpack.c.bf16 %v3115_v63, %v3115_v63  ;;  %v3211_v45 = vpack.c.bf16 %v3135_v4, %v3135_v4  ;;  %v7779_v63 = vld [vmem:[#allocation6 + $0x7d8] sm:$0xff]   ;;  %v7783_v4 = vld [vmem:[#allocation6 + $0x7e0] sm:$0xff]  }
 0x5d1   : > { %6836 = vmatpush3.bf16.msra.mxu0 %v7700_v19  ;;  %v7738_v19 = vld [vmem:[#allocation6 + $0x648] sm:$0xff]  }
 0x5d2   : > { %6858 = vmatpush3.bf16.msra.mxu1 %v7701_v56  ;;  %6865 = vmatprep.subr.bf16.mxu0 %v7702_v23  ;;  %v3209_v56 = vpack.c.bf16 %v3127_v15, %v3127_v15  ;;  %v7740_v23 = vld [vmem:[#allocation6 + $0x608] sm:$0xff]   ;;  %v7781_v15 = vld [vmem:[#allocation6 + $0x798] sm:$0xff]  }
 0x5d3   : > { %6887 = vmatprep.subr.bf16.mxu1 %v7703_v39  ;;  %v7744_v39 = vld [vmem:[#allocation6 + $0x610] sm:$0xff]  }
 0x5d4   : > { %5667 = vmatmul.mubr.bf16.vlgmr.msra.gmra.mrb[48].mxu0 %v3200_v8  ;;  %v7748_v8 = vld [vmem:[#allocation6 + $0x618] sm:$0xff]  }
 0x5d5   : > { %5707 = vmatmul.mubr.bf16.vlgmr.msra.gmra.mrb[60].mxu1 %v3202_v30  ;;  %6866 = vmatpush3.bf16.msra.mxu0 %v7704_v34  ;;  %v7746_v34 = vld [vmem:[#allocation6 + $0x658] sm:$0xff]   ;;  %v7750_v30 = vld [vmem:[#allocation6 + $0x660] sm:$0xff]  }
 0x5d6   : > { %5746 = vmatprep.mubr.bf16.mxu0 %v3205_v29  ;;  %6888 = vmatpush3.bf16.msra.mxu1 %v7705_v16  ;;  %v7749_v16 = vld [vmem:[#allocation6 + $0x698] sm:$0xff]   ;;  %v7752_v29 = vld [vmem:[#allocation6 + $0x620] sm:$0xff]  }
 0x5d7   : > { %5786 = vmatprep.mubr.bf16.mxu1 %v3207_v32  ;;  %6867 = vmatprep.subr.bf16.mxu0 %v7706_v53  ;;  %v7751_v53 = vld [vmem:[#allocation6 + $0x6e0] sm:$0xff]   ;;  %v7754_v32 = vld [vmem:[#allocation6 + $0x668] sm:$0xff]  }
 0x5d8   : > { %6889 = vmatprep.subr.bf16.mxu1 %v7707_v44  ;;  %v7753_v44 = vld [vmem:[#allocation6 + $0x6a0] sm:$0xff]  }
 0x5d9   : > { %6868 = vmatpush3.bf16.msra.mxu0 %v7708_v2  ;;  %v7755_v2 = vld [vmem:[#allocation6 + $0x6e8] sm:$0xff]  }
 0x5da   : > { %6890 = vmatpush3.bf16.msra.mxu1 %v7709_v31  ;;  %6869 = vmatprep.subr.bf16.mxu0 %v7710_v1  ;;  %v7756_v31 = vld [vmem:[#allocation6 + $0x628] sm:$0xff]  }
 0x5db   : > { %6891 = vmatprep.subr.bf16.mxu1 %v7711_v21  ;;  %v7757_v1 = vld [vmem:[#allocation6 + $0x6a8] sm:$0xff]   ;;  %v7758_v21 = vld [vmem:[#allocation6 + $0x670] sm:$0xff]  }
 0x5dd   : > { %6870 = vmatpush3.bf16.msra.mxu0 %v7712_v17  ;;  %v7759_v17 = vld [vmem:[#allocation6 + $0x6f0] sm:$0xff]  }
 0x5de   : > { %6892 = vmatpush3.bf16.msra.mxu1 %v7713_v9  ;;  %6871 = vmatprep.subr.bf16.mxu0 %v7714_v38  ;;  %v7760_v9 = vld [vmem:[#allocation6 + $0x630] sm:$0xff]  }
 0x5df   : > { %6893 = vmatprep.subr.bf16.mxu1 %v7715_v46  ;;  %v7761_v38 = vld [vmem:[#allocation6 + $0x6b0] sm:$0xff]   ;;  %v7762_v46 = vld [vmem:[#allocation6 + $0x678] sm:$0xff]  }
 0x5e1   : > { %6872 = vmatpush3.bf16.msra.mxu0 %v7716_v48  ;;  %v7763_v48 = vld [vmem:[#allocation6 + $0x6f8] sm:$0xff]  }
 0x5e2   : > { %6894 = vmatpush3.bf16.msra.mxu1 %v7717_v61  ;;  %6873 = vmatprep.subr.bf16.mxu0 %v7718_v10  ;;  %v7764_v61 = vld [vmem:[#allocation6 + $0x638] sm:$0xff]  }
 0x5e3   : > { %6895 = vmatprep.subr.bf16.mxu1 %v7719_v55  ;;  %v7765_v10 = vld [vmem:[#allocation6 + $0x6b8] sm:$0xff]   ;;  %v3123_v55 = vrot.slane %v9489_v5, %v9372_v52  ;;  %v7770_v52 = vld [vmem:[#allocation6 + $0x748] sm:$0xff]  }
 0x5e5   : > { %6874 = vmatpush3.bf16.msra.mxu0 %v7720_v57  ;;  %v7766_v57 = vld [vmem:[#allocation6 + $0x740] sm:$0xff]  }
 0x5e6   : > { %6896 = vmatpush3.bf16.msra.mxu1 %v7721_v49  ;;  %6875 = vmatprep.subr.bf16.mxu0 %v7722_v59  ;;  %v3131_v49 = vrot.slane %v9489_v5, %v9375_v37  ;;  %v7767_v59 = vld [vmem:[#allocation6 + $0x7c0] sm:$0xff]  }
 0x5e7   : > { %6897 = vmatprep.subr.bf16.mxu1 %v7723_v47  ;;  %v3143_v47 = vrot.slane %v9489_v5, %v9378_v25  ;;  %v7773_v25 = vld [vmem:[#allocation6 + $0x788] sm:$0xff]  }
 0x5e9   : > { %6876 = vmatpush3.bf16.msra.mxu0 %v7724_v58  ;;  %v7768_v58 = vld [vmem:[#allocation6 + $0x700] sm:$0xff]  }
 0x5ea   : > { %6898 = vmatpush3.bf16.msra.mxu1 %v7725_v62  ;;  %6877 = vmatprep.subr.bf16.mxu0 %v7726_v35  ;;  %v3151_v62 = vrot.slane %v9489_v5, %v9381_v6  ;;  %v3208_v35 = vpack.c.bf16 %v3123_v55, %v3123_v55  ;;  %v7775_v6 = vld [vmem:[#allocation6 + $0x7d0] sm:$0xff]  }
 0x5eb   : > { %6899 = vmatprep.subr.bf16.mxu1 %v7727_v22  ;;  %v7769_v22 = vld [vmem:[#allocation6 + $0x780] sm:$0xff]  }
 0x5ec   : > { %v3215_v37 = vpack.c.bf16 %v3151_v62, %v3151_v62 }
 0x5ed   : > { %6878 = vmatpush3.bf16.msra.mxu0 %v7728_v7  ;;  %v3210_v7 = vpack.c.bf16 %v3131_v49, %v3131_v49 }
 0x5ee   : > { %6900 = vmatpush3.bf16.msra.mxu1 %v7729_v60  ;;  %6879 = vmatprep.subr.bf16.mxu0 %v7730_v3  ;;  %v3213_v60 = vpack.c.bf16 %v3143_v47, %v3143_v47  ;;  %v7771_v3 = vld [vmem:[#allocation6 + $0x7c8] sm:$0xff]  }
 0x5ef   : > { %6901 = vmatprep.subr.bf16.mxu1 %v7731_v12  ;;  %v7772_v12 = vld [vmem:[#allocation6 + $0x708] sm:$0xff]  }
 0x5f1   : > { %6880 = vmatpush3.bf16.msra.mxu0 %v7732_v24  ;;  %v7774_v24 = vld [vmem:[#allocation6 + $0x750] sm:$0xff]  }
 0x5f2   : > { %6902 = vmatpush3.bf16.msra.mxu1 %v7733_v33  ;;  %6909 = vmatprep.subr.bf16.mxu0 %v7734_v54  ;;  %v7776_v33 = vld [vmem:[#allocation6 + $0x710] sm:$0xff]   ;;  %v7778_v54 = vld [vmem:[#allocation6 + $0x758] sm:$0xff]  }
 0x5f3   : > { %6931 = vmatprep.subr.bf16.mxu1 %v7735_v13  ;;  %v7780_v13 = vld [vmem:[#allocation6 + $0x718] sm:$0xff]  }
 0x5f4   : > { %5747 = vmatmul.mubr.bf16.vlgmr.msra.gmra.mrb[52].mxu0 %v3204_v26  ;;  %v7784_v26 = vld [vmem:[#allocation6 + $0x720] sm:$0xff]  }
 0x5f5   : > { %5787 = vmatmul.mubr.bf16.vlgmr.msra.gmra.mrb[64].mxu1 %v3206_v27  ;;  %6910 = vmatpush3.bf16.msra.mxu0 %v7736_v50  ;;  %v7782_v50 = vld [vmem:[#allocation6 + $0x760] sm:$0xff]   ;;  %v7786_v27 = vld [vmem:[#allocation6 + $0x768] sm:$0xff]  }
 0x5f6   : > { %5826 = vmatprep.mubr.bf16.mxu0 %v3209_v56  ;;  %6932 = vmatpush3.bf16.msra.mxu1 %v7737_v11  ;;  %v7785_v11 = vld [vmem:[#allocation6 + $0x7a0] sm:$0xff]   ;;  %v7788_v56 = vld [vmem:[#allocation6 + $0x728] sm:$0xff]  }
 0x5f7   : > { %5866 = vmatprep.mubr.bf16.mxu1 %v3211_v45  ;;  %6911 = vmatprep.subr.bf16.mxu0 %v7738_v19  ;;  %v7787_v19 = vld [vmem:[#allocation6 + $0x7e8] sm:$0xff]   ;;  %v7790_v45 = vld [vmem:[#allocation6 + $0x770] sm:$0xff]  }
 0x5f8   : > { %6933 = vmatprep.subr.bf16.mxu1 %v7739_v36  ;;  %v7789_v36 = vld [vmem:[#allocation6 + $0x7a8] sm:$0xff]  }
 0x5f9   : > { %6912 = vmatpush3.bf16.msra.mxu0 %v7740_v23 }
 0x5fa   : > { %6934 = vmatpush3.bf16.msra.mxu1 %v7741_v42  ;;  %6913 = vmatprep.subr.bf16.mxu0 %v7742_v18  ;;  %v7791_v18 = vld [vmem:[#allocation6 + $0x7f0] sm:$0xff]  }
 0x5fb   : > { %6935 = vmatprep.subr.bf16.mxu1 %v7743_v43 }
 0x5fd   : > { %6914 = vmatpush3.bf16.msra.mxu0 %v7744_v39 }
 0x5fe   : > { %6936 = vmatpush3.bf16.msra.mxu1 %v7745_v41  ;;  %6915 = vmatprep.subr.bf16.mxu0 %v7746_v34 }
 0x5ff   : > { %6937 = vmatprep.subr.bf16.mxu1 %v7747_v28 }
 0x601   : > { %6916 = vmatpush3.bf16.msra.mxu0 %v7748_v8 }
 0x602   : > { %6938 = vmatpush3.bf16.msra.mxu1 %v7749_v16  ;;  %6917 = vmatprep.subr.bf16.mxu0 %v7750_v30  ;;  %v7792_v16 = vld [vmem:[#allocation6 + $0x730] sm:$0xff]  }
 0x603   : > { %6939 = vmatprep.subr.bf16.mxu1 %v7751_v53 }
 0x605   : > { %6918 = vmatpush3.bf16.msra.mxu0 %v7752_v29  ;;  %v7793_v29 = vld [vmem:[#allocation6 + $0x7b0] sm:$0xff]  }
 0x606   : > { %6940 = vmatpush3.bf16.msra.mxu1 %v7753_v44  ;;  %6919 = vmatprep.subr.bf16.mxu0 %v7754_v32  ;;  %v7794_v44 = vld [vmem:[#allocation6 + $0x778] sm:$0xff]  }
 0x607   : > { %6941 = vmatprep.subr.bf16.mxu1 %v7755_v2  ;;  %v7795_v2 = vld [vmem:[#allocation6 + $0x7f8] sm:$0xff]  }
 0x609   : > { %6920 = vmatpush3.bf16.msra.mxu0 %v7756_v31 }
 0x60a   : > { %6942 = vmatpush3.bf16.msra.mxu1 %v7757_v1  ;;  %6921 = vmatprep.subr.bf16.mxu0 %v7758_v21  ;;  %v7796_v1 = vld [vmem:[#allocation6 + $0x738] sm:$0xff]  }
 0x60b   : > { %6943 = vmatprep.subr.bf16.mxu1 %v7759_v17  ;;  %v7797_v21 = vld [vmem:[#allocation6 + $0x7b8] sm:$0xff]   ;;  %v3139_v17 = vrot.slane %v9489_v5, %v9437_v20 }
 0x60d   : > { %6922 = vmatpush3.bf16.msra.mxu0 %v7760_v9  ;;  %v3147_v9 = vrot.slane %v9489_v5, %v9416_v40 }
 0x60e   : > { %6944 = vmatpush3.bf16.msra.mxu1 %v7761_v38  ;;  %6923 = vmatprep.subr.bf16.mxu0 %v7762_v46  ;;  %v3212_v38 = vpack.c.bf16 %v3139_v17, %v3139_v17 }
 0x60f   : > { %6945 = vmatprep.subr.bf16.mxu1 %v7763_v48 }
 0x611   : > { %6924 = vmatpush3.bf16.msra.mxu0 %v7764_v61 }
 0x612   : > { %6946 = vmatpush3.bf16.msra.mxu1 %v7765_v10  ;;  %6953 = vmatprep.subr.bf16.mxu0 %v7766_v57 }
 0x613   : > { %6975 = vmatprep.subr.bf16.mxu1 %v7767_v59 }
 0x614   : > { %5827 = vmatmul.mubr.bf16.vlgmr.msra.gmra.mrb[56].mxu0 %v3208_v35 }
 0x615   : > { %5867 = vmatmul.mubr.bf16.vlgmr.msra.gmra.mrb[68].mxu1 %v3210_v7  ;;  %6954 = vmatpush3.bf16.msra.mxu0 %v7768_v58 }
 0x616   : > { %5906 = vmatprep.mubr.bf16.mxu0 %v3213_v60  ;;  %6976 = vmatpush3.bf16.msra.mxu1 %v7769_v22 }
 0x617   : > { %5946 = vmatprep.mubr.bf16.mxu1 %v3215_v37  ;;  %6955 = vmatprep.subr.bf16.mxu0 %v7770_v52 }
 0x618   : > { %6977 = vmatprep.subr.bf16.mxu1 %v7771_v3 }
 0x619   : > { %6956 = vmatpush3.bf16.msra.mxu0 %v7772_v12 }
 0x61a   : > { %6978 = vmatpush3.bf16.msra.mxu1 %v7773_v25  ;;  %6957 = vmatprep.subr.bf16.mxu0 %v7774_v24 }
 0x61b   : > { %6979 = vmatprep.subr.bf16.mxu1 %v7775_v6  ;;  %v7798_v6 = vld [vmem:[%s9610_s11] sm:$0xff]  }
 0x61d   : > { %6958 = vmatpush3.bf16.msra.mxu0 %v7776_v33  ;;  %v7799_v33 = vld [vmem:[%s9610_s11 + $0x8] sm:$0xff]  }
 0x61e   : > { %6980 = vmatpush3.bf16.msra.mxu1 %v7777_v51  ;;  %6959 = vmatprep.subr.bf16.mxu0 %v7778_v54  ;;  %v7800_v51 = vld [vmem:[%s9610_s11 + $0x10] sm:$0xff]   ;;  %v7801_v54 = vld [vmem:[%s9610_s11 + $0x18] sm:$0xff]  }
 0x61f   : > { %6981 = vmatprep.subr.bf16.mxu1 %v7779_v63  ;;  %v7802_v63 = vld [vmem:[%s9610_s11 + $0x20] sm:$0xff]  }
 0x621   : > { %6960 = vmatpush3.bf16.msra.mxu0 %v7780_v13 }
 0x622   : > { %6982 = vmatpush3.bf16.msra.mxu1 %v7781_v15  ;;  %6961 = vmatprep.subr.bf16.mxu0 %v7782_v50 }
 0x623   : > { %6983 = vmatprep.subr.bf16.mxu1 %v7783_v4 }
 0x625   : > { %6962 = vmatpush3.bf16.msra.mxu0 %v7784_v26 }
 0x626   : > { %6984 = vmatpush3.bf16.msra.mxu1 %v7785_v11  ;;  %6963 = vmatprep.subr.bf16.mxu0 %v7786_v27 }
 0x627   : > { %v6661_v23 = vpop.f32.mrb[32].mxu0  ;;  %v6683_v42 = vpop.f32.mrb[44].mxu1  ;;  %6985 = vmatprep.subr.bf16.mxu1 %v7787_v19 }
 0x628   : > { %v6662_v43 = vpop.f32.mrb[33].mxu0  ;;  %v6684_v39 = vpop.f32.mrb[45].mxu1 }
 0x629   : > { %v6663_v41 = vadd.f32 %v6662_v43, %v6661_v23  ;;  %v6685_v34 = vadd.f32 %v6684_v39, %v6683_v42  ;;  %6964 = vmatpush3.bf16.msra.mxu0 %v7788_v56  ;;  %v6664_v28 = vpop.f32.mrb[34].mxu0  ;;  %v6686_v8 = vpop.f32.mrb[46].mxu1  ;;  %v7803_v42 = vld [vmem:[%s9610_s11 + $0x28] sm:$0xff]   ;;  %v7805_v43 = vld [vmem:[%s9610_s11 + $0x38] sm:$0xff]  }
 0x62a   : > { %6986 = vmatpush3.bf16.msra.mxu1 %v7789_v36  ;;  %v6665_v30 = vpop.f32.mrb[35].mxu0  ;;  %v6687_v53 = vpop.f32.mrb[47].mxu1  ;;  %6965 = vmatprep.subr.bf16.mxu0 %v7790_v45 }
 0x62b   : > { %v5349_v32 = vadd.f32 %v6663_v41, %v9461_v14  ;;  %6987 = vmatprep.subr.bf16.mxu1 %v7791_v18  ;;  %v3214_v14 = vpack.c.bf16 %v3147_v9, %v3147_v9  ;;  %v7804_v18 = vld [vmem:[%s9610_s11 + $0x30] sm:$0xff]  }
 0x62d   : > { %v5389_v31 = vadd.f32 %v6685_v34, %v5349_v32  ;;  %6966 = vmatpush3.bf16.msra.mxu0 %v7792_v16 }
 0x62e   : > { %6988 = vmatpush3.bf16.msra.mxu1 %v7793_v29  ;;  %6967 = vmatprep.subr.bf16.mxu0 %v7794_v44 }
 0x62f   : > { %6989 = vmatprep.subr.bf16.mxu1 %v7795_v2 }
 0x631   : > { %6968 = vmatpush3.bf16.msra.mxu0 %v7796_v1 }
 0x632   : > { %6990 = vmatpush3.bf16.msra.mxu1 %v7797_v21  ;;  %7054 = vmatprep.subr.bf16.mxu0 %v7913_v0 }
 0x634   : > { %5907 = vmatmul.mubr.bf16.vlgmr.msra.gmra.mrb[60].mxu0 %v3212_v38 }
 0x635   : > { %5947 = vmatmul.mubr.bf16.vlgmr.msra.gmra.mrb[72].mxu1 %v3214_v14  ;;  %7070 = vmatprep.mubr.msk.bf16.mxu0 %vm7924_vm2, %v7913_v0 }
 0x636   : > { %7055 = vmatpush3.bf16.msra.mxu0 %v7798_v6 }
 0x637   : > { %7056 = vmatprep.subr.bf16.mxu0 %v7913_v0 }
 0x63a   : > { %7057 = vmatpush3.bf16.msra.mxu0 %v7799_v33 }
 0x63b   : > { %7058 = vmatprep.subr.bf16.mxu0 %v7913_v0 }
 0x63e   : > { %7059 = vmatpush3.bf16.msra.mxu0 %v7800_v51 }
 0x63f   : > { %7060 = vmatprep.subr.bf16.mxu0 %v7913_v0 }
 0x642   : > { %7061 = vmatpush3.bf16.msra.mxu0 %v7801_v54  ;;  %v5954_v54 = vld [vmem:[%s9609_s10] sm:$0x1] }
 0x643   : > { %7062 = vmatprep.subr.bf16.mxu0 %v7913_v0 }
 0x646   : > { %7063 = vmatpush3.bf16.msra.mxu0 %v7802_v63 }
 0x647   : > { %v6705_v46 = vpop.f32.mrb[36].mxu0  ;;  %v6727_v48 = vpop.f32.mrb[48].mxu1  ;;  %7064 = vmatprep.subr.bf16.mxu0 %v7913_v0 }
 0x648   : > { %v6706_v61 = vpop.f32.mrb[37].mxu0  ;;  %v6728_v10 = vpop.f32.mrb[49].mxu1 }
 0x649   : > { %v6707_v20 = vadd.f32 %v6706_v61, %v6705_v46  ;;  %v6729_v55 = vadd.f32 %v6728_v10, %v6727_v48  ;;  %v6708_v57 = vpop.f32.mrb[38].mxu0  ;;  %v6730_v49 = vpop.f32.mrb[50].mxu1 }
 0x64a   : > { %v6709_v40 = vpop.f32.mrb[39].mxu0  ;;  %v6731_v5 = vpop.f32.mrb[51].mxu1  ;;  %7065 = vmatpush3.bf16.msra.mxu0 %v7803_v42 }
 0x64b   : > { %v5429_v59 = vadd.f32 %v6707_v20, %v5389_v31  ;;  %7066 = vmatprep.subr.bf16.mxu0 %v7913_v0 }
 0x64d   : > { %v5469_v47 = vadd.f32 %v6729_v55, %v5429_v59 }
 0x64e   : > { %7067 = vmatpush3.bf16.msra.mxu0 %v7804_v18 }
 0x64f   : > { %7068 = vmatprep.subr.bf16.mxu0 %v7913_v0 }
 0x652   : > { %7069 = vmatpush3.bf16.msra.mxu0 %v7805_v43 }
 0x667   : > { %v6749_v58 = vpop.f32.mrb[40].mxu0 }
 0x668   : > { %v6771_v62 = vpop.f32.mrb[52].mxu1  ;;  %v6750_v35 = vpop.f32.mrb[41].mxu0 }
 0x669   : > { %v6751_v22 = vadd.f32 %v6750_v35, %v6749_v58  ;;  %v6772_v7 = vpop.f32.mrb[53].mxu1  ;;  %v6752_v52 = vpop.f32.mrb[42].mxu0 }
 0x66a   : > { %v6773_v60 = vadd.f32 %v6772_v7, %v6771_v62  ;;  %v6774_v3 = vpop.f32.mrb[54].mxu1  ;;  %v6753_v37 = vpop.f32.mrb[43].mxu0 }
 0x66b   : > { %v5509_v12 = vadd.f32 %v6751_v22, %v5469_v47  ;;  %v6775_v25 = vpop.f32.mrb[55].mxu1 }
 0x66d   : > { %v5549_v24 = vadd.f32 %v6773_v60, %v5509_v12 }
 0x687   : > { %v6793_v13 = vpop.f32.mrb[44].mxu0 }
 0x688   : > { %v6815_v15 = vpop.f32.mrb[56].mxu1  ;;  %v6794_v50 = vpop.f32.mrb[45].mxu0 }
 0x689   : > { %v6795_v4 = vadd.f32 %v6794_v50, %v6793_v13  ;;  %v6816_v26 = vpop.f32.mrb[57].mxu1  ;;  %v6796_v11 = vpop.f32.mrb[46].mxu0 }
 0x68a   : > { %v6817_v27 = vadd.f32 %v6816_v26, %v6815_v15  ;;  %v6818_v19 = vpop.f32.mrb[58].mxu1  ;;  %v6797_v56 = vpop.f32.mrb[47].mxu0 }
 0x68b   : > { %v5589_v36 = vadd.f32 %v6795_v4, %v5549_v24  ;;  %v6819_v45 = vpop.f32.mrb[59].mxu1  ;;  %v5974_v4 = vld [vmem:[%s9611_s12] sm:$0x1] }
 0x68d   : > { %v5629_v23 = vadd.f32 %v6817_v27, %v5589_v36 }
 0x6a7   : > { %v6837_v39 = vpop.f32.mrb[48].mxu0 }
 0x6a8   : > { %v6859_v41 = vpop.f32.mrb[60].mxu1  ;;  %v6838_v34 = vpop.f32.mrb[49].mxu0 }
 0x6a9   : > { %v6839_v28 = vadd.f32 %v6838_v34, %v6837_v39  ;;  %v6860_v8 = vpop.f32.mrb[61].mxu1  ;;  %v6840_v16 = vpop.f32.mrb[50].mxu0 }
 0x6aa   : > { %v6861_v30 = vadd.f32 %v6860_v8, %v6859_v41  ;;  %v6862_v53 = vpop.f32.mrb[62].mxu1  ;;  %v6841_v29 = vpop.f32.mrb[51].mxu0 }
 0x6ab   : > { %v5669_v44 = vadd.f32 %v6839_v28, %v5629_v23  ;;  %v6863_v32 = vpop.f32.mrb[63].mxu1 }
 0x6ad   : > { %v5709_v2 = vadd.f32 %v6861_v30, %v5669_v44 }
 0x6c7   : > { %v6881_v31 = vpop.f32.mrb[52].mxu0 }
 0x6c8   : > { %v6903_v1 = vpop.f32.mrb[64].mxu1  ;;  %v6882_v21 = vpop.f32.mrb[53].mxu0 }
 0x6c9   : > { %v6883_v17 = vadd.f32 %v6882_v21, %v6881_v31  ;;  %v6904_v9 = vpop.f32.mrb[65].mxu1  ;;  %v6884_v38 = vpop.f32.mrb[54].mxu0 }
 0x6ca   : > { %v6905_v0 = vadd.f32 %v6904_v9, %v6903_v1  ;;  %v6906_v14 = vpop.f32.mrb[66].mxu1  ;;  %v6885_v46 = vpop.f32.mrb[55].mxu0 }
 0x6cb   : > { %v5749_v48 = vadd.f32 %v6883_v17, %v5709_v2  ;;  %v6907_v61 = vpop.f32.mrb[67].mxu1 }
 0x6cd   : > { %v5789_v10 = vadd.f32 %v6905_v0, %v5749_v48 }
 0x6e7   : > { %v6925_v20 = vpop.f32.mrb[56].mxu0 }
 0x6e8   : > { %v6947_v55 = vpop.f32.mrb[68].mxu1  ;;  %v6926_v57 = vpop.f32.mrb[57].mxu0 }
 0x6e9   : > { %v6927_v49 = vadd.f32 %v6926_v57, %v6925_v20  ;;  %v6948_v40 = vpop.f32.mrb[69].mxu1  ;;  %v6928_v5 = vpop.f32.mrb[58].mxu0 }
 0x6ea   : > { %v6949_v59 = vadd.f32 %v6948_v40, %v6947_v55  ;;  %v6950_v47 = vpop.f32.mrb[70].mxu1  ;;  %v6929_v58 = vpop.f32.mrb[59].mxu0 }
 0x6eb   : > { %v5829_v62 = vadd.f32 %v6927_v49, %v5789_v10  ;;  %v6951_v35 = vpop.f32.mrb[71].mxu1 }
 0x6ed   : > { %v5869_v22 = vadd.f32 %v6949_v59, %v5829_v62 }
 0x707   : > { %v6969_v7 = vpop.f32.mrb[60].mxu0 }
 0x708   : > { %v6991_v52 = vpop.f32.mrb[72].mxu1  ;;  %v6970_v60 = vpop.f32.mrb[61].mxu0 }
 0x709   : > { %v6971_v3 = vadd.f32 %v6970_v60, %v6969_v7  ;;  %v6992_v37 = vpop.f32.mrb[73].mxu1  ;;  %v6972_v12 = vpop.f32.mrb[62].mxu0 }
 0x70a   : > { %v6993_v25 = vadd.f32 %v6992_v37, %v6991_v52  ;;  %v6994_v24 = vpop.f32.mrb[74].mxu1  ;;  %v6973_v6 = vpop.f32.mrb[63].mxu0 }
 0x70b   : > { %v5909_v33 = vadd.f32 %v6971_v3, %v5869_v22  ;;  %v6995_v51 = vpop.f32.mrb[75].mxu1 }
 0x70d   : > { %v5949_v63 = vadd.f32 %v6993_v25, %v5909_v33 }
 0x70f   : > { %v5955_v13 = vadd.f32 %v5954_v54, %v5949_v63 }
 0x711   : > { %v5956_v15 = vmax.f32 %v5955_v13, 0.0 }
 0x713   : > { %v5957_v50 = vpack.c.bf16 %v5956_v15, %v5956_v15 }
 0x715   : > { %7071 = vmatmul.mubr.bf16.vlgmr.msra.gmra.mrb[64].mxu0 %v5957_v50 }
 0x7e8   : > { %v6057_v26 = vpop.f32.mrb[64].mxu0 }
 0x7e9   : > { %v6058_v11 = vadd.f32 %v6057_v26, %v5974_v4  ;;  %v7072_v27 = vpop.f32.mrb[65].mxu0 }
 0x7ea   : > { %v6060_v19 = vpop.f32.mrb[66].mxu0 }
 0x7eb   : > { %6063 = vst [vmem:[%s458_s16] sm:$0x1] %v6058_v11  ;;  %v7073_v56 = vpop.f32.mrb[67].mxu0 }
 0x7ec   : > { %7855 = shalt.err (!%p7852_p7)
}
 0x7ed   : > { %s7856_s22 = scalar_lea.hbm %s9557_s15, 16  ;;  %s7860_s30 = scalar_lea.hbm %s9612_s13, 32 }
 0x7ee   : > { %p7857_p8 = scmp.ne.s32.totalorder %s9557_s15, %s7856_s22  ;;  %p7861_p1 = scmp.lt.u32.totalorder %s9557_s15, %s9612_s13 }
 0x7ef   : > { %p7862_p0 = scmp.lt.u32.totalorder %s7860_s30, %s7856_s22  ;;  %p7864_p6 = scmp.lt.u32.totalorder %s7856_s22, %s9557_s15 }
 0x7f0   : > { %p7858_p11 = pnand %p7857_p8, %p9639_p9 }
 0x7f1   : > { %p7863_p5 = por %p7862_p0, %p7861_p1 }
 0x7f2   : > { %p7859_p13 = pneg %p7858_p11 }
 0x7f3   : > { %p7865_p10 = por %p7864_p6, %p7863_p5 }
 0x7f5   : > { %p7866_p12 = pnand %p7865_p10, %p7859_p13 }
 0x7f7   : > { %7869 = shalt.err (!%p7866_p12)
}
 0x7f8   : > { %7079 = dma.vmem_to_hbm [thread:$0]  (%p9639_p9), %s9559_s20, 16, %s9557_s15, %s6065_s21  }
 0x7f9 PF: > { %p7091_p2 = scmp.ge.s32.totalorder %s7908_s28, 2  ;;  %s6089_s29 = sand.u32 1, %s7896_s25  }
 0x7fa   : > { %p9640_p3 = scmp.ne.s32.totalorder %s9627_s19, 0  ;;  %s6090_s23 = scalar_lea.sflag [#allocation8], %s6089_s29 }
 0x7fc   : > { %p7086_p4 = pnand %p7091_p2, %p9640_p3 }
 0x7fe   : > { %7891 = dma.done.wait (!%p7086_p4), %s6090_s23, 16  }
 0x7ff   : > { %7893 = vsyncadd (!%p7086_p4), %s6090_s23, 4294967280  ;;  %s9641_s28 = sld [smem:[#allocation13_spill]]  ;;  %s9642_s27 = sld [smem:[#allocation12_spill]] }
 0x800   : > { %s9643_s22 = sld [smem:[#allocation14_spill]]  ;;  %s9644_s25 = smov %s7900_s26 }
 0x805   : > { %p24_p7 = scmp.ge.s32.totalorder %s9641_s28, 4   ;;  %s9645_s26 = smov %s9642_s27 }
 0x806   : > { %s9646_s27 = smov %s9643_s22 }
 0x807   :  { %26 = sbr.rel (!%p24_p7) target bundleno = 4 (0x4), region = 118 }
 0x80e   :  { %6094 = vsyncpa [#allocation7], 1 }
 0x80f   :  { %6096 = vsyncpa [#allocation7 + $0x1], 1 }
 0x810   :  { %6097 = vsyncpa [#allocation8], 1 }
 0x811   :  { %6099 = vsyncpa [#allocation8 + $0x1], 1 }

</bundles_post_ra>
